<compile_context>
chip_gen: v6e
topology: v6e:2x2x1
jax: 0.10.0
libtpu: 0.0.40
codegen_flags: <defaults>
</compile_context>

<pallas_src>
import jax
import jax.numpy as jnp
from jax import lax
from jax.experimental import pallas as pl
from jax.experimental.pallas import tpu as pltpu


def _rup(a, m):
    return -(-a // m) * m


def double_conv_kernel(x_ref, w1_ref, t1_ref, w2_ref, t2_ref, o_ref):
    # x_ref:  (1, 1, SH+4, WMP+2, CIN_P)  input strip (2 halo rows/cols, zero padded, bf16)
    # w1_ref: (9*CIN_P, CMID)             conv1 weights, BN scale folded, im2col (dy,dx,cin)
    # t1_ref: (1, CMID)      f32          conv1 folded shift (bias + BN)
    # w2_ref: (9, CMID, COUT_P)           conv2 weights per tap, BN scale folded
    # t2_ref: (1, COUT_P)    f32          conv2 folded shift
    # o_ref:  (1, SH, W, COUT_P) f32      output strip (lane-dense 128-channel axis)
    SH = o_ref.shape[1]
    W = o_ref.shape[2]
    COUT = o_ref.shape[3]
    CIN = x_ref.shape[4]
    CMID = w1_ref.shape[1]
    R1 = SH + 2                       # intermediate rows computed (1 halo row per side)
    WMP = x_ref.shape[3] - 2          # intermediate cols computed (>= W+2, 8-aligned)

    xs = x_ref[0, 0]                  # (SH+4, WMP+2, CIN)

    # ---- conv1: one im2col matmul (small: K = 9*CIN) ----
    cols1 = [xs[dy:dy + R1, dx:dx + WMP, :].reshape(R1 * WMP, CIN)
             for dy in range(3) for dx in range(3)]
    slab1 = jnp.concatenate(cols1, axis=-1)                         # (R1*WMP, 9*CIN)
    y1 = jnp.dot(slab1, w1_ref[...], preferred_element_type=jnp.float32)
    y1 = jnp.maximum(y1 + t1_ref[...], 0.0).reshape(R1, WMP, CMID)  # BN+bias folded, ReLU

    # Zero halo rows/cols that fall outside the image (== conv2's SAME zero padding).
    g0 = pl.program_id(1) * SH - 1                                  # global row of local row 0
    h_total = pl.num_programs(1) * SH
    row_id = g0 + lax.broadcasted_iota(jnp.int32, (R1, WMP, 1), 0)
    col_id = lax.broadcasted_iota(jnp.int32, (R1, WMP, 1), 1) - 1   # global col of local col j
    keep = (row_id >= 0) & (row_id < h_total) & (col_id >= 0) & (col_id < W)
    y1 = jnp.where(keep, y1, 0.0).astype(w2_ref.dtype)              # bf16 for the MXU

    # ---- conv2: 9 accumulated per-tap matmuls (K = CMID each, f32 accumulation) ----
    acc = None
    for dy in range(3):
        for dx in range(3):
            tap = y1[dy:dy + SH, dx:dx + W, :].reshape(SH * W, CMID)
            part = jnp.dot(tap, w2_ref[3 * dy + dx],
                           preferred_element_type=jnp.float32)
            acc = part if acc is None else acc + part

    y2 = jnp.maximum(acc + t2_ref[...], 0.0)
    o_ref[0] = y2.reshape(SH, W, COUT).astype(o_ref.dtype)


def _fold_bn_into_conv(w, b, gamma, beta, mean, var, eps=1e-5):
    """Eval-mode BN folded into conv: y = conv(x; w*scale) + shift."""
    scale = gamma / jnp.sqrt(var + eps)                             # (Cout,)
    return w * scale, (b - mean) * scale + beta


def _pad_axis(a, axis, new_size):
    pads = [(0, 0)] * a.ndim
    pads[axis] = (0, new_size - a.shape[axis])
    return jnp.pad(a, pads)


def _divisors_desc(n):
    ds = set()
    k = 1
    while k * k <= n:
        if n % k == 0:
            ds.add(k)
            ds.add(n // k)
        k += 1
    return sorted(ds, reverse=True)


def _est_vmem_bytes(SH, W, WP_in, WMP, CIN_P, CMID, COUT_P, in_bytes):
    """Rough per-step VMEM working set (lane/sublane padding accounted)."""
    lane = 128
    r1, m = SH + 2, SH * W
    cmid_l = max(_rup(CMID, lane), lane)
    inp = 2 * (SH + 4) * _rup(WP_in, 16) * lane * in_bytes       # double-buffered input strip
    outp = 2 * SH * W * COUT_P * 4                               # double-buffered f32 output strip
    y1 = r1 * WMP * cmid_l * (4 + in_bytes)                      # f32 intermediate + bf16 copy
    slab1 = r1 * WMP * _rup(9 * CIN_P, lane) * in_bytes          # conv1 im2col slab
    acc = m * COUT_P * 4                                         # conv2 accumulator
    taps = 2 * m * cmid_l * in_bytes                             # in-flight tap copies
    wts = 2 * (9 * CIN_P * _rup(CMID, lane) + 9 * CMID * COUT_P) * in_bytes
    return inp + outp + y1 + slab1 + acc + taps + wts


def inconv_forward(x_nchw, w1, b1, g1, be1, m1, v1, w2, b2, g2, be2, m2, v2,
                   *, eps=1e-5, compute_dtype=jnp.bfloat16, max_strip_rows=256):
    N, Cin, H, W = x_nchw.shape
    Cout = w1.shape[-1]
    LANES = 128
    CIN_P = _rup(Cin, 8)
    CMID = _rup(Cout, 8)               # conv2 contraction = real channels, 8-aligned
    COUT_P = _rup(Cout, LANES)         # lane-dense output channel axis
    WMP = _rup(W + 2, 8)               # intermediate width incl. 1-col halo, sublane aligned
    WP_in = WMP + 2                    # input strip width (conv1 needs one more col per side)
    in_bytes = jnp.dtype(compute_dtype).itemsize

    # Generation-aware VMEM budget (v7x: 64 MiB/TC, v5e/v6e: 128 MiB).
    try:
        vmem_cap = int(pltpu.get_tpu_info().vmem_capacity_bytes)
    except Exception:
        vmem_cap = 64 * 1024 * 1024
    vmem_limit = min(int(vmem_cap * 0.75), 100 * 1024 * 1024)
    budget = int(vmem_limit * 0.8)

    # Strip height: largest divisor of H whose per-step working set fits the budget.
    SH = 1
    for d in _divisors_desc(H):
        if d <= max_strip_rows and _est_vmem_bytes(
                d, W, WP_in, WMP, CIN_P, CMID, COUT_P, in_bytes) <= budget:
            SH = d
            break
    nS = H // SH

    # Fold eval-mode BN into conv weights / shifts; pad + reshape to kernel layouts.
    w1f, t1 = _fold_bn_into_conv(w1, b1, g1, be1, m1, v1, eps)
    w2f, t2 = _fold_bn_into_conv(w2, b2, g2, be2, m2, v2, eps)
    w1p = _pad_axis(_pad_axis(w1f, 2, CIN_P), 3, CMID)
    w1p = w1p.reshape(9 * CIN_P, CMID).astype(compute_dtype)
    w2p = _pad_axis(_pad_axis(w2f, 2, CMID), 3, COUT_P)
    w2p = w2p.reshape(9, CMID, COUT_P).astype(compute_dtype)
    t1p = _pad_axis(t1, 0, CMID).reshape(1, CMID).astype(jnp.float32)
    t2p = _pad_axis(t2, 0, COUT_P).reshape(1, COUT_P).astype(jnp.float32)

    # NCHW -> NHWC (compute dtype), zero-pad H by 2/side, W to WP_in, channels to CIN_P,
    # and cut overlapping H strips (4 halo rows each) so plain Blocked BlockSpecs work.
    x = jnp.transpose(x_nchw, (0, 2, 3, 1)).astype(compute_dtype)
    x = jnp.pad(x, ((0, 0), (2, 2), (2, WP_in - W - 2), (0, CIN_P - Cin)))
    x_strips = jnp.stack([x[:, s * SH:s * SH + SH + 4] for s in range(nS)], axis=1)
    # (N, nS, SH+4, WP_in, CIN_P)

    out_nhwc = pl.pallas_call(
        double_conv_kernel,
        out_shape=jax.ShapeDtypeStruct((N, H, W, COUT_P), jnp.float32),
        grid_spec=pltpu.PrefetchScalarGridSpec(
            num_scalar_prefetch=0,
            grid=(N, nS),
            in_specs=[
                pl.BlockSpec((1, 1, SH + 4, WP_in, CIN_P),
                             lambda n, s: (n, s, 0, 0, 0)),
                pl.BlockSpec((9 * CIN_P, CMID), lambda n, s: (0, 0)),
                pl.BlockSpec((1, CMID), lambda n, s: (0, 0)),
                pl.BlockSpec((9, CMID, COUT_P), lambda n, s: (0, 0, 0)),
                pl.BlockSpec((1, COUT_P), lambda n, s: (0, 0)),
            ],
            out_specs=pl.BlockSpec((1, SH, W, COUT_P), lambda n, s: (n, s, 0, 0)),
        ),
        compiler_params=pltpu.CompilerParams(
            dimension_semantics=("parallel", "parallel"),
            vmem_limit_bytes=vmem_limit),
    )(x_strips, w1p, t1p, w2p, t2p)

    # Drop lane padding, back to NCHW (f32) to match the PyTorch module.
    return jnp.transpose(out_nhwc[..., :Cout], (0, 3, 1, 2))


def reference_forward(x_nchw, w1, b1, g1, be1, m1, v1,
                      w2, b2, g2, be2, m2, v2, eps=1e-5):
    x = jnp.transpose(x_nchw, (0, 2, 3, 1)).astype(jnp.float32)
    dn = ('NHWC', 'HWIO', 'NHWC')
    y = lax.conv_general_dilated(x, w1, (1, 1), 'SAME', dimension_numbers=dn) + b1
    y = (y - m1) / jnp.sqrt(v1 + eps) * g1 + be1
    y = jnp.maximum(y, 0.0)
    y = lax.conv_general_dilated(y, w2, (1, 1), 'SAME', dimension_numbers=dn) + b2
    y = (y - m2) / jnp.sqrt(v2 + eps) * g2 + be2
    y = jnp.maximum(y, 0.0)
    return jnp.transpose(y, (0, 3, 1, 2))


if __name__ == "__main__":
    N, Cin, Cout, H, W = 2, 4, 8, 16, 16

    key = jax.random.PRNGKey(0)
    ks = jax.random.split(key, 13)

    # layer 1 params (Conv2d(in_ch, out_ch, 3, padding=1) + BatchNorm2d(out_ch))
    w1 = 0.1 * jax.random.normal(ks[0], (3, 3, Cin, Cout), jnp.float32)   # HWIO
    b1 = 0.1 * jax.random.normal(ks[1], (Cout,), jnp.float32)
    g1 = 1.0 + 0.1 * jax.random.normal(ks[2], (Cout,), jnp.float32)
    be1 = 0.1 * jax.random.normal(ks[3], (Cout,), jnp.float32)
    m1 = 0.1 * jax.random.normal(ks[4], (Cout,), jnp.float32)
    v1 = jnp.abs(1.0 + 0.1 * jax.random.normal(ks[5], (Cout,), jnp.float32))

    # layer 2 params (Conv2d(out_ch, out_ch, 3, padding=1) + BatchNorm2d(out_ch))
    w2 = 0.1 * jax.random.normal(ks[6], (3, 3, Cout, Cout), jnp.float32)
    b2 = 0.1 * jax.random.normal(ks[7], (Cout,), jnp.float32)
    g2 = 1.0 + 0.1 * jax.random.normal(ks[8], (Cout,), jnp.float32)
    be2 = 0.1 * jax.random.normal(ks[9], (Cout,), jnp.float32)
    m2 = 0.1 * jax.random.normal(ks[10], (Cout,), jnp.float32)
    v2 = jnp.abs(1.0 + 0.1 * jax.random.normal(ks[11], (Cout,), jnp.float32))

    x = jax.random.normal(ks[12], (N, Cin, H, W), jnp.float32)  # NCHW (PyTorch layout)

    out = inconv_forward(x, w1, b1, g1, be1, m1, v1, w2, b2, g2, be2, m2, v2)
    out = jax.block_until_ready(out)

    ref = reference_forward(x, w1, b1, g1, be1, m1, v1, w2, b2, g2, be2, m2, v2)
    assert out.shape == (N, Cout, H, W), out.shape
    # bf16 matmul operands (f32 accumulation) vs f32 reference -> loosened tolerance.
    err = float(jnp.max(jnp.abs(out - ref)))
    assert err < 6e-2, err

    print("KERNEL_OK")
</pallas_src>

<mosaic_0001>
module attributes {stable_mosaic.version = 11 : i64} {
  func.func @double_conv_kernel(%arg0: i32, %arg1: i32, %arg2: memref<1x1x20x26x8xbf16, #tpu.memory_space<vmem>>, %arg3: memref<72x8xbf16, #tpu.memory_space<vmem>>, %arg4: memref<1x8xf32, #tpu.memory_space<vmem>>, %arg5: memref<9x8x128xbf16, #tpu.memory_space<vmem>>, %arg6: memref<1x128xf32, #tpu.memory_space<vmem>>, %arg7: memref<1x16x16x128xf32, #tpu.memory_space<vmem>>) attributes {dimension_semantics = [#tpu.dimension_semantics<parallel>, #tpu.dimension_semantics<parallel>], iteration_bounds = array<i64: 2, 1>, scalar_prefetch = 0 : i64, scratch_operands = 0 : i64, tpu.core_type = #tpu.core_type<tc>, window_params = [{transform_indices = @transform_0, window_bounds = array<i64: 1, 1, 20, 26, 8>}, {pipeline_mode = #tpu.pipeline_mode<synchronous>, transform_indices = @transform_1, window_bounds = array<i64: 72, 8>}, {pipeline_mode = #tpu.pipeline_mode<synchronous>, transform_indices = @transform_2, window_bounds = array<i64: 1, 8>}, {pipeline_mode = #tpu.pipeline_mode<synchronous>, transform_indices = @transform_3, window_bounds = array<i64: 9, 8, 128>}, {pipeline_mode = #tpu.pipeline_mode<synchronous>, transform_indices = @transform_4, window_bounds = array<i64: 1, 128>}, {transform_indices = @transform_5, window_bounds = array<i64: 1, 16, 16, 128>}]} {
    %c0 = arith.constant 0 : index
    %c0_0 = arith.constant 0 : index
    %c0_1 = arith.constant 0 : index
    %c0_2 = arith.constant 0 : index
    %c0_3 = arith.constant 0 : index
    %0 = vector.load %arg2[%c0, %c0_0, %c0_1, %c0_2, %c0_3] : memref<1x1x20x26x8xbf16, #tpu.memory_space<vmem>>, vector<1x1x20x26x8xbf16>
    %1 = vector.shape_cast %0 : vector<1x1x20x26x8xbf16> to vector<20x26x8xbf16>
    %2 = vector.extract_strided_slice %1 {offsets = [0, 0, 0], sizes = [18, 24, 8], strides = [1, 1, 1]} : vector<20x26x8xbf16> to vector<18x24x8xbf16>
    %3 = vector.shape_cast %2 : vector<18x24x8xbf16> to vector<432x8xbf16>
    %4 = vector.extract_strided_slice %1 {offsets = [0, 1, 0], sizes = [18, 24, 8], strides = [1, 1, 1]} : vector<20x26x8xbf16> to vector<18x24x8xbf16>
    %5 = vector.shape_cast %4 : vector<18x24x8xbf16> to vector<432x8xbf16>
    %6 = vector.extract_strided_slice %1 {offsets = [0, 2, 0], sizes = [18, 24, 8], strides = [1, 1, 1]} : vector<20x26x8xbf16> to vector<18x24x8xbf16>
    %7 = vector.shape_cast %6 : vector<18x24x8xbf16> to vector<432x8xbf16>
    %8 = vector.extract_strided_slice %1 {offsets = [1, 0, 0], sizes = [18, 24, 8], strides = [1, 1, 1]} : vector<20x26x8xbf16> to vector<18x24x8xbf16>
    %9 = vector.shape_cast %8 : vector<18x24x8xbf16> to vector<432x8xbf16>
    %10 = vector.extract_strided_slice %1 {offsets = [1, 1, 0], sizes = [18, 24, 8], strides = [1, 1, 1]} : vector<20x26x8xbf16> to vector<18x24x8xbf16>
    %11 = vector.shape_cast %10 : vector<18x24x8xbf16> to vector<432x8xbf16>
    %12 = vector.extract_strided_slice %1 {offsets = [1, 2, 0], sizes = [18, 24, 8], strides = [1, 1, 1]} : vector<20x26x8xbf16> to vector<18x24x8xbf16>
    %13 = vector.shape_cast %12 : vector<18x24x8xbf16> to vector<432x8xbf16>
    %14 = vector.extract_strided_slice %1 {offsets = [2, 0, 0], sizes = [18, 24, 8], strides = [1, 1, 1]} : vector<20x26x8xbf16> to vector<18x24x8xbf16>
    %15 = vector.shape_cast %14 : vector<18x24x8xbf16> to vector<432x8xbf16>
    %16 = vector.extract_strided_slice %1 {offsets = [2, 1, 0], sizes = [18, 24, 8], strides = [1, 1, 1]} : vector<20x26x8xbf16> to vector<18x24x8xbf16>
    %17 = vector.shape_cast %16 : vector<18x24x8xbf16> to vector<432x8xbf16>
    %18 = vector.extract_strided_slice %1 {offsets = [2, 2, 0], sizes = [18, 24, 8], strides = [1, 1, 1]} : vector<20x26x8xbf16> to vector<18x24x8xbf16>
    %19 = vector.shape_cast %18 : vector<18x24x8xbf16> to vector<432x8xbf16>
    %20 = tpu.concatenate %3, %5, %7, %9, %11, %13, %15, %17, %19 in 1 : vector<432x8xbf16>, vector<432x8xbf16>, vector<432x8xbf16>, vector<432x8xbf16>, vector<432x8xbf16>, vector<432x8xbf16>, vector<432x8xbf16>, vector<432x8xbf16>, vector<432x8xbf16> -> vector<432x72xbf16>
    %c0_4 = arith.constant 0 : index
    %c0_5 = arith.constant 0 : index
    %21 = vector.load %arg3[%c0_4, %c0_5] : memref<72x8xbf16, #tpu.memory_space<vmem>>, vector<72x8xbf16>
    %cst = arith.constant dense<0.000000e+00> : vector<432x8xf32>
    %22 = tpu.matmul %20, %21, %cst {dimension_numbers = #tpu.dot_dimension_numbers<[1], [0], [0], [1], [0, 0, 1, 1], [], []>} : vector<432x72xbf16>, vector<72x8xbf16>, vector<432x8xf32> -> vector<432x8xf32>
    %c0_6 = arith.constant 0 : index
    %c0_7 = arith.constant 0 : index
    %23 = vector.load %arg4[%c0_6, %c0_7] : memref<1x8xf32, #tpu.memory_space<vmem>>, vector<1x8xf32>
    %24 = vector.broadcast %23 : vector<1x8xf32> to vector<432x8xf32>
    %25 = arith.addf %22, %24 : vector<432x8xf32>
    %cst_8 = arith.constant 0.000000e+00 : f32
    %26 = vector.broadcast %cst_8 : f32 to vector<432x8xf32>
    %27 = arith.maximumf %25, %26 : vector<432x8xf32>
    %28 = vector.shape_cast %27 : vector<432x8xf32> to vector<18x24x8xf32>
    %c16_i32 = arith.constant 16 : i32
    %29 = arith.muli %arg1, %c16_i32 : i32
    %c1_i32 = arith.constant 1 : i32
    %30 = arith.subi %29, %c1_i32 : i32
    %31 = tpu.iota {dimensions = array<i32: 0>} : vector<18x24x1xi32>
    %32 = vector.broadcast %30 : i32 to vector<18x24x1xi32>
    %33 = arith.addi %32, %31 : vector<18x24x1xi32>
    %34 = tpu.iota {dimensions = array<i32: 1>} : vector<18x24x1xi32>
    %c1_i32_9 = arith.constant 1 : i32
    %35 = vector.broadcast %c1_i32_9 : i32 to vector<18x24x1xi32>
    %36 = arith.subi %34, %35 : vector<18x24x1xi32>
    %c0_i32 = arith.constant 0 : i32
    %37 = vector.broadcast %c0_i32 : i32 to vector<18x24x1xi32>
    %38 = arith.cmpi sge, %33, %37 : vector<18x24x1xi32>
    %c16_i32_10 = arith.constant 16 : i32
    %39 = vector.broadcast %c16_i32_10 : i32 to vector<18x24x1xi32>
    %40 = arith.cmpi slt, %33, %39 : vector<18x24x1xi32>
    %41 = arith.andi %38, %40 : vector<18x24x1xi1>
    %c0_i32_11 = arith.constant 0 : i32
    %42 = vector.broadcast %c0_i32_11 : i32 to vector<18x24x1xi32>
    %43 = arith.cmpi sge, %36, %42 : vector<18x24x1xi32>
    %44 = arith.andi %41, %43 : vector<18x24x1xi1>
    %c16_i32_12 = arith.constant 16 : i32
    %45 = vector.broadcast %c16_i32_12 : i32 to vector<18x24x1xi32>
    %46 = arith.cmpi slt, %36, %45 : vector<18x24x1xi32>
    %47 = arith.andi %44, %46 : vector<18x24x1xi1>
    %cst_13 = arith.constant 0.000000e+00 : f32
    %48 = vector.shape_cast %47 : vector<18x24x1xi1> to vector<18x24x1xi1>
    %49 = vector.broadcast %48 : vector<18x24x1xi1> to vector<18x24x8xi1>
    %50 = vector.broadcast %cst_13 : f32 to vector<18x24x8xf32>
    %51 = arith.select %49, %28, %50 : vector<18x24x8xi1>, vector<18x24x8xf32>
    %52 = arith.truncf %51 : vector<18x24x8xf32> to vector<18x24x8xbf16>
    %53 = vector.extract_strided_slice %52 {offsets = [0, 0, 0], sizes = [16, 16, 8], strides = [1, 1, 1]} : vector<18x24x8xbf16> to vector<16x16x8xbf16>
    %54 = vector.shape_cast %53 : vector<16x16x8xbf16> to vector<256x8xbf16>
    %c0_14 = arith.constant 0 : index
    %c0_15 = arith.constant 0 : index
    %c0_16 = arith.constant 0 : index
    %55 = vector.load %arg5[%c0_14, %c0_15, %c0_16] : memref<9x8x128xbf16, #tpu.memory_space<vmem>>, vector<1x8x128xbf16>
    %56 = vector.shape_cast %55 : vector<1x8x128xbf16> to vector<8x128xbf16>
    %cst_17 = arith.constant dense<0.000000e+00> : vector<256x128xf32>
    %57 = tpu.matmul %54, %56, %cst_17 {dimension_numbers = #tpu.dot_dimension_numbers<[1], [0], [0], [1], [0, 0, 1, 1], [], []>} : vector<256x8xbf16>, vector<8x128xbf16>, vector<256x128xf32> -> vector<256x128xf32>
    %58 = vector.extract_strided_slice %52 {offsets = [0, 1, 0], sizes = [16, 16, 8], strides = [1, 1, 1]} : vector<18x24x8xbf16> to vector<16x16x8xbf16>
    %59 = vector.shape_cast %58 : vector<16x16x8xbf16> to vector<256x8xbf16>
    %c1 = arith.constant 1 : index
    %c0_18 = arith.constant 0 : index
    %c0_19 = arith.constant 0 : index
    %60 = vector.load %arg5[%c1, %c0_18, %c0_19] : memref<9x8x128xbf16, #tpu.memory_space<vmem>>, vector<1x8x128xbf16>
    %61 = vector.shape_cast %60 : vector<1x8x128xbf16> to vector<8x128xbf16>
    %cst_20 = arith.constant dense<0.000000e+00> : vector<256x128xf32>
    %62 = tpu.matmul %59, %61, %cst_20 {dimension_numbers = #tpu.dot_dimension_numbers<[1], [0], [0], [1], [0, 0, 1, 1], [], []>} : vector<256x8xbf16>, vector<8x128xbf16>, vector<256x128xf32> -> vector<256x128xf32>
    %63 = arith.addf %57, %62 : vector<256x128xf32>
    %64 = vector.extract_strided_slice %52 {offsets = [0, 2, 0], sizes = [16, 16, 8], strides = [1, 1, 1]} : vector<18x24x8xbf16> to vector<16x16x8xbf16>
    %65 = vector.shape_cast %64 : vector<16x16x8xbf16> to vector<256x8xbf16>
    %c2 = arith.constant 2 : index
    %c0_21 = arith.constant 0 : index
    %c0_22 = arith.constant 0 : index
    %66 = vector.load %arg5[%c2, %c0_21, %c0_22] : memref<9x8x128xbf16, #tpu.memory_space<vmem>>, vector<1x8x128xbf16>
    %67 = vector.shape_cast %66 : vector<1x8x128xbf16> to vector<8x128xbf16>
    %cst_23 = arith.constant dense<0.000000e+00> : vector<256x128xf32>
    %68 = tpu.matmul %65, %67, %cst_23 {dimension_numbers = #tpu.dot_dimension_numbers<[1], [0], [0], [1], [0, 0, 1, 1], [], []>} : vector<256x8xbf16>, vector<8x128xbf16>, vector<256x128xf32> -> vector<256x128xf32>
    %69 = arith.addf %63, %68 : vector<256x128xf32>
    %70 = vector.extract_strided_slice %52 {offsets = [1, 0, 0], sizes = [16, 16, 8], strides = [1, 1, 1]} : vector<18x24x8xbf16> to vector<16x16x8xbf16>
    %71 = vector.shape_cast %70 : vector<16x16x8xbf16> to vector<256x8xbf16>
    %c3 = arith.constant 3 : index
    %c0_24 = arith.constant 0 : index
    %c0_25 = arith.constant 0 : index
    %72 = vector.load %arg5[%c3, %c0_24, %c0_25] : memref<9x8x128xbf16, #tpu.memory_space<vmem>>, vector<1x8x128xbf16>
    %73 = vector.shape_cast %72 : vector<1x8x128xbf16> to vector<8x128xbf16>
    %cst_26 = arith.constant dense<0.000000e+00> : vector<256x128xf32>
    %74 = tpu.matmul %71, %73, %cst_26 {dimension_numbers = #tpu.dot_dimension_numbers<[1], [0], [0], [1], [0, 0, 1, 1], [], []>} : vector<256x8xbf16>, vector<8x128xbf16>, vector<256x128xf32> -> vector<256x128xf32>
    %75 = arith.addf %69, %74 : vector<256x128xf32>
    %76 = vector.extract_strided_slice %52 {offsets = [1, 1, 0], sizes = [16, 16, 8], strides = [1, 1, 1]} : vector<18x24x8xbf16> to vector<16x16x8xbf16>
    %77 = vector.shape_cast %76 : vector<16x16x8xbf16> to vector<256x8xbf16>
    %c4 = arith.constant 4 : index
    %c0_27 = arith.constant 0 : index
    %c0_28 = arith.constant 0 : index
    %78 = vector.load %arg5[%c4, %c0_27, %c0_28] : memref<9x8x128xbf16, #tpu.memory_space<vmem>>, vector<1x8x128xbf16>
    %79 = vector.shape_cast %78 : vector<1x8x128xbf16> to vector<8x128xbf16>
    %cst_29 = arith.constant dense<0.000000e+00> : vector<256x128xf32>
    %80 = tpu.matmul %77, %79, %cst_29 {dimension_numbers = #tpu.dot_dimension_numbers<[1], [0], [0], [1], [0, 0, 1, 1], [], []>} : vector<256x8xbf16>, vector<8x128xbf16>, vector<256x128xf32> -> vector<256x128xf32>
    %81 = arith.addf %75, %80 : vector<256x128xf32>
    %82 = vector.extract_strided_slice %52 {offsets = [1, 2, 0], sizes = [16, 16, 8], strides = [1, 1, 1]} : vector<18x24x8xbf16> to vector<16x16x8xbf16>
    %83 = vector.shape_cast %82 : vector<16x16x8xbf16> to vector<256x8xbf16>
    %c5 = arith.constant 5 : index
    %c0_30 = arith.constant 0 : index
    %c0_31 = arith.constant 0 : index
    %84 = vector.load %arg5[%c5, %c0_30, %c0_31] : memref<9x8x128xbf16, #tpu.memory_space<vmem>>, vector<1x8x128xbf16>
    %85 = vector.shape_cast %84 : vector<1x8x128xbf16> to vector<8x128xbf16>
    %cst_32 = arith.constant dense<0.000000e+00> : vector<256x128xf32>
    %86 = tpu.matmul %83, %85, %cst_32 {dimension_numbers = #tpu.dot_dimension_numbers<[1], [0], [0], [1], [0, 0, 1, 1], [], []>} : vector<256x8xbf16>, vector<8x128xbf16>, vector<256x128xf32> -> vector<256x128xf32>
    %87 = arith.addf %81, %86 : vector<256x128xf32>
    %88 = vector.extract_strided_slice %52 {offsets = [2, 0, 0], sizes = [16, 16, 8], strides = [1, 1, 1]} : vector<18x24x8xbf16> to vector<16x16x8xbf16>
    %89 = vector.shape_cast %88 : vector<16x16x8xbf16> to vector<256x8xbf16>
    %c6 = arith.constant 6 : index
    %c0_33 = arith.constant 0 : index
    %c0_34 = arith.constant 0 : index
    %90 = vector.load %arg5[%c6, %c0_33, %c0_34] : memref<9x8x128xbf16, #tpu.memory_space<vmem>>, vector<1x8x128xbf16>
    %91 = vector.shape_cast %90 : vector<1x8x128xbf16> to vector<8x128xbf16>
    %cst_35 = arith.constant dense<0.000000e+00> : vector<256x128xf32>
    %92 = tpu.matmul %89, %91, %cst_35 {dimension_numbers = #tpu.dot_dimension_numbers<[1], [0], [0], [1], [0, 0, 1, 1], [], []>} : vector<256x8xbf16>, vector<8x128xbf16>, vector<256x128xf32> -> vector<256x128xf32>
    %93 = arith.addf %87, %92 : vector<256x128xf32>
    %94 = vector.extract_strided_slice %52 {offsets = [2, 1, 0], sizes = [16, 16, 8], strides = [1, 1, 1]} : vector<18x24x8xbf16> to vector<16x16x8xbf16>
    %95 = vector.shape_cast %94 : vector<16x16x8xbf16> to vector<256x8xbf16>
    %c7 = arith.constant 7 : index
    %c0_36 = arith.constant 0 : index
    %c0_37 = arith.constant 0 : index
    %96 = vector.load %arg5[%c7, %c0_36, %c0_37] : memref<9x8x128xbf16, #tpu.memory_space<vmem>>, vector<1x8x128xbf16>
    %97 = vector.shape_cast %96 : vector<1x8x128xbf16> to vector<8x128xbf16>
    %cst_38 = arith.constant dense<0.000000e+00> : vector<256x128xf32>
    %98 = tpu.matmul %95, %97, %cst_38 {dimension_numbers = #tpu.dot_dimension_numbers<[1], [0], [0], [1], [0, 0, 1, 1], [], []>} : vector<256x8xbf16>, vector<8x128xbf16>, vector<256x128xf32> -> vector<256x128xf32>
    %99 = arith.addf %93, %98 : vector<256x128xf32>
    %100 = vector.extract_strided_slice %52 {offsets = [2, 2, 0], sizes = [16, 16, 8], strides = [1, 1, 1]} : vector<18x24x8xbf16> to vector<16x16x8xbf16>
    %101 = vector.shape_cast %100 : vector<16x16x8xbf16> to vector<256x8xbf16>
    %c8 = arith.constant 8 : index
    %c0_39 = arith.constant 0 : index
    %c0_40 = arith.constant 0 : index
    %102 = vector.load %arg5[%c8, %c0_39, %c0_40] : memref<9x8x128xbf16, #tpu.memory_space<vmem>>, vector<1x8x128xbf16>
    %103 = vector.shape_cast %102 : vector<1x8x128xbf16> to vector<8x128xbf16>
    %cst_41 = arith.constant dense<0.000000e+00> : vector<256x128xf32>
    %104 = tpu.matmul %101, %103, %cst_41 {dimension_numbers = #tpu.dot_dimension_numbers<[1], [0], [0], [1], [0, 0, 1, 1], [], []>} : vector<256x8xbf16>, vector<8x128xbf16>, vector<256x128xf32> -> vector<256x128xf32>
    %105 = arith.addf %99, %104 : vector<256x128xf32>
    %c0_42 = arith.constant 0 : index
    %c0_43 = arith.constant 0 : index
    %106 = vector.load %arg6[%c0_42, %c0_43] : memref<1x128xf32, #tpu.memory_space<vmem>>, vector<1x128xf32>
    %107 = vector.broadcast %106 : vector<1x128xf32> to vector<256x128xf32>
    %108 = arith.addf %105, %107 : vector<256x128xf32>
    %cst_44 = arith.constant 0.000000e+00 : f32
    %109 = vector.broadcast %cst_44 : f32 to vector<256x128xf32>
    %110 = arith.maximumf %108, %109 : vector<256x128xf32>
    %111 = vector.shape_cast %110 : vector<256x128xf32> to vector<16x16x128xf32>
    %c0_45 = arith.constant 0 : index
    %c0_46 = arith.constant 0 : index
    %c0_47 = arith.constant 0 : index
    %c0_48 = arith.constant 0 : index
    %112 = vector.load %arg7[%c0_45, %c0_46, %c0_47, %c0_48] : memref<1x16x16x128xf32, #tpu.memory_space<vmem>>, vector<1x16x16x128xf32>
    %113 = vector.shape_cast %112 : vector<1x16x16x128xf32> to vector<16x16x128xf32>
    %114 = vector.shape_cast %111 : vector<16x16x128xf32> to vector<1x16x16x128xf32>
    tpu.vector_store %arg7[%c0_45, %c0_46, %c0_47, %c0_48], %114 {strides = array<i32>} : memref<1x16x16x128xf32, #tpu.memory_space<vmem>>, vector<1x16x16x128xf32>,
    return
  }
  func.func @transform_0(%arg0: i32, %arg1: i32) -> (i32, i32, i32, i32, i32) {
    %c0_i32 = arith.constant 0 : i32
    %c0_i32_0 = arith.constant 0 : i32
    %c0_i32_1 = arith.constant 0 : i32
    %c0_i32_2 = arith.constant 0 : i32
    return %arg0, %arg1, %c0_i32, %c0_i32_0, %c0_i32_1 : i32, i32, i32, i32, i32
  }
  func.func @transform_1(%arg0: i32, %arg1: i32) -> (i32, i32) {
    %c0_i32 = arith.constant 0 : i32
    %c0_i32_0 = arith.constant 0 : i32
    %c0_i32_1 = arith.constant 0 : i32
    return %c0_i32, %c0_i32_0 : i32, i32
  }
  func.func @transform_2(%arg0: i32, %arg1: i32) -> (i32, i32) {
    %c0_i32 = arith.constant 0 : i32
    %c0_i32_0 = arith.constant 0 : i32
    %c0_i32_1 = arith.constant 0 : i32
    return %c0_i32, %c0_i32_0 : i32, i32
  }
  func.func @transform_3(%arg0: i32, %arg1: i32) -> (i32, i32, i32) {
    %c0_i32 = arith.constant 0 : i32
    %c0_i32_0 = arith.constant 0 : i32
    %c0_i32_1 = arith.constant 0 : i32
    %c0_i32_2 = arith.constant 0 : i32
    return %c0_i32, %c0_i32_0, %c0_i32_1 : i32, i32, i32
  }
  func.func @transform_4(%arg0: i32, %arg1: i32) -> (i32, i32) {
    %c0_i32 = arith.constant 0 : i32
    %c0_i32_0 = arith.constant 0 : i32
    %c0_i32_1 = arith.constant 0 : i32
    return %c0_i32, %c0_i32_0 : i32, i32
  }
  func.func @transform_5(%arg0: i32, %arg1: i32) -> (i32, i32, i32, i32) {
    %c0_i32 = arith.constant 0 : i32
    %c0_i32_0 = arith.constant 0 : i32
    %c0_i32_1 = arith.constant 0 : i32
    return %arg0, %arg1, %c0_i32, %c0_i32_0 : i32, i32, i32, i32
  }
}

</mosaic_0001>

<bundles_post_ra>
// kernel: tpu_custom_call.1
= control target key start
LH: loop header
LB: loop body
LE: loop exit
PB: predicated region body
PF: predicated region fallthrough
CT: control target
= control target key end

     0   :  { %10 = vsyncpa [#allocation3], 0  ;;  %s10513_s0 = inlined_call_operand.vmem [shape: bf16[2,1,20,26,8], index: 0, kind: input, shape index: {}]   ;;  %s10514_s1 = inlined_call_operand.vmem [shape: bf16[72,8], index: 1, kind: input, shape index: {}]   ;;  %s10515_s2 = inlined_call_operand.vmem [shape: f32[1,8], index: 2, kind: input, shape index: {}]   ;;  %s10516_s3 = inlined_call_operand.vmem [shape: bf16[9,8,128], index: 3, kind: input, shape index: {}]   ;;  %s10517_s4 = inlined_call_operand.vmem [shape: f32[1,128], index: 4, kind: input, shape index: {}]   ;;  %s10518_s5 = inlined_call_operand.hbm [shape: f32[2,16,16,128], index: 5, kind: output, shape index: {}]  }
   0x1   :  { %12 = vsyncpa [#allocation3 + $0x1], 0  ;;  %s6985_s18 = smov 0   ;;  %s6987_s19 = smov 0  }
   0x2   :  { %s6989_s20 = smov 0   ;;  %s6991_s21 = smov 0  }
   0x3   :  { %s6993_s22 = smov 0   ;;  %s6995_s23 = smov 0  }
   0x4 LB: > { %s5718_s24 = sadd.s32 4294967295, %s6939_s23   ;;  %s5719_s25 = sadd.s32 4294967294, %s6939_s23   ;;  %s6939_s23 = sphi %s6995_s23, %s18_s23   ;;  %s6935_s22 = sphi %s6993_s22, %s10753_s22   ;;  %s6931_s21 = sphi %s6991_s21, %s10752_s21   ;;  %s6927_s20 = sphi %s6989_s20, %s10751_s20   ;;  %s6923_s19 = sphi %s6987_s19, %s10750_s19   ;;  %s6919_s18 = sphi %s6985_s18, %s10749_s18  }
   0x5   : > { %s30_s26 = sadd.s32 1, %s6935_s22  ;;  %s151_s27 = sadd.s32 1, %s6927_s20 }
   0x6   : > { %p32_p0 = scmp.ge.s32.totalorder %s30_s26, 2  ;;  %p161_p1 = scmp.ne.s32.totalorder %s6927_s20, %s6923_s19 }
   0x7   : > { %p162_p2 = scmp.eq.s32.totalorder %s5718_s24, 1  ;;  %p167_p3 = scmp.ne.s32.totalorder %s6923_s19, %s6919_s18 }
   0x8   : > { %s10755_s26 = smov (%p32_p0, %s30_s26), 0  ;;  %p168_p5 = scmp.eq.s32.totalorder %s5719_s25, 1 }
   0x9   : > { %p7025_p4 = por %p162_p2, %p161_p1  ;;  %s146_s29 = ssub.s32 %s6935_s22, %s10755_s26 }
   0xa   : > { %p5722_p6 = scmp.ge.s32.totalorder %s6939_s23, 1  ;;  %p149_p7 = scmp.eq.s32.totalorder %s146_s29, 0 }
   0xb   : > { %p7032_p8 = por %p168_p5, %p167_p3  ;;  %p210_p9 = scmp.lt.s32.totalorder %s6939_s23, 3 }
   0xc   : > { %s7038_s6 = scalar_select %p149_p7, %s6927_s20, %s151_s27  }
   0xd   : > { %p211_p10 = pnand %p5722_p6, %p210_p9 }
   0xf   : > { %214 = sbr.rel (%p211_p10) target bundleno = 1305 (0x519), region = 40 }
  0x14   : > { %p242_p11 = scmp.lt.s32.totalorder %s6931_s21, 1  ;;  %vm1020_vm0 = vcmask 1042432   ;;  %vm1021_vm1 = vcmask 1046532   ;;  %v6813_v0 = vld [vmem:[%s10514_s1 + $0x20] ss:$0 sps:$4 sm:$0xff]   ;;  %vm2647_vm2 = vcmask 1043456  }
  0x15   : > { %v6941_v1 = vmov 0.0   ;;  %v2649_v2 = vsel %vm2647_vm2, %v6813_v0, 0  ;;  %vm7047_vm3 = vmor %vm1020_vm0, %vm1021_vm1  ;;  %v6814_v4 = vld [vmem:[%s10514_s1 + $0x18] sm:$0xff]   ;;  %vm333_vm4 = vsmask.f32 3328  ;;  %s6942_s16 = smov 24  }
  0x16   : > { %s243_s7 = scalar_select %p242_p11, %s6931_s21, 1  ;;  %6294 = vmatprep.subr.bf16.mxu0 %v6941_v1  ;;  %vm334_vm5 = vsmask.f32 7440  ;;  %v6816_v27 = vld [vmem:[%s10514_s1 + $0x10] sm:$0xff]   ;;  %v6819_v56 = vld [vmem:[%s10514_s1 + $0x8] sm:$0xff]   ;;  %vm6950_vm7 = vmmov 0  }
  0x17   : > { %6295 = vmatpush3.bf16.msra.mxu0 %v2649_v2  ;;  %s6943_s25 = smov 48   ;;  %s6944_s27 = smov 16   ;;  %vm7160_vm6 = vmor %vm333_vm4, %vm334_vm5  ;;  %6304 = vmatprep.mubr.msk.bf16.mxu0 %vm6950_vm7, %v6941_v1  ;;  %vm2082_vm8 = vcmask 64512   ;;  %vm2164_vm9 = vcmask 130048   ;;  %vm2219_vm10 = vcmask 195584   ;;  %vm2274_vm11 = vcmask 261120  }
  0x18   : > { %s6730_s10 = smul.u32 320, %s243_s7  ;;  %6296 = vmatprep.subr.bf16.mxu0 %v6941_v1  ;;  %s6945_s29 = smov 64   ;;  %vm2329_vm12 = vcmask 326656   ;;  %vm2384_vm13 = vcmask 392192   ;;  %vm2439_vm14 = vcmask 457728   ;;  %vm2494_vm15 = vcmask 523264  }
  0x19   : > { %s6946_s9 = smov 40   ;;  %s6947_s12 = smov 8   ;;  %vm2592_vm0 = vcmask 588800   ;;  %vm3348_vm5 = vsmask.f32 7424 }
  0x1a   : > { %s7054_s13 = scalar_lea.vmem %s10513_s0, %s6730_s10  ;;  %s6948_s14 = smov 32  }
  0x1b   : > { %v7061_v5 = vld [vmem:[%s7054_s13 + $0x10] sm:$0xf]  ;;  %v7064_v6 = vld [vmem:[%s7054_s13 + $0x14] sm:$0xf]  ;;  %v7067_v7 = vld [vmem:[%s7054_s13 + $0x20] sm:$0xf]  ;;  %6297 = vmatpush3.bf16.msra.mxu0 %v6814_v4 }
  0x1c   : > { %v5826_v8 = vcombine.low %v7061_v5, %v7064_v6  ;;  %v7072_v9 = vld [vmem:[%s7054_s13 + $0x24] sm:$0xf]  ;;  %v7075_v10 = vld [vmem:[%s7054_s13] sm:$0xf]  ;;  %v7085_v13 = vld [vmem:[%s7054_s13 + $0x8] sm:$0xf]  ;;  %6298 = vmatprep.subr.bf16.mxu0 %v6941_v1 }
  0x1d   : > { %v7078_v11 = vld [vmem:[%s7054_s13 + $0x4] sm:$0xf]  ;;  %v7082_v12 = vcombine.low %v7067_v7, %v7072_v9  ;;  %v5725_v14 = vrot.slane %v7075_v10, 9  ;;  %v7090_v16 = vld [vmem:[%s7054_s13 + $0x28] sm:$0xf]  ;;  %v1028_v17 = vrot.slane %v7085_v13, 5 }
  0x1e   : > { %v1025_v15 = vrot.slane %v7078_v11, 5  ;;  %1680 = vrot.lane.b32.xlu1 %v5826_v8, %s6942_s16  ;;  %v5727_v18 = vrot.slane %v7067_v7, 9  ;;  %v1045_v19 = vrot.slane %v7072_v9, 5  ;;  %v1048_v20 = vrot.slane %v7090_v16, 5  ;;  %v7098_v21 = vld [vmem:[%s7054_s13 + $0x18] sm:$0xf] }
  0x1f   : > { %v5726_v24 = vrot.slane %v7061_v5, 9  ;;  %v1035_v25 = vrot.slane %v7064_v6, 5  ;;  %v7106_v26 = vld [vmem:[%s7054_s13 + $0xc] sm:$0x1]  ;;  %v1030_v28 = vrot.slane %v1028_v17, 4  ;;  %v1038_v31 = vrot.slane %v7098_v21, 5  ;;  %6299 = vmatpush3.bf16.msra.mxu0 %v6816_v27 }
  0x20   : > { %v1026_v22 = vsel %vm7047_vm3, %v5725_v14, %v1025_v15  ;;  %v1027_v23 = vrot.slane %v1025_v15, 4  ;;  %v7113_v29 = vsel %vm7047_vm3, %v5727_v18, %v1045_v19  ;;  %v1047_v30 = vrot.slane %v1045_v19, 4  ;;  %6300 = vmatprep.subr.bf16.mxu0 %v6941_v1  ;;  %s6949_s15 = smov 56   ;;  %s239_s10 = sand.u32 1, %s6923_s19  }
  0x21   : > { %v1036_v33 = vsel %vm7047_vm3, %v5726_v24, %v1035_v25  ;;  %v1037_v34 = vrot.slane %v1035_v25, 4  ;;  %v1031_v35 = vrot.slane %v7106_v26, 5  ;;  %v337_v38 = vshrl.u32 %v7075_v10, 16  ;;  %s6108_s24 = sshll.u32 %s6931_s21, 12  ;;  %s10467_s21 = scalar_lea.sflag [#allocation3], %s239_s10 }
  0x22   : > { %v1029_v32 = vsel %vm7047_vm3, %v1027_v23, %v1028_v17  ;;  %1908 = vrot.lane.b32.xlu1 %v7082_v12, %s6943_s25  ;;  %v7127_v37 = vsel %vm7047_vm3, %v1047_v30, %v1048_v20  ;;  %v340_v39 = vshll.u32 %v7075_v10, 16  ;;  %v346_v43 = vshll.u32 %v7078_v11, 16  ;;  %v6820_v17 = vld [vmem:[%s10514_s1] sm:$0xff]  }
  0x23   : > { %v5799_v36 = vcombine.low %v1026_v22, %v1029_v32  ;;  %v7134_v40 = vcombine.low %v7113_v29, %v7127_v37  ;;  %v7140_v41 = vsel %vm7047_vm3, %v1037_v34, %v1038_v31  ;;  %v1032_v42 = vsel %vm7047_vm3, %v1030_v28, %v1031_v35  ;;  %6301 = vmatpush3.bf16.msra.mxu0 %v6819_v56 }
  0x24   : > { %v5880_v44 = vcombine.low %v1036_v33, %v7140_v41  ;;  %v5800_v45 = vcombine.low %v1032_v42, %v1036_v33  ;;  %v339_v46 = vrot.slane %v337_v38, 4  ;;  %v342_v47 = vrot.slane %v340_v39, 5  ;;  %6302 = vmatprep.subr.bf16.mxu0 %v6941_v1  ;;  %v260_v42 = vld [vmem:[%s7054_s13 + $0x1c] sm:$0x1] }
  0x25   : > { %1596 = vrot.lane.b32.xlu0 %v5799_v36, %s6944_s27  ;;  %v348_v48 = vrot.slane %v346_v43, 5  ;;  %v350_v49 = vshrl.u32 %v7078_v11, 16  ;;  %v356_v50 = vshll.u32 %v7085_v13, 16  ;;  %v371_v51 = vshrl.u32 %v7061_v5, 16 }
  0x26   : > { %2028 = vrot.lane.b32.xlu1 %v7134_v40, %s6945_s29  ;;  %v343_v52 = vor.u32 %v342_v47, %v339_v46  ;;  %v374_v53 = vshll.u32 %v7061_v5, 16  ;;  %v380_v54 = vshll.u32 %v7064_v6, 16  ;;  %v384_v55 = vshrl.u32 %v7064_v6, 16 }
  0x27   : > { %v352_v58 = vrot.slane %v350_v49, 4  ;;  %v358_v59 = vrot.slane %v356_v50, 5  ;;  %v373_v60 = vrot.slane %v371_v51, 4  ;;  %v390_v61 = vshll.u32 %v7098_v21, 16  ;;  %6303 = vmatpush3.bf16.msra.mxu0 %v6820_v17 }
  0x28   : > { %v344_v62 = vrot.slane %v343_v52, 4  ;;  %v376_v63 = vrot.slane %v374_v53, 5  ;;  %v382_v0 = vrot.slane %v380_v54, 5  ;;  %v386_v2 = vrot.slane %v384_v55, 4 }
  0x29   : > { %1848 = vrot.lane.b32.xlu0 %v5880_v44, %s6946_s9  ;;  %v353_v4 = vor.u32 %v352_v58, %v348_v48  ;;  %v392_v8 = vrot.slane %v390_v61, 5  ;;  %v405_v14 = vshrl.u32 %v7067_v7, 16  ;;  %v408_v15 = vshll.u32 %v7067_v7, 16  ;;  %v7196_v61 = vld [vmem:[%s7054_s13 + $0x30] sm:$0xf] }
  0x2a   : > { %1598 = vrot.lane.b32.xlu1 %v5800_v45, %s6944_s27  ;;  %v349_v18 = vsel %vm7160_vm6, %v344_v62, %v348_v48  ;;  %v377_v19 = vor.u32 %v376_v63, %v373_v60  ;;  %v387_v22 = vor.u32 %v386_v2, %v382_v0  ;;  %v414_v23 = vshll.u32 %v7072_v9, 16  ;;  %v264_v63 = vld [vmem:[%s7054_s13 + $0x2c] sm:$0x1] }
  0x2b   : > { %v354_v24 = vrot.slane %v353_v4, 4  ;;  %v407_v25 = vrot.slane %v405_v14, 4  ;;  %v410_v27 = vrot.slane %v408_v15, 5  ;;  %v418_v28 = vshrl.u32 %v7072_v9, 16  ;;  %v7210_v15 = vld [vmem:[%s7054_s13 + $0x34] sm:$0xf] }
  0x2c   : > { %v378_v30 = vrot.slane %v377_v19, 4  ;;  %v388_v32 = vrot.slane %v387_v22, 4  ;;  %v416_v33 = vrot.slane %v414_v23, 5  ;;  %v424_v34 = vshll.u32 %v7090_v16, 16 }
  0x2d   : > { %v359_v35 = vsel %vm7160_vm6, %v354_v24, %v358_v59  ;;  %v411_v36 = vor.u32 %v410_v27, %v407_v25  ;;  %v420_v38 = vrot.slane %v418_v28, 4  ;;  %v360_v39 = vshrl.u32 %v7085_v13, 16 }
  0x2e   : > { %v5772_v43 = vcombine.low %v349_v18, %v359_v35  ;;  %v383_v44 = vsel %vm7160_vm6, %v378_v30, %v382_v0  ;;  %v7186_v45 = vsel %vm7160_vm6, %v388_v32, %v392_v8  ;;  %v426_v46 = vrot.slane %v424_v34, 5 }
  0x2f   : > { %v5853_v47 = vcombine.low %v383_v44, %v7186_v45  ;;  %v412_v48 = vrot.slane %v411_v36, 4  ;;  %v421_v49 = vor.u32 %v420_v38, %v416_v33  ;;  %v362_v50 = vrot.slane %v360_v39, 4 }
  0x30   : > { %1461 = vrot.lane.b32.xlu0 %v5772_v43, %s6947_s12  ;;  %v366_v51 = vshll.u32 %v7106_v26, 16  ;;  %v394_v52 = vshrl.u32 %v7098_v21, 16  ;;  %v400_v53 = vshll.u32 %v260_v42, 16  ;;  %v428_v0 = vshrl.u32 %v7090_v16, 16 }
  0x31   : > { %1764 = vrot.lane.b32.xlu1 %v5853_v47, %s6948_s14  ;;  %v417_v54 = vsel %vm7160_vm6, %v412_v48, %v416_v33  ;;  %v422_v55 = vrot.slane %v421_v49, 4  ;;  %v363_v56 = vor.u32 %v362_v50, %v358_v59  ;;  %v1040_v59 = vrot.slane %v1038_v31, 4  ;;  %v7242_v50 = vld [vmem:[%s7054_s13 + $0x38] sm:$0xf] }
  0x32   : > { %v368_v58 = vrot.slane %v366_v51, 5  ;;  %v396_v60 = vrot.slane %v394_v52, 4  ;;  %v402_v14 = vrot.slane %v400_v53, 5  ;;  %v1041_v18 = vrot.slane %v260_v42, 5 }
  0x33   : > { %v7200_v62 = vsel %vm7160_vm6, %v422_v55, %v426_v46  ;;  %v364_v26 = vrot.slane %v363_v56, 4  ;;  %v430_v19 = vrot.slane %v428_v0, 4  ;;  %v439_v22 = vshrl.u32 %v7196_v61, 16 }
  0x34   : > { %v7205_v2 = vcombine.low %v417_v54, %v7200_v62  ;;  %v397_v4 = vor.u32 %v396_v60, %v392_v8  ;;  %v434_v8 = vshll.u32 %v264_v63, 16  ;;  %v442_v25 = vshll.u32 %v7196_v61, 16 }
  0x35   : > { %v369_v17 = vsel %vm7160_vm6, %v364_v26, %v368_v58  ;;  %v431_v27 = vor.u32 %v430_v19, %v426_v46  ;;  %v441_v31 = vrot.slane %v439_v22, 4  ;;  %v448_v28 = vshll.u32 %v7210_v15, 16 }
  0x36   : > { %1968 = vrot.lane.b32.xlu0 %v7205_v2, %s6949_s15  ;;  %v5773_v23 = vcombine.low %v369_v17, %v383_v44  ;;  %v398_v24 = vrot.slane %v397_v4, 4  ;;  %v1050_v30 = vrot.slane %v1048_v20, 4  ;;  %v444_v33 = vrot.slane %v442_v25, 5  ;;  %v268_v4 = vld [vmem:[%s7054_s13 + $0x3c] sm:$0x1] }
  0x37   : > { %v1051_v34 = vrot.slane %v264_v63, 5  ;;  %v5728_v35 = vrot.slane %v7196_v61, 9  ;;  %v5827_v36 = vcombine.low %v7098_v21, %v7067_v7  ;;  %v1055_v39 = vrot.slane %v7210_v15, 5  ;;  %v7278_v25 = vld [vmem:[%s7054_s13 + $0x40] sm:$0xf] }
  0x38   : > { %v403_v32 = vsel %vm7160_vm6, %v398_v24, %v402_v14  ;;  %v7230_v42 = vcombine.low %v7090_v16, %v7196_v61  ;;  %v432_v20 = vrot.slane %v431_v27, 4  ;;  %v436_v43 = vrot.slane %v434_v8, 5 }
  0x39   : > { %v5854_v38 = vcombine.low %v403_v32, %v417_v54  ;;  %v445_v44 = vor.u32 %v444_v33, %v441_v31  ;;  %v1042_v46 = vsel %vm7047_vm3, %v1040_v59, %v1041_v18  ;;  %v450_v47 = vrot.slane %v448_v28, 5  ;;  %v7286_v28 = vld [vmem:[%s7054_s13 + $0x44] sm:$0xf] }
  0x3a   : > { %1463 = vrot.lane.b32.xlu0 %v5773_v23, %s6947_s12  ;;  %v1052_v7 = vsel %vm7047_vm3, %v1050_v30, %v1051_v34  ;;  %v7239_v48 = vsel %vm7047_vm3, %v5728_v35, %v1055_v39  ;;  %v5881_v51 = vcombine.low %v1042_v46, %v7113_v29  ;;  %v437_v52 = vsel %vm7160_vm6, %v432_v20, %v436_v43 }
  0x3b   : > { %1766 = vrot.lane.b32.xlu1 %v5854_v38, %s6948_s14  ;;  %v446_v49 = vrot.slane %v445_v44, 4  ;;  %v7249_v53 = vcombine.low %v1052_v7, %v7239_v48  ;;  %v452_v55 = vshrl.u32 %v7210_v15, 16  ;;  %v458_v56 = vshll.u32 %v7242_v50, 16 }
  0x3c   : > { %v462_v58 = vshrl.u32 %v7242_v50, 16  ;;  %v5801_v60 = vcombine.low %v7140_v41, %v1042_v46  ;;  %v1058_v14 = vrot.slane %v7242_v50, 5  ;;  %v5774_v59 = vcombine.low %v7186_v45, %v403_v32 }
  0x3d   : > { %v7255_v54 = vsel %vm7160_vm6, %v446_v49, %v450_v47  ;;  %v454_v26 = vrot.slane %v452_v55, 4  ;;  %v460_v63 = vrot.slane %v458_v56, 5  ;;  %v5855_v17 = vcombine.low %v7200_v62, %v437_v52 }
  0x3e   : > { %1682 = vrot.lane.b32.xlu0 %v5827_v36, %s6942_s16  ;;  %v7262_v29 = vcombine.low %v437_v52, %v7255_v54  ;;  %v464_v0 = vrot.slane %v462_v58, 4  ;;  %v468_v41 = vshll.u32 %v268_v4, 16  ;;  %v1057_v22 = vrot.slane %v1055_v39, 4 }
  0x3f   : > { %1910 = vrot.lane.b32.xlu1 %v7230_v42, %s6943_s25  ;;  %v455_v18 = vor.u32 %v454_v26, %v450_v47  ;;  %v1060_v23 = vrot.slane %v1058_v14, 4  ;;  %v1061_v24 = vrot.slane %v268_v4, 5  ;;  %v5828_v8 = vcombine.low %v7072_v9, %v7090_v16  ;;  %v7318_v47 = vld [vmem:[%s7054_s13 + $0x48] sm:$0xf]  ;;  %v7339_v4 = vld [vmem:[%s7054_s13 + $0x50] sm:$0xf] }
  0x40   : > { %v465_v19 = vor.u32 %v464_v0, %v460_v63  ;;  %v7283_v45 = vcombine.low %v7210_v15, %v7242_v50  ;;  %v470_v31 = vrot.slane %v468_v41, 5  ;;  %v1059_v30 = vsel %vm7047_vm3, %v1057_v22, %v1058_v14 }
  0x41   : > { %v456_v62 = vrot.slane %v455_v18, 4  ;;  %v7292_v32 = vsel %vm7047_vm3, %v1060_v23, %v1061_v24  ;;  %v5882_v9 = vcombine.low %v7127_v37, %v1052_v7  ;;  %v473_v16 = vshrl.u32 %v7278_v25, 16  ;;  %v272_v24 = vld [vmem:[%s7054_s13 + $0x4c] sm:$0x1] }
  0x42   : > { %1850 = vrot.lane.b32.xlu0 %v5881_v51, %s6946_s9  ;;  %v466_v27 = vrot.slane %v465_v19, 4  ;;  %v476_v33 = vshll.u32 %v7278_v25, 16  ;;  %v482_v34 = vshll.u32 %v7286_v28, 16  ;;  %v7308_v38 = vcombine.low %v1059_v30, %v7292_v32 }
  0x43   : > { %2030 = vrot.lane.b32.xlu1 %v7249_v53, %s6945_s29  ;;  %v461_v35 = vsel %vm7160_vm6, %v456_v62, %v460_v63  ;;  %v486_v37 = vshrl.u32 %v7286_v28, 16  ;;  %v475_v20 = vrot.slane %v473_v16, 4  ;;  %v1065_v7 = vrot.slane %v7286_v28, 5 }
  0x44   : > { %v7305_v36 = vsel %vm7160_vm6, %v466_v27, %v470_v31  ;;  %v478_v43 = vrot.slane %v476_v33, 5  ;;  %v484_v44 = vrot.slane %v482_v34, 5  ;;  %v5856_v49 = vcombine.low %v7255_v54, %v461_v35  ;;  %v7373_v27 = vld [vmem:[%s7054_s13 + $0x54] sm:$0xf] }
  0x45   : > { %v7313_v39 = vcombine.low %v461_v35, %v7305_v36  ;;  %v488_v46 = vrot.slane %v486_v37, 4  ;;  %v492_v55 = vshll.u32 %v7318_v47, 16  ;;  %v5729_v56 = vrot.slane %v7278_v25, 9 }
  0x46   : > { %1970 = vrot.lane.b32.xlu0 %v7262_v29, %s6949_s15  ;;  %v479_v51 = vor.u32 %v478_v43, %v475_v20  ;;  %v1067_v58 = vrot.slane %v1065_v7, 4  ;;  %v5829_v26 = vcombine.low %v7196_v61, %v7210_v15  ;;  %v5745_v61 = vcombine.low %v7075_v10, %v7078_v11 }
  0x47   : > { %1600 = vrot.lane.b32.xlu1 %v5801_v60, %s6944_s27  ;;  %v489_v52 = vor.u32 %v488_v46, %v484_v44  ;;  %v1068_v60 = vrot.slane %v7318_v47, 5  ;;  %v494_v0 = vrot.slane %v492_v55, 5  ;;  %v1066_v14 = vsel %vm7047_vm3, %v5729_v56, %v1065_v7 }
  0x48   : > { %v480_v54 = vrot.slane %v479_v51, 4  ;;  %v5883_v15 = vcombine.low %v7239_v48, %v1059_v30  ;;  %v510_v22 = vshll.u32 %v7339_v4, 16  ;;  %v502_v30 = vshll.u32 %v272_v24, 16 }
  0x49   : > { %v490_v63 = vrot.slane %v489_v52, 4  ;;  %v516_v33 = vshll.u32 %v7373_v27, 16  ;;  %v1070_v34 = vrot.slane %v1068_v60, 4  ;;  %v1071_v35 = vrot.slane %v272_v24, 5 }
  0x4a   : > { %1465 = vrot.lane.b32.xlu0 %v5774_v59, %s6947_s12  ;;  %v496_v59 = vshrl.u32 %v7318_v47, 16  ;;  %v485_v18 = vsel %vm7160_vm6, %v480_v54, %v484_v44  ;;  %v512_v62 = vrot.slane %v510_v22, 5  ;;  %v5730_v37 = vrot.slane %v7339_v4, 9 }
  0x4b   : > { %1768 = vrot.lane.b32.xlu1 %v5855_v17, %s6948_s14  ;;  %v507_v17 = vshrl.u32 %v7339_v4, 16  ;;  %v7359_v19 = vsel %vm7160_vm6, %v490_v63, %v494_v0  ;;  %v1075_v20 = vrot.slane %v7373_v27, 5  ;;  %v504_v43 = vrot.slane %v502_v30, 5  ;;  %v7442_v30 = vld [vmem:[%s7054_s13 + $0x60] sm:$0xf] }
  0x4c   : > { %v7367_v48 = vcombine.low %v485_v18, %v7359_v19  ;;  %v498_v23 = vrot.slane %v496_v59, 4  ;;  %v7392_v44 = vcombine.low %v7318_v47, %v7339_v4  ;;  %v518_v7 = vrot.slane %v516_v33, 5 }
  0x4d   : > { %v7398_v51 = vsel %vm7047_vm3, %v5730_v37, %v1075_v20  ;;  %v520_v52 = vshrl.u32 %v7373_v27, 16  ;;  %v1077_v22 = vrot.slane %v1075_v20, 4  ;;  %v541_v33 = vshrl.u32 %v7442_v30, 16 }
  0x4e   : > { %1684 = vrot.lane.b32.xlu0 %v5828_v8, %s6942_s16  ;;  %v509_v8 = vrot.slane %v507_v17, 4  ;;  %v499_v31 = vor.u32 %v498_v23, %v494_v0  ;;  %v276_v0 = vld [vmem:[%s7054_s13 + $0x5c] sm:$0x1] }
  0x4f   : > { %1912 = vrot.lane.b32.xlu1 %v7283_v45, %s6943_s25  ;;  %v1081_v24 = vrot.slane %v276_v0, 5 }
  0x50   : > { %v513_v16 = vor.u32 %v512_v62, %v509_v8  ;;  %v5831_v8 = vcombine.low %v7286_v28, %v7318_v47 }
  0x52   : > { %1852 = vrot.lane.b32.xlu0 %v5882_v9, %s6946_s9  ;;  %v5857_v9 = vcombine.low %v7305_v36, %v485_v18  ;;  %v500_v36 = vrot.slane %v499_v31, 4  ;;  %v514_v46 = vrot.slane %v513_v16, 4  ;;  %v536_v18 = vshll.u32 %v276_v0, 16  ;;  %v7451_v16 = vld [vmem:[%s7054_s13 + $0x64] sm:$0xf] }
  0x53   : > { %2032 = vrot.lane.b32.xlu1 %v7308_v38, %s6945_s29  ;;  %v554_v20 = vshrl.u32 %v7451_v16, 16  ;;  %v5832_v0 = vcombine.low %v7339_v4, %v7373_v27 }
  0x54   : > { %v7412_v55 = vsel %vm7160_vm6, %v514_v46, %v518_v7  ;;  %v538_v31 = vrot.slane %v536_v18, 5 }
  0x56   : > { %1972 = vrot.lane.b32.xlu0 %v7313_v39, %s6949_s15 }
  0x57   : > { %1602 = vrot.lane.b32.xlu1 %v7134_v40, %s6944_s27  ;;  %v7336_v40 = vcombine.low %v7278_v25, %v7286_v28 }
  0x5a   : > { %1467 = vrot.lane.b32.xlu0 %v7205_v2, %s6947_s12  ;;  %v7345_v2 = vsel %vm7047_vm3, %v1067_v58, %v1068_v60 }
  0x5b   : > { %1770 = vrot.lane.b32.xlu1 %v5856_v49, %s6948_s14  ;;  %v7362_v41 = vcombine.low %v1066_v14, %v7345_v2  ;;  %v1072_v49 = vsel %vm7047_vm3, %v1070_v34, %v1071_v35  ;;  %v544_v34 = vshll.u32 %v7442_v30, 16 }
  0x5c   : > { %v7415_v56 = vcombine.low %v1072_v49, %v7398_v51  ;;  %v5885_v28 = vcombine.low %v7345_v2, %v1072_v49  ;;  %v550_v2 = vshll.u32 %v7451_v16, 16  ;;  %v7477_v49 = vld [vmem:[%s7054_s13 + $0x68] sm:$0xf] }
  0x5d   : > { %v564_v18 = vshrl.u32 %v7477_v49, 16 }
  0x5e   : > { %1686 = vrot.lane.b32.xlu0 %v5829_v26, %s6942_s16  ;;  %v522_v26 = vrot.slane %v520_v52, 4  ;;  %v552_v46 = vrot.slane %v550_v2, 5 }
  0x5f   : > { %1914 = vrot.lane.b32.xlu1 %v7336_v40, %s6943_s25 }
  0x62   : > { %1854 = vrot.lane.b32.xlu0 %v5883_v15, %s6946_s9  ;;  %v523_v15 = vor.u32 %v522_v26, %v518_v7  ;;  %v556_v7 = vrot.slane %v554_v20, 4  ;;  %v5731_v26 = vrot.slane %v7442_v30, 9 }
  0x63   : > { %2034 = vrot.lane.b32.xlu1 %v7362_v41, %s6945_s29 }
  0x64   : > { %v524_v62 = vrot.slane %v523_v15, 4 }
  0x66   : > { %1974 = vrot.lane.b32.xlu0 %v7367_v48, %s6949_s15 }
  0x67   : > { %1604 = vrot.lane.b32.xlu1 %v7249_v53, %s6944_s27  ;;  %v5830_v53 = vcombine.low %v7242_v50, %v7278_v25  ;;  %v5884_v50 = vcombine.low %v7292_v32, %v1066_v14  ;;  %v505_v25 = vsel %vm7160_vm6, %v500_v36, %v504_v43  ;;  %v543_v36 = vrot.slane %v541_v33, 4 }
  0x68   : > { %v7421_v32 = vcombine.low %v505_v25, %v7412_v55  ;;  %v5858_v59 = vcombine.low %v7359_v19, %v505_v25  ;;  %v546_v43 = vrot.slane %v544_v34, 5 }
  0x6a   : > { %1469 = vrot.lane.b32.xlu0 %v7262_v29, %s6947_s12  ;;  %v7401_v29 = vld [vmem:[%s7054_s13 + $0x58] sm:$0xf]  ;;  %v547_v25 = vor.u32 %v546_v43, %v543_v36 }
  0x6b   : > { %1772 = vrot.lane.b32.xlu1 %v5857_v9, %s6948_s14  ;;  %v526_v58 = vshll.u32 %v7401_v29, 16  ;;  %v530_v60 = vshrl.u32 %v7401_v29, 16  ;;  %v1078_v14 = vrot.slane %v7401_v29, 5 }
  0x6d   : > { %v528_v54 = vrot.slane %v526_v58, 5  ;;  %v532_v63 = vrot.slane %v530_v60, 4  ;;  %v1080_v23 = vrot.slane %v1078_v14, 4  ;;  %v1079_v9 = vsel %vm7047_vm3, %v1077_v22, %v1078_v14 }
  0x6e   : > { %1688 = vrot.lane.b32.xlu0 %v5830_v53, %s6942_s16  ;;  %v557_v58 = vor.u32 %v556_v7, %v552_v46  ;;  %v560_v60 = vshll.u32 %v7477_v49, 16  ;;  %v548_v14 = vrot.slane %v547_v25, 4  ;;  %v5886_v4 = vcombine.low %v7398_v51, %v1079_v9 }
  0x6f   : > { %1916 = vrot.lane.b32.xlu1 %v7392_v44, %s6943_s25  ;;  %v533_v17 = vor.u32 %v532_v63, %v528_v54  ;;  %v529_v47 = vsel %vm7160_vm6, %v524_v62, %v528_v54  ;;  %v1088_v63 = vrot.slane %v7477_v49, 5 }
  0x70   : > { %v5859_v52 = vcombine.low %v7412_v55, %v529_v47  ;;  %v558_v55 = vrot.slane %v557_v58, 4  ;;  %v562_v15 = vrot.slane %v560_v60, 5 }
  0x71   : > { %v534_v19 = vrot.slane %v533_v17, 4 }
  0x72   : > { %1856 = vrot.lane.b32.xlu0 %v5884_v50, %s6946_s9  ;;  %v1085_v50 = vrot.slane %v7451_v16, 5  ;;  %v7515_v22 = vsel %vm7160_vm6, %v558_v55, %v562_v15 }
  0x73   : > { %2036 = vrot.lane.b32.xlu1 %v7415_v56, %s6945_s29  ;;  %v7463_v35 = vsel %vm7160_vm6, %v534_v19, %v538_v31  ;;  %v280_v19 = vld [vmem:[%s7054_s13 + $0x6c] sm:$0x1]  ;;  %v566_v31 = vrot.slane %v564_v18, 4 }
  0x74   : > { %v7472_v53 = vcombine.low %v529_v47, %v7463_v35  ;;  %v1087_v54 = vrot.slane %v1085_v50, 4  ;;  %v570_v34 = vshll.u32 %v280_v19, 16 }
  0x75   : > { %v567_v36 = vor.u32 %v566_v31, %v562_v15 }
  0x76   : > { %1976 = vrot.lane.b32.xlu0 %v7421_v32, %s6949_s15  ;;  %v7501_v17 = vsel %vm7047_vm3, %v1087_v54, %v1088_v63 }
  0x77   : > { %1606 = vrot.lane.b32.xlu1 %v7308_v38, %s6944_s27  ;;  %v7439_v38 = vcombine.low %v7373_v27, %v7401_v29  ;;  %v553_v27 = vsel %vm7160_vm6, %v548_v14, %v552_v46  ;;  %v1090_v46 = vrot.slane %v1088_v63, 4 }
  0x78   : > { %v7526_v62 = vcombine.low %v553_v27, %v7515_v22  ;;  %v5860_v20 = vcombine.low %v7463_v35, %v553_v27  ;;  %v5833_v35 = vcombine.low %v7401_v29, %v7442_v30  ;;  %v7562_v29 = vld [vmem:[%s7054_s13 + $0x78] sm:$0xf] }
  0x7a   : > { %1471 = vrot.lane.b32.xlu0 %v7313_v39, %s6947_s12  ;;  %v7448_v39 = vsel %vm7047_vm3, %v1080_v23, %v1081_v24 }
  0x7b   : > { %1774 = vrot.lane.b32.xlu1 %v5858_v59, %s6948_s14  ;;  %v7466_v37 = vcombine.low %v1079_v9, %v7448_v39  ;;  %v1086_v59 = vsel %vm7047_vm3, %v5731_v26, %v1085_v50  ;;  %v7532_v9 = vld [vmem:[%s7054_s13 + $0x74] sm:$0xf]  ;;  %v1091_v50 = vrot.slane %v280_v19, 5  ;;  %v568_v26 = vrot.slane %v567_v36, 4 }
  0x7c   : > { %v7518_v23 = vcombine.low %v1086_v59, %v7501_v17  ;;  %v584_v43 = vshll.u32 %v7532_v9, 16  ;;  %v5887_v55 = vcombine.low %v7448_v39, %v1086_v59  ;;  %v588_v18 = vshrl.u32 %v7532_v9, 16 }
  0x7d   : > { %v598_v39 = vshrl.u32 %v7562_v29, 16  ;;  %v1098_v19 = vrot.slane %v7562_v29, 5 }
  0x7e   : > { %1690 = vrot.lane.b32.xlu0 %v5831_v8, %s6942_s16  ;;  %v586_v63 = vrot.slane %v584_v43, 5 }
  0x7f   : > { %1918 = vrot.lane.b32.xlu1 %v7439_v38, %s6943_s25  ;;  %v600_v36 = vrot.slane %v598_v39, 4 }
  0x82   : > { %1858 = vrot.lane.b32.xlu0 %v5885_v28, %s6946_s9 }
  0x83   : > { %2038 = vrot.lane.b32.xlu1 %v7466_v37, %s6945_s29 }
  0x86   : > { %1978 = vrot.lane.b32.xlu0 %v7472_v53, %s6949_s15 }
  0x87   : > { %1608 = vrot.lane.b32.xlu1 %v7362_v41, %s6944_s27  ;;  %v7495_v41 = vcombine.low %v7442_v30, %v7451_v16 }
  0x8a   : > { %1473 = vrot.lane.b32.xlu0 %v7367_v48, %s6947_s12  ;;  %v7504_v48 = vld [vmem:[%s7054_s13 + $0x70] sm:$0xf] }
  0x8b   : > { %1776 = vrot.lane.b32.xlu1 %v5859_v52, %s6948_s14  ;;  %v575_v24 = vshrl.u32 %v7504_v48, 16  ;;  %v578_v8 = vshll.u32 %v7504_v48, 16  ;;  %v5732_v25 = vrot.slane %v7504_v48, 9  ;;  %v1095_v52 = vrot.slane %v7532_v9, 5 }
  0x8c   : > { %v7550_v60 = vcombine.low %v7477_v49, %v7504_v48 }
  0x8d   : > { %v577_v28 = vrot.slane %v575_v24, 4  ;;  %v580_v47 = vrot.slane %v578_v8, 5  ;;  %v594_v24 = vshll.u32 %v7562_v29, 16 }
  0x8e   : > { %1692 = vrot.lane.b32.xlu0 %v5832_v0, %s6942_s16  ;;  %v7555_v0 = vsel %vm7047_vm3, %v1090_v46, %v1091_v50 }
  0x8f   : > { %1920 = vrot.lane.b32.xlu1 %v7495_v41, %s6943_s25  ;;  %v581_v7 = vor.u32 %v580_v47, %v577_v28  ;;  %v284_v47 = vld [vmem:[%s7054_s13 + $0x7c] sm:$0x1] }
  0x90   : > { %v7522_v51 = vpop.permute.xlu1 %1680  ;;  %v1101_v50 = vrot.slane %v284_v47, 5 }
  0x91   : > { %v582_v54 = vrot.slane %v581_v7, 4  ;;  %v1097_v7 = vrot.slane %v1095_v52, 4 }
  0x92   : > { %1860 = vrot.lane.b32.xlu0 %v5886_v4, %s6946_s9 }
  0x93   : > { %2040 = vrot.lane.b32.xlu1 %v7518_v23, %s6945_s29  ;;  %v7578_v27 = vsel %vm7160_vm6, %v582_v54, %v586_v63  ;;  %v5834_v54 = vcombine.low %v7451_v16, %v7477_v49  ;;  %v7630_v16 = vld [vmem:[%s7054_s13 + $0x80] sm:$0xf]  ;;  %v7635_v49 = vld [vmem:[%s7054_s13 + $0x84] sm:$0xf] }
  0x94   : > { %v7534_v33 = vpop.permute.xlu1 %1908  ;;  %v609_v39 = vshrl.u32 %v7630_v16, 16 }
  0x96   : > { %1980 = vrot.lane.b32.xlu0 %v7526_v62, %s6949_s15 }
  0x97   : > { %v1597_v2 = vpop.permute.xlu0 %1596  ;;  %1610 = vrot.lane.b32.xlu1 %v7415_v56, %s6944_s27  ;;  %v572_v56 = vrot.slane %v570_v34, 5  ;;  %v590_v34 = vrot.slane %v588_v18, 4  ;;  %v5888_v18 = vcombine.low %v7501_v17, %v7555_v0  ;;  %v618_v17 = vshll.u32 %v7635_v49, 16 }
  0x98   : > { %v2029_v58 = vpop.permute.xlu1 %2028 }
  0x99   : > { %v573_v15 = vsel %vm7160_vm6, %v568_v26, %v572_v56 }
  0x9a   : > { %1475 = vrot.lane.b32.xlu0 %v7421_v32, %s6947_s12  ;;  %v7559_v32 = vsel %vm7047_vm3, %v5732_v25, %v1095_v52  ;;  %v7585_v8 = vcombine.low %v573_v15, %v7578_v27  ;;  %v5861_v10 = vcombine.low %v7515_v22, %v573_v15  ;;  %v5746_v52 = vcombine.low %v7085_v13, %v7061_v5 }
  0x9b   : > { %1778 = vrot.lane.b32.xlu1 %v5860_v20, %s6948_s14  ;;  %v1849_v14 = vpop.permute.xlu0 %1848  ;;  %v7572_v4 = vcombine.low %v7555_v0, %v7559_v32  ;;  %v596_v20 = vrot.slane %v594_v24, 5  ;;  %v7623_v5 = vsel %vm7047_vm3, %v1097_v7, %v1098_v19  ;;  %v622_v0 = vshrl.u32 %v7635_v49, 16 }
  0x9c   : > { %v7564_v30 = vpop.permute.xlu1 %1598 }
  0x9e   : > { %1694 = vrot.lane.b32.xlu0 %v5833_v35, %s6942_s16  ;;  %v601_v35 = vor.u32 %v600_v36, %v596_v20 }
  0x9f   : > { %1922 = vrot.lane.b32.xlu1 %v7550_v60, %s6943_s25 }
  0xa2   : > { %1862 = vrot.lane.b32.xlu0 %v5887_v55, %s6946_s9  ;;  %v1462_v59 = vpop.permute.xlu0 %1461  ;;  %v602_v55 = vrot.slane %v601_v35, 4 }
  0xa3   : > { %v2085_v31 = vsel %vm2082_vm8, %v5745_v61, %v1462_v59  ;;  %2042 = vrot.lane.b32.xlu1 %v7572_v4, %s6945_s29  ;;  %v1765_v28 = vpop.permute.xlu1 %1764  ;;  %v604_v61 = vshll.u32 %v284_v47, 16  ;;  %v612_v59 = vshll.u32 %v7630_v16, 16 }
  0xa4   : > { %v2166_v43 = vsel %vm2164_vm9, %v2085_v31, %v1597_v2  ;;  %v591_v2 = vor.u32 %v590_v34, %v586_v63 }
  0xa5   : > { %v2221_v46 = vsel %vm2219_vm10, %v2166_v43, %v7522_v51  ;;  %v1100_v51 = vrot.slane %v1098_v19, 4  ;;  %v606_v63 = vrot.slane %v604_v61, 5  ;;  %v611_v43 = vrot.slane %v609_v39, 4 }
  0xa6   : > { %1982 = vrot.lane.b32.xlu0 %v7585_v8, %s6949_s15  ;;  %v2276_v11 = vsel %vm2274_vm11, %v2221_v46, %v1765_v28  ;;  %v614_v46 = vrot.slane %v612_v59, 5 }
  0xa7   : > { %v2331_v25 = vsel %vm2329_vm12, %v2276_v11, %v1849_v14  ;;  %1612 = vrot.lane.b32.xlu1 %v7466_v37, %s6944_s27  ;;  %v592_v14 = vrot.slane %v591_v2, 4  ;;  %v7627_v13 = vsel %vm7047_vm3, %v1100_v51, %v1101_v50  ;;  %v7653_v31 = vsel %vm7160_vm6, %v602_v55, %v606_v63 }
  0xa8   : > { %v2386_v26 = vsel %vm2384_vm13, %v2331_v25, %v7534_v33  ;;  %v1969_v22 = vpop.permute.xlu0 %1968  ;;  %v7617_v33 = vcombine.low %v7532_v9, %v7562_v29  ;;  %v7643_v24 = vcombine.low %v7623_v5, %v7627_v13  ;;  %v624_v11 = vrot.slane %v622_v0, 4 }
  0xa9   : > { %v2441_v56 = vsel %vm2439_vm14, %v2386_v26, %v1969_v22  ;;  %v597_v19 = vsel %vm7160_vm6, %v592_v14, %v596_v20  ;;  %v1105_v50 = vrot.slane %v7635_v49, 5  ;;  %v615_v35 = vor.u32 %v614_v46, %v611_v43 }
  0xaa   : > { %1477 = vrot.lane.b32.xlu0 %v7472_v53, %s6947_s12  ;;  %v2496_v37 = vsel %vm2494_vm15, %v2441_v56, %v2029_v58  ;;  %v7662_v20 = vcombine.low %v597_v19, %v7653_v31  ;;  %v5862_v51 = vcombine.low %v7578_v27, %v597_v19  ;;  %v5747_v55 = vcombine.low %v7064_v6, %v7098_v21 }
  0xab   : > { %6305 = vmatmul.mubr.msk.bf16.vlgmr.msra.gmra.mxu0 %vm2592_vm0, %v2496_v37  ;;  %1780 = vrot.lane.b32.xlu1 %v5861_v10, %s6948_s14  ;;  %v620_v10 = vrot.slane %v618_v17, 5  ;;  %v5733_v37 = vrot.slane %v7630_v16, 9  ;;  %v5889_v19 = vcombine.low %v7559_v32, %v7623_v5 }
  0xac   : > { %v1464_v53 = vpop.permute.xlu0 %1463  ;;  %6308 = vmatprep.mubr.msk.bf16.mxu0 %vm6950_vm7, %v6941_v1 }
  0xad   : > { %v2088_v58 = vsel %vm2082_vm8, %v5746_v52, %v1464_v53  ;;  %v1767_v15 = vpop.permute.xlu1 %1766  ;;  %v625_v26 = vor.u32 %v624_v11, %v620_v10  ;;  %v5835_v53 = vcombine.low %v7504_v48, %v7532_v9  ;;  %v7697_v39 = vsel %vm7047_vm3, %v5733_v37, %v1105_v50  ;;  %v7706_v48 = vld [vmem:[%s7054_s13 + $0x90] sm:$0xf] }
  0xae   : > { %1696 = vrot.lane.b32.xlu0 %v5834_v54, %s6942_s16  ;;  %v2168_v28 = vsel %vm2164_vm9, %v2088_v58, %v7564_v30  ;;  %v7668_v30 = vld [vmem:[%s7054_s13 + $0x88] sm:$0xf]  ;;  %v1107_v54 = vrot.slane %v1105_v50, 4  ;;  %v616_v58 = vrot.slane %v615_v35, 4  ;;  %v643_v32 = vshrl.u32 %v7706_v48, 16 }
  0xaf   : > { %1924 = vrot.lane.b32.xlu1 %v7617_v33, %s6943_s25  ;;  %v628_v22 = vshll.u32 %v7668_v30, 16  ;;  %v1108_v63 = vrot.slane %v7668_v30, 5  ;;  %v632_v0 = vshrl.u32 %v7668_v30, 16  ;;  %v646_v5 = vshll.u32 %v7706_v48, 16  ;;  %v7738_v35 = vld [vmem:[%s7054_s13 + $0x94] sm:$0xf] }
  0xb0   : > { %v1683_v47 = vpop.permute.xlu0 %1682  ;;  %v621_v17 = vsel %vm7160_vm6, %v616_v58, %v620_v10  ;;  %v1115_v58 = vrot.slane %v7738_v35, 5 }
  0xb1   : > { %v2223_v34 = vsel %vm2219_vm10, %v2168_v28, %v1683_v47  ;;  %v1911_v36 = vpop.permute.xlu1 %1910  ;;  %v630_v6 = vrot.slane %v628_v22, 5  ;;  %v634_v11 = vrot.slane %v632_v0, 4  ;;  %v648_v50 = vrot.slane %v646_v5, 5 }
  0xb2   : > { %1864 = vrot.lane.b32.xlu0 %v5888_v18, %s6946_s9  ;;  %v2278_v61 = vsel %vm2274_vm11, %v2223_v34, %v1767_v15  ;;  %v7693_v15 = vcombine.low %v7630_v16, %v7635_v49  ;;  %v626_v18 = vrot.slane %v625_v26, 4  ;;  %v5890_v5 = vcombine.low %v7627_v13, %v7697_v39 }
  0xb3   : > { %2044 = vrot.lane.b32.xlu1 %v7643_v24, %s6945_s29  ;;  %v635_v22 = vor.u32 %v634_v11, %v630_v6 }
  0xb4   : > { %v1851_v7 = vpop.permute.xlu0 %1850  ;;  %v7719_v28 = vsel %vm7160_vm6, %v626_v18, %v630_v6 }
  0xb5   : > { %v2333_v25 = vsel %vm2329_vm12, %v2278_v61, %v1851_v7  ;;  %v2031_v2 = vpop.permute.xlu1 %2030  ;;  %v7731_v10 = vcombine.low %v621_v17, %v7719_v28  ;;  %v288_v61 = vld [vmem:[%s7054_s13 + $0x8c] sm:$0x1]  ;;  %v645_v7 = vrot.slane %v643_v32, 4 }
  0xb6   : > { %1984 = vrot.lane.b32.xlu0 %v7662_v20, %s6949_s15  ;;  %v2388_v56 = vsel %vm2384_vm13, %v2333_v25, %v1911_v36 }
  0xb7   : > { %1614 = vrot.lane.b32.xlu1 %v7518_v23, %s6944_s27  ;;  %v649_v37 = vor.u32 %v648_v50, %v645_v7 }
  0xb8   : > { %v1971_v52 = vpop.permute.xlu0 %1970 }
  0xb9   : > { %v2443_v14 = vsel %vm2439_vm14, %v2388_v56, %v1971_v52  ;;  %v1601_v23 = vpop.permute.xlu1 %1600  ;;  %v638_v56 = vshll.u32 %v288_v61, 16  ;;  %v5863_v52 = vcombine.low %v7653_v31, %v621_v17  ;;  %v5836_v31 = vcombine.low %v7562_v29, %v7630_v16 }
  0xba   : > { %v2498_v27 = vsel %vm2494_vm15, %v2443_v14, %v2031_v2  ;;  %1479 = vrot.lane.b32.xlu0 %v7526_v62, %s6947_s12  ;;  %v7701_v62 = vsel %vm7047_vm3, %v1107_v54, %v1108_v63  ;;  %v652_v54 = vshll.u32 %v7738_v35, 16  ;;  %v1110_v14 = vrot.slane %v1108_v63, 4 }
  0xbb   : > { %6309 = vmatmul.mubr.msk.bf16.gmra.mxu0 %vm2592_vm0, %v2498_v27  ;;  %1782 = vrot.lane.b32.xlu1 %v5862_v51, %s6948_s14  ;;  %v7723_v47 = vcombine.low %v7697_v39, %v7701_v62  ;;  %v1111_v27 = vrot.slane %v288_v61, 5  ;;  %v636_v63 = vrot.slane %v635_v22, 4 }
  0xbc   : > { %v1466_v21 = vpop.permute.xlu0 %1465  ;;  %6312 = vmatprep.mubr.msk.bf16.mxu0 %vm6950_vm7, %v6941_v1 }
  0xbd   : > { %v2091_v9 = vsel %vm2082_vm8, %v5747_v55, %v1466_v21  ;;  %v1769_v59 = vpop.permute.xlu1 %1768  ;;  %v640_v21 = vrot.slane %v638_v56, 5  ;;  %v7764_v0 = vsel %vm7047_vm3, %v1110_v14, %v1111_v27  ;;  %v292_v56 = vld [vmem:[%s7054_s13 + $0x9c] sm:$0x1] }
  0xbe   : > { %1698 = vrot.lane.b32.xlu0 %v5835_v53, %s6942_s16  ;;  %v2170_v34 = vsel %vm2164_vm9, %v2091_v9, %v1601_v23  ;;  %v5734_v53 = vrot.slane %v7706_v48, 9  ;;  %v7760_v9 = vcombine.low %v7668_v30, %v7706_v48  ;;  %v672_v27 = vshll.u32 %v292_v56, 16 }
  0xbf   : > { %1926 = vrot.lane.b32.xlu1 %v7693_v15, %s6943_s25 }
  0xc0   : > { %v1685_v36 = vpop.permute.xlu0 %1684  ;;  %v7768_v29 = vsel %vm7047_vm3, %v5734_v53, %v1115_v58 }
  0xc1   : > { %v2225_v43 = vsel %vm2219_vm10, %v2170_v34, %v1685_v36  ;;  %v1913_v46 = vpop.permute.xlu1 %1912  ;;  %v641_v34 = vsel %vm7160_vm6, %v636_v63, %v640_v21  ;;  %v656_v36 = vshrl.u32 %v7738_v35, 16 }
  0xc2   : > { %1866 = vrot.lane.b32.xlu0 %v5889_v19, %s6946_s9  ;;  %v2280_v25 = vsel %vm2274_vm11, %v2225_v43, %v1769_v59  ;;  %v650_v59 = vrot.slane %v649_v37, 4  ;;  %v654_v19 = vrot.slane %v652_v54, 5  ;;  %v5864_v14 = vcombine.low %v7719_v28, %v641_v34  ;;  %v7820_v28 = vld [vmem:[%s7054_s13 + $0xa0] sm:$0xf] }
  0xc3   : > { %2046 = vrot.lane.b32.xlu1 %v7723_v47, %s6945_s29 }
  0xc4   : > { %v1853_v2 = vpop.permute.xlu0 %1852  ;;  %v7787_v43 = vsel %vm7160_vm6, %v650_v59, %v654_v19 }
  0xc5   : > { %v2335_v51 = vsel %vm2329_vm12, %v2280_v25, %v1853_v2  ;;  %v2033_v26 = vpop.permute.xlu1 %2032  ;;  %v7799_v50 = vcombine.low %v641_v34, %v7787_v43  ;;  %v658_v25 = vrot.slane %v656_v36, 4  ;;  %v5891_v36 = vcombine.low %v7701_v62, %v7764_v0 }
  0xc6   : > { %1986 = vrot.lane.b32.xlu0 %v7731_v10, %s6949_s15  ;;  %v2390_v55 = vsel %vm2384_vm13, %v2335_v51, %v1913_v46 }
  0xc7   : > { %1616 = vrot.lane.b32.xlu1 %v7572_v4, %s6944_s27 }
  0xc8   : > { %v1973_v23 = vpop.permute.xlu0 %1972 }
  0xc9   : > { %v2445_v18 = vsel %vm2439_vm14, %v2390_v55, %v1973_v23  ;;  %v1603_v6 = vpop.permute.xlu1 %1602  ;;  %v659_v55 = vor.u32 %v658_v25, %v654_v19  ;;  %v7829_v19 = vld [vmem:[%s7054_s13 + $0xa4] sm:$0xf] }
  0xca   : > { %v2500_v4 = vsel %vm2494_vm15, %v2445_v18, %v2033_v26  ;;  %1481 = vrot.lane.b32.xlu0 %v7585_v8, %s6947_s12  ;;  %v7773_v8 = vld [vmem:[%s7054_s13 + $0x98] sm:$0xf]  ;;  %v690_v62 = vshrl.u32 %v7829_v19, 16 }
  0xcb   : > { %6313 = vmatmul.mubr.msk.bf16.gmra.mxu0 %vm2592_vm0, %v2500_v4  ;;  %1784 = vrot.lane.b32.xlu1 %v5863_v52, %s6948_s14  ;;  %v662_v46 = vshll.u32 %v7773_v8, 16  ;;  %v666_v13 = vshrl.u32 %v7773_v8, 16  ;;  %v1118_v52 = vrot.slane %v7773_v8, 5 }
  0xcc   : > { %v1468_v17 = vpop.permute.xlu0 %1467  ;;  %6316 = vmatprep.mubr.msk.bf16.mxu0 %vm6950_vm7, %v6941_v1 }
  0xcd   : > { %v2094_v16 = vsel %vm2082_vm8, %v7082_v12, %v1468_v17  ;;  %v1771_v32 = vpop.permute.xlu1 %1770  ;;  %v7791_v12 = vcombine.low %v7764_v0, %v7768_v29  ;;  %v664_v2 = vrot.slane %v662_v46, 5  ;;  %v668_v51 = vrot.slane %v666_v13, 4 }
  0xce   : > { %1700 = vrot.lane.b32.xlu0 %v5836_v31, %s6942_s16  ;;  %v2172_v39 = vsel %vm2164_vm9, %v2094_v16, %v1603_v6  ;;  %v1117_v6 = vrot.slane %v1115_v58, 4  ;;  %v1120_v4 = vrot.slane %v1118_v52, 4  ;;  %v1121_v31 = vrot.slane %v292_v56, 5 }
  0xcf   : > { %1928 = vrot.lane.b32.xlu1 %v7760_v9, %s6943_s25  ;;  %v669_v23 = vor.u32 %v668_v51, %v664_v2  ;;  %v7826_v58 = vcombine.low %v7738_v35, %v7773_v8  ;;  %v660_v17 = vrot.slane %v659_v55, 4  ;;  %v677_v46 = vshrl.u32 %v7820_v28, 16  ;;  %v7873_v55 = vld [vmem:[%s7054_s13 + $0xa8] sm:$0xf] }
  0xd0   : > { %v1687_v11 = vpop.permute.xlu0 %1686  ;;  %v680_v13 = vshll.u32 %v7820_v28, 16 }
  0xd1   : > { %v2227_v61 = vsel %vm2219_vm10, %v2172_v39, %v1687_v11  ;;  %v1915_v7 = vpop.permute.xlu1 %1914  ;;  %v670_v16 = vrot.slane %v669_v23, 4  ;;  %v686_v39 = vshll.u32 %v7829_v19, 16  ;;  %v665_v11 = vsel %vm7160_vm6, %v660_v17, %v664_v2 }
  0xd2   : > { %1868 = vrot.lane.b32.xlu0 %v5890_v5, %s6946_s9  ;;  %v2282_v26 = vsel %vm2274_vm11, %v2227_v61, %v1771_v32  ;;  %v674_v32 = vrot.slane %v672_v27, 5  ;;  %v679_v2 = vrot.slane %v677_v46, 4 }
  0xd3   : > { %2048 = vrot.lane.b32.xlu1 %v7791_v12, %s6945_s29  ;;  %v688_v56 = vrot.slane %v686_v39, 5 }
  0xd4   : > { %v1855_v22 = vpop.permute.xlu0 %1854 }
  0xd5   : > { %v2337_v37 = vsel %vm2329_vm12, %v2282_v26, %v1855_v22  ;;  %v2035_v54 = vpop.permute.xlu1 %2034  ;;  %v682_v26 = vrot.slane %v680_v13, 5 }
  0xd6   : > { %1988 = vrot.lane.b32.xlu0 %v7799_v50, %s6949_s15  ;;  %v2392_v53 = vsel %vm2384_vm13, %v2337_v37, %v1915_v7 }
  0xd7   : > { %1618 = vrot.lane.b32.xlu1 %v7643_v24, %s6944_s27  ;;  %v5837_v24 = vcombine.low %v7635_v49, %v7668_v30  ;;  %v7837_v49 = vsel %vm7047_vm3, %v1120_v4, %v1121_v31  ;;  %v696_v4 = vshll.u32 %v7873_v55, 16 }
  0xd8   : > { %v1975_v18 = vpop.permute.xlu0 %1974 }
  0xd9   : > { %v2447_v63 = vsel %vm2439_vm14, %v2392_v53, %v1975_v18  ;;  %v1605_v21 = vpop.permute.xlu1 %1604  ;;  %v683_v53 = vor.u32 %v682_v26, %v679_v2  ;;  %v5865_v18 = vcombine.low %v7787_v43, %v665_v11 }
  0xda   : > { %v2502_v59 = vsel %vm2494_vm15, %v2447_v63, %v2035_v54  ;;  %1483 = vrot.lane.b32.xlu0 %v7662_v20, %s6947_s12  ;;  %v7833_v20 = vsel %vm7047_vm3, %v1117_v6, %v1118_v52  ;;  %v692_v52 = vrot.slane %v690_v62, 4  ;;  %v5735_v63 = vrot.slane %v7820_v28, 9 }
  0xdb   : > { %6317 = vmatmul.mubr.msk.bf16.gmra.mxu0 %vm2592_vm0, %v2502_v59  ;;  %1786 = vrot.lane.b32.xlu1 %v5864_v14, %s6948_s14  ;;  %v7859_v61 = vcombine.low %v7833_v20, %v7837_v49  ;;  %v1125_v14 = vrot.slane %v7829_v19, 5  ;;  %v700_v62 = vshrl.u32 %v7873_v55, 16 }
  0xdc   : > { %v1470_v5 = vpop.permute.xlu0 %1469  ;;  %6320 = vmatprep.mubr.msk.bf16.mxu0 %vm6950_vm7, %v6941_v1  ;;  %v693_v6 = vor.u32 %v692_v52, %v688_v56 }
  0xdd   : > { %v2097_v30 = vsel %vm2082_vm8, %v7230_v42, %v1470_v5  ;;  %v1773_v34 = vpop.permute.xlu1 %1772  ;;  %v7855_v42 = vsel %vm7160_vm6, %v670_v16, %v674_v32  ;;  %v1127_v59 = vrot.slane %v1125_v14, 4  ;;  %v684_v32 = vrot.slane %v683_v53, 4 }
  0xde   : > { %1702 = vrot.lane.b32.xlu0 %v5837_v24, %s6942_s16  ;;  %v2174_v0 = vsel %vm2164_vm9, %v2097_v30, %v1605_v21  ;;  %v7866_v22 = vcombine.low %v665_v11, %v7855_v42  ;;  %v1128_v24 = vrot.slane %v7873_v55, 5  ;;  %v7895_v5 = vcombine.low %v7820_v28, %v7829_v19 }
  0xdf   : > { %1930 = vrot.lane.b32.xlu1 %v7826_v58, %s6943_s25  ;;  %v694_v30 = vrot.slane %v693_v6, 4  ;;  %v689_v39 = vsel %vm7160_vm6, %v684_v32, %v688_v56  ;;  %v5892_v11 = vcombine.low %v7768_v29, %v7833_v20  ;;  %v296_v56 = vld [vmem:[%s7054_s13 + $0xac] sm:$0x1]  ;;  %v702_v52 = vrot.slane %v700_v62, 4 }
  0xe0   : > { %v1689_v7 = vpop.permute.xlu0 %1688  ;;  %v5866_v6 = vcombine.low %v7855_v42, %v689_v39  ;;  %v1131_v32 = vrot.slane %v296_v56, 5 }
  0xe1   : > { %v2229_v25 = vsel %vm2219_vm10, %v2174_v0, %v1689_v7  ;;  %v1917_v51 = vpop.permute.xlu1 %1916 }
  0xe2   : > { %1870 = vrot.lane.b32.xlu0 %v5891_v36, %s6946_s9  ;;  %v2284_v37 = vsel %vm2274_vm11, %v2229_v25, %v1773_v34  ;;  %v698_v34 = vrot.slane %v696_v4, 5  ;;  %v7899_v36 = vsel %vm7047_vm3, %v5735_v63, %v1125_v14  ;;  %v706_v4 = vshll.u32 %v296_v56, 16 }
  0xe3   : > { %2050 = vrot.lane.b32.xlu1 %v7859_v61, %s6945_s29 }
  0xe4   : > { %v1857_v54 = vpop.permute.xlu0 %1856  ;;  %v7922_v0 = vsel %vm7160_vm6, %v694_v30, %v698_v34 }
  0xe5   : > { %v2339_v23 = vsel %vm2329_vm12, %v2284_v37, %v1857_v54  ;;  %v2037_v27 = vpop.permute.xlu1 %2036  ;;  %v7934_v26 = vcombine.low %v689_v39, %v7922_v0 }
  0xe6   : > { %1990 = vrot.lane.b32.xlu0 %v7866_v22, %s6949_s15  ;;  %v2394_v31 = vsel %vm2384_vm13, %v2339_v23, %v1917_v51 }
  0xe7   : > { %1620 = vrot.lane.b32.xlu1 %v7723_v47, %s6944_s27  ;;  %v5838_v47 = vcombine.low %v7706_v48, %v7738_v35  ;;  %v7908_v48 = vld [vmem:[%s7054_s13 + $0xb0] sm:$0xf] }
  0xe8   : > { %v1977_v21 = vpop.permute.xlu0 %1976  ;;  %v711_v7 = vshrl.u32 %v7908_v48, 16  ;;  %v714_v29 = vshll.u32 %v7908_v48, 16 }
  0xe9   : > { %v2449_v17 = vsel %vm2439_vm14, %v2394_v31, %v1977_v21  ;;  %v1607_v16 = vpop.permute.xlu1 %1606  ;;  %v703_v31 = vor.u32 %v702_v52, %v698_v34 }
  0xea   : > { %v2504_v43 = vsel %vm2494_vm15, %v2449_v17, %v2037_v27  ;;  %1485 = vrot.lane.b32.xlu0 %v7731_v10, %s6947_s12  ;;  %v7903_v10 = vsel %vm7047_vm3, %v1127_v59, %v1128_v24  ;;  %v713_v37 = vrot.slane %v711_v7, 4  ;;  %v716_v54 = vrot.slane %v714_v29, 5  ;;  %v7941_v27 = vld [vmem:[%s7054_s13 + $0xb4] sm:$0xf] }
  0xeb   : > { %6321 = vmatmul.mubr.msk.bf16.gmra.mxu0 %vm2592_vm0, %v2504_v43  ;;  %1788 = vrot.lane.b32.xlu1 %v5865_v18, %s6948_s14  ;;  %v720_v21 = vshll.u32 %v7941_v27, 16  ;;  %v1130_v59 = vrot.slane %v1128_v24, 4  ;;  %v5736_v43 = vrot.slane %v7908_v48, 9  ;;  %v1135_v42 = vrot.slane %v7941_v27, 5 }
  0xec   : > { %v1472_v46 = vpop.permute.xlu0 %1471  ;;  %6324 = vmatprep.mubr.msk.bf16.mxu0 %vm6950_vm7, %v6941_v1  ;;  %v717_v63 = vor.u32 %v716_v54, %v713_v37  ;;  %v7961_v24 = vcombine.low %v7873_v55, %v7908_v48  ;;  %v704_v34 = vrot.slane %v703_v31, 4  ;;  %v5893_v29 = vcombine.low %v7837_v49, %v7899_v36 }
  0xed   : > { %v2100_v35 = vsel %vm2082_vm8, %v7283_v45, %v1472_v46  ;;  %v1775_v13 = vpop.permute.xlu1 %1774  ;;  %v7926_v45 = vcombine.low %v7899_v36, %v7903_v10  ;;  %v722_v39 = vrot.slane %v720_v21, 5 }
  0xee   : > { %1704 = vrot.lane.b32.xlu0 %v5838_v47, %s6942_s16  ;;  %v2176_v20 = vsel %vm2164_vm9, %v2100_v35, %v1607_v16  ;;  %v708_v35 = vrot.slane %v706_v4, 5  ;;  %v300_v4 = vld [vmem:[%s7054_s13 + $0xbc] sm:$0x1] }
  0xef   : > { %1932 = vrot.lane.b32.xlu1 %v7895_v5, %s6943_s25 }
  0xf0   : > { %v1691_v25 = vpop.permute.xlu0 %1690 }
  0xf1   : > { %v2231_v51 = vsel %vm2219_vm10, %v2176_v20, %v1691_v25  ;;  %v1919_v2 = vpop.permute.xlu1 %1918  ;;  %v724_v20 = vshrl.u32 %v7941_v27, 16 }
  0xf2   : > { %1872 = vrot.lane.b32.xlu0 %v5892_v11, %s6946_s9  ;;  %v2286_v14 = vsel %vm2274_vm11, %v2231_v51, %v1775_v13  ;;  %v718_v13 = vrot.slane %v717_v63, 4  ;;  %v7966_v11 = vld [vmem:[%s7054_s13 + $0xb8] sm:$0xf]  ;;  %v709_v51 = vsel %vm7160_vm6, %v704_v34, %v708_v35 }
  0xf3   : > { %2052 = vrot.lane.b32.xlu1 %v7926_v45, %s6945_s29  ;;  %v730_v25 = vshll.u32 %v7966_v11, 16  ;;  %v734_v36 = vshrl.u32 %v7966_v11, 16  ;;  %v1138_v31 = vrot.slane %v7966_v11, 5 }
  0xf4   : > { %v1859_v23 = vpop.permute.xlu0 %1858 }
  0xf5   : > { %v2341_v53 = vsel %vm2329_vm12, %v2286_v14, %v1859_v23  ;;  %v2039_v18 = vpop.permute.xlu1 %2038  ;;  %v726_v14 = vrot.slane %v724_v20, 4  ;;  %v732_v23 = vrot.slane %v730_v25, 5 }
  0xf6   : > { %1992 = vrot.lane.b32.xlu0 %v7934_v26, %s6949_s15  ;;  %v2396_v17 = vsel %vm2384_vm13, %v2341_v53, %v1919_v2  ;;  %v736_v53 = vrot.slane %v734_v36, 4 }
  0xf7   : > { %1622 = vrot.lane.b32.xlu1 %v7791_v12, %s6944_s27  ;;  %v5839_v12 = vcombine.low %v7773_v8, %v7820_v28  ;;  %v7974_v8 = vsel %vm7047_vm3, %v5736_v43, %v1135_v42 }
  0xf8   : > { %v1979_v16 = vpop.permute.xlu0 %1978 }
  0xf9   : > { %v2451_v47 = vsel %vm2439_vm14, %v2396_v17, %v1979_v16  ;;  %v1609_v30 = vpop.permute.xlu1 %1608  ;;  %v5867_v17 = vcombine.low %v7922_v0, %v709_v51  ;;  %v737_v16 = vor.u32 %v736_v53, %v732_v23 }
  0xfa   : > { %v2506_v46 = vsel %vm2494_vm15, %v2451_v47, %v2039_v18  ;;  %1487 = vrot.lane.b32.xlu0 %v7799_v50, %s6947_s12  ;;  %v7970_v50 = vsel %vm7047_vm3, %v1130_v59, %v1131_v32  ;;  %v727_v59 = vor.u32 %v726_v14, %v722_v39  ;;  %v740_v32 = vshll.u32 %v300_v4, 16 }
  0xfb   : > { %6325 = vmatmul.mubr.msk.bf16.gmra.mxu0 %vm2592_vm0, %v2506_v46  ;;  %1790 = vrot.lane.b32.xlu1 %v5866_v6, %s6948_s14  ;;  %v7995_v49 = vcombine.low %v7970_v50, %v7974_v8  ;;  %v1140_v46 = vrot.slane %v1138_v31, 4  ;;  %v5894_v25 = vcombine.low %v7903_v10, %v7970_v50 }
  0xfc   : > { %v1474_v62 = vpop.permute.xlu0 %1473  ;;  %6328 = vmatprep.mubr.msk.bf16.mxu0 %vm6950_vm7, %v6941_v1  ;;  %v728_v0 = vrot.slane %v727_v59, 4 }
  0xfd   : > { %v2103_v28 = vsel %vm2082_vm8, %v7336_v40, %v1474_v62  ;;  %v1777_v7 = vpop.permute.xlu1 %1776  ;;  %v7991_v40 = vsel %vm7160_vm6, %v718_v13, %v722_v39  ;;  %v738_v39 = vrot.slane %v737_v16, 4  ;;  %v742_v62 = vrot.slane %v740_v32, 5 }
  0xfe   : > { %1706 = vrot.lane.b32.xlu0 %v5839_v12, %s6942_s16  ;;  %v2178_v2 = vsel %vm2164_vm9, %v2103_v28, %v1609_v30  ;;  %v8002_v54 = vcombine.low %v709_v51, %v7991_v40  ;;  %v1137_v30 = vrot.slane %v1135_v42, 4  ;;  %v1141_v12 = vrot.slane %v300_v4, 5  ;;  %v8029_v28 = vld [vmem:[%s7054_s13 + $0xc0] sm:$0xf] }
  0xff   : > { %1934 = vrot.lane.b32.xlu1 %v7961_v24, %s6943_s25  ;;  %v8026_v42 = vcombine.low %v7941_v27, %v7966_v11  ;;  %v733_v51 = vsel %vm7160_vm6, %v728_v0, %v732_v23  ;;  %v745_v36 = vshrl.u32 %v8029_v28, 16 }
 0x100   : > { %v1693_v56 = vpop.permute.xlu0 %1692 }
 0x101   : > { %v2233_v52 = vsel %vm2219_vm10, %v2178_v2, %v1693_v56  ;;  %v1921_v37 = vpop.permute.xlu1 %1920  ;;  %v748_v2 = vshll.u32 %v8029_v28, 16  ;;  %v8057_v56 = vsel %vm7160_vm6, %v738_v39, %v742_v62  ;;  %v6951_v62 = vmov 0  }
 0x102   : > { %1874 = vrot.lane.b32.xlu0 %v5893_v29, %s6946_s9  ;;  %v2288_v18 = vsel %vm2274_vm11, %v2233_v52, %v1777_v7  ;;  %v8069_v53 = vcombine.low %v733_v51, %v8057_v56 }
 0x103   : > { %2054 = vrot.lane.b32.xlu1 %v7995_v49, %s6945_s29 }
 0x104   : > { %v1861_v6 = vpop.permute.xlu0 %1860 }
 0x105   : > { %v2343_v63 = vsel %vm2329_vm12, %v2288_v18, %v1861_v6  ;;  %v2041_v21 = vpop.permute.xlu1 %2040  ;;  %v747_v18 = vrot.slane %v745_v36, 4  ;;  %v750_v6 = vrot.slane %v748_v2, 5 }
 0x106   : > { %1994 = vrot.lane.b32.xlu0 %v8002_v54, %s6949_s15  ;;  %v2398_v43 = vsel %vm2384_vm13, %v2343_v63, %v1921_v37 }
 0x107   : > { %1624 = vrot.lane.b32.xlu1 %v7859_v61, %s6944_s27  ;;  %v5840_v61 = vcombine.low %v7829_v19, %v7873_v55  ;;  %v8037_v19 = vsel %vm7047_vm3, %v1140_v46, %v1141_v12  ;;  %v8042_v55 = vld [vmem:[%s7054_s13 + $0xc4] sm:$0xf]  ;;  %v5737_v12 = vrot.slane %v8029_v28, 9 }
 0x108   : > { %v1981_v47 = vpop.permute.xlu0 %1980  ;;  %v754_v10 = vshll.u32 %v8042_v55, 16  ;;  %v758_v50 = vshrl.u32 %v8042_v55, 16  ;;  %v1145_v63 = vrot.slane %v8042_v55, 5 }
 0x109   : > { %v2453_v34 = vsel %vm2439_vm14, %v2398_v43, %v1981_v47  ;;  %v1611_v35 = vpop.permute.xlu1 %1610  ;;  %v5868_v43 = vcombine.low %v7991_v40, %v733_v51  ;;  %v751_v47 = vor.u32 %v750_v6, %v747_v18  ;;  %v8105_v51 = vcombine.low %v8029_v28, %v8042_v55 }
 0x10a   : > { %v2508_v13 = vsel %vm2494_vm15, %v2453_v34, %v2041_v21  ;;  %1489 = vrot.lane.b32.xlu0 %v7866_v22, %s6947_s12  ;;  %v8033_v22 = vsel %vm7047_vm3, %v1137_v30, %v1138_v31  ;;  %v756_v4 = vrot.slane %v754_v10, 5  ;;  %v760_v31 = vrot.slane %v758_v50, 4 }
 0x10b   : > { %6329 = vmatmul.mubr.msk.bf16.gmra.mxu0 %vm2592_vm0, %v2508_v13  ;;  %1792 = vrot.lane.b32.xlu1 %v5867_v17, %s6948_s14  ;;  %v8076_v17 = vld [vmem:[%s7054_s13 + $0xc8] sm:$0xf]  ;;  %v1147_v34 = vrot.slane %v1145_v63, 4  ;;  %v8109_v50 = vsel %vm7047_vm3, %v5737_v12, %v1145_v63 }
 0x10c   : > { %v1476_v7 = vpop.permute.xlu0 %1475  ;;  %6332 = vmatprep.mubr.msk.bf16.mxu0 %vm6950_vm7, %v6941_v1  ;;  %v761_v30 = vor.u32 %v760_v31, %v756_v4  ;;  %v764_v46 = vshll.u32 %v8076_v17, 16  ;;  %v1148_v0 = vrot.slane %v8076_v17, 5 }
 0x10d   : > { %v2106_v29 = vsel %vm2082_vm8, %v7392_v44, %v1476_v7  ;;  %v1779_v20 = vpop.permute.xlu1 %1778  ;;  %v8061_v44 = vcombine.low %v8033_v22, %v8037_v19  ;;  %v8094_v7 = vrot.slane %v6951_v62, 1 }
 0x10e   : > { %1708 = vrot.lane.b32.xlu0 %v5840_v61, %s6942_s16  ;;  %v2180_v52 = vsel %vm2164_vm9, %v2106_v29, %v1611_v35  ;;  %v5952_v35 = vld [vmem:[%s10516_s3 + $0x4] sm:$0xf]  ;;  %v762_v36 = vrot.slane %v761_v30, 4  ;;  %v766_v2 = vrot.slane %v764_v46, 5  ;;  %v8153_v46 = vld [vmem:[%s7054_s13 + $0xd4] sm:$0xf] }
 0x10f   : > { %1936 = vrot.lane.b32.xlu1 %v8026_v42, %s6943_s25  ;;  %6720 = vmatprep.subr.msk.bf16.mxu1 %vm2647_vm2, %v5952_v35  ;;  %v3592_v40 = vsel %vm2647_vm2, %v5952_v35, 0  ;;  %10535 = vst [vmem:[#allocation5_spill] sm:$0xff] %v8094_v7 }
 0x110   : > { %v1695_v37 = vpop.permute.xlu0 %1694  ;;  %6413 = vmatpush3.bf16.msra.mxu1 %v3592_v40  ;;  %6414 = vmatprep.mubr.msk.bf16.mxu1 %vm2082_vm8, %v8094_v7  ;;  %v8134_v18 = vsel %vm7160_vm6, %v762_v36, %v766_v2  ;;  %v1155_v36 = vrot.slane %v8153_v46, 5 }
 0x111   : > { %v2235_v14 = vsel %vm2219_vm10, %v2180_v52, %v1695_v37  ;;  %v1923_v23 = vpop.permute.xlu1 %1922  ;;  %v5895_v37 = vcombine.low %v7974_v8, %v8033_v22 }
 0x112   : > { %1876 = vrot.lane.b32.xlu0 %v5894_v25, %s6946_s9  ;;  %v2290_v21 = vsel %vm2274_vm11, %v2235_v14, %v1779_v20  ;;  %v5841_v20 = vcombine.low %v7908_v48, %v7941_v27  ;;  %v752_v25 = vrot.slane %v751_v47, 4  ;;  %v8118_v48 = vld [vmem:[%s7054_s13 + $0xd0] sm:$0xf] }
 0x113   : > { %2056 = vrot.lane.b32.xlu1 %v8061_v44, %s6945_s29  ;;  %v779_v8 = vshrl.u32 %v8118_v48, 16  ;;  %v782_v22 = vshll.u32 %v8118_v48, 16 }
 0x114   : > { %v1863_v59 = vpop.permute.xlu0 %1862  ;;  %v757_v14 = vsel %vm7160_vm6, %v752_v25, %v756_v4  ;;  %v5738_v25 = vrot.slane %v8118_v48, 9 }
 0x115   : > { %v2345_v16 = vsel %vm2329_vm12, %v2290_v21, %v1863_v59  ;;  %v2043_v32 = vpop.permute.xlu1 %2042  ;;  %v8146_v21 = vcombine.low %v757_v14, %v8134_v18 }
 0x116   : > { %1996 = vrot.lane.b32.xlu0 %v8069_v53, %s6949_s15  ;;  %v2400_v13 = vsel %vm2384_vm13, %v2345_v16, %v1923_v23  ;;  %v768_v23 = vshrl.u32 %v8076_v17, 16  ;;  %v304_v16 = vld [vmem:[%s7054_s13 + $0xcc] sm:$0x1] }
 0x117   : > { %1626 = vrot.lane.b32.xlu1 %v7926_v45, %s6944_s27 }
 0x118   : > { %v1983_v61 = vpop.permute.xlu0 %1982  ;;  %v770_v59 = vrot.slane %v768_v23, 4 }
 0x119   : > { %v2455_v45 = vsel %vm2439_vm14, %v2400_v13, %v1983_v61  ;;  %v1613_v39 = vpop.permute.xlu1 %1612  ;;  %v774_v13 = vshll.u32 %v304_v16, 16  ;;  %v5869_v61 = vcombine.low %v8057_v56, %v757_v14  ;;  %v5842_v56 = vcombine.low %v7966_v11, %v8029_v28 }
 0x11a   : > { %v2510_v29 = vsel %vm2494_vm15, %v2455_v45, %v2043_v32  ;;  %1491 = vrot.lane.b32.xlu0 %v7934_v26, %s6947_s12  ;;  %v8113_v26 = vsel %vm7047_vm3, %v1147_v34, %v1148_v0  ;;  %v781_v32 = vrot.slane %v779_v8, 4  ;;  %v771_v35 = vor.u32 %v770_v59, %v766_v2 }
 0x11b   : > { %6333 = vmatmul.mubr.msk.bf16.gmra.mxu0 %vm2592_vm0, %v2510_v29  ;;  %1794 = vrot.lane.b32.xlu1 %v5868_v43, %s6948_s14  ;;  %v784_v43 = vrot.slane %v782_v22, 5  ;;  %v788_v45 = vshll.u32 %v8153_v46, 16  ;;  %v8183_v11 = vsel %vm7047_vm3, %v5738_v25, %v1155_v36 }
 0x11c   : > { %v1478_v10 = vpop.permute.xlu0 %1477  ;;  %6336 = vmatprep.mubr.msk.bf16.mxu0 %vm6950_vm7, %v6941_v1 }
 0x11d   : > { %v2109_v27 = vsel %vm2082_vm8, %v7439_v38, %v1478_v10  ;;  %v1781_v52 = vpop.permute.xlu1 %1780  ;;  %v8138_v38 = vcombine.low %v8109_v50, %v8113_v26  ;;  %v785_v40 = vor.u32 %v784_v43, %v781_v32  ;;  %v790_v14 = vrot.slane %v788_v45, 5 }
 0x11e   : > { %1710 = vrot.lane.b32.xlu0 %v5841_v20, %s6942_s16  ;;  %v2182_v6 = vsel %vm2164_vm9, %v2109_v27, %v1613_v39  ;;  %v1150_v39 = vrot.slane %v1148_v0, 4  ;;  %v1151_v20 = vrot.slane %v304_v16, 5  ;;  %v772_v0 = vrot.slane %v771_v35, 4 }
 0x11f   : > { %1938 = vrot.lane.b32.xlu1 %v8105_v51, %s6943_s25  ;;  %v776_v27 = vrot.slane %v774_v13, 5 }
 0x120   : > { %v1697_v4 = vpop.permute.xlu0 %1696  ;;  %v8179_v8 = vsel %vm7047_vm3, %v1150_v39, %v1151_v20 }
 0x121   : > { %v2237_v31 = vsel %vm2219_vm10, %v2182_v6, %v1697_v4  ;;  %v1925_v63 = vpop.permute.xlu1 %1924  ;;  %v5896_v6 = vcombine.low %v8037_v19, %v8109_v50  ;;  %v777_v4 = vsel %vm7160_vm6, %v772_v0, %v776_v27 }
 0x122   : > { %1878 = vrot.lane.b32.xlu0 %v5895_v37, %s6946_s9  ;;  %v2292_v47 = vsel %vm2274_vm11, %v2237_v31, %v1781_v52  ;;  %v8175_v52 = vcombine.low %v8076_v17, %v8118_v48  ;;  %v786_v37 = vrot.slane %v785_v40, 4  ;;  %v792_v31 = vshrl.u32 %v8153_v46, 16 }
 0x123   : > { %2058 = vrot.lane.b32.xlu1 %v8138_v38, %s6945_s29 }
 0x124   : > { %v1865_v30 = vpop.permute.xlu0 %1864 }
 0x125   : > { %v2347_v12 = vsel %vm2329_vm12, %v2292_v47, %v1865_v30  ;;  %v2045_v34 = vpop.permute.xlu1 %2044  ;;  %v794_v30 = vrot.slane %v792_v31, 4 }
 0x126   : > { %1998 = vrot.lane.b32.xlu0 %v8146_v21, %s6949_s15  ;;  %v2402_v62 = vsel %vm2384_vm13, %v2347_v12, %v1925_v63  ;;  %v8202_v63 = vsel %vm7160_vm6, %v786_v37, %v790_v14 }
 0x127   : > { %1628 = vrot.lane.b32.xlu1 %v7995_v49, %s6944_s27  ;;  %v8214_v47 = vcombine.low %v777_v4, %v8202_v63 }
 0x128   : > { %v1985_v29 = vpop.permute.xlu0 %1984 }
 0x129   : > { %v2457_v2 = vsel %vm2439_vm14, %v2402_v62, %v1985_v29  ;;  %v1615_v10 = vpop.permute.xlu1 %1614  ;;  %v795_v62 = vor.u32 %v794_v30, %v790_v14  ;;  %v5870_v29 = vcombine.low %v8134_v18, %v777_v4 }
 0x12a   : > { %v2512_v49 = vsel %vm2494_vm15, %v2457_v2, %v2045_v34  ;;  %1493 = vrot.lane.b32.xlu0 %v8002_v54, %s6947_s12  ;;  %v8188_v54 = vld [vmem:[%s7054_s13 + $0xd8] sm:$0xf] }
 0x12b   : > { %6337 = vmatmul.mubr.msk.bf16.gmra.mxu0 %vm2592_vm0, %v2512_v49  ;;  %1796 = vrot.lane.b32.xlu1 %v5869_v61, %s6948_s14  ;;  %v798_v59 = vshll.u32 %v8188_v54, 16  ;;  %v802_v19 = vshrl.u32 %v8188_v54, 16  ;;  %v308_v61 = vld [vmem:[%s7054_s13 + $0xdc] sm:$0x1]  ;;  %v1158_v40 = vrot.slane %v8188_v54, 5  ;;  %v1157_v49 = vrot.slane %v1155_v36, 4 }
 0x12c   : > { %v1480_v23 = vpop.permute.xlu0 %1479  ;;  %6340 = vmatprep.mubr.msk.bf16.mxu0 %vm6950_vm7, %v6941_v1  ;;  %v808_v25 = vshll.u32 %v308_v61, 16  ;;  %v1161_v0 = vrot.slane %v308_v61, 5  ;;  %v796_v18 = vrot.slane %v795_v62, 4  ;;  %v8238_v36 = vcombine.low %v8153_v46, %v8188_v54 }
 0x12d   : > { %v2112_v28 = vsel %vm2082_vm8, %v7495_v41, %v1480_v23  ;;  %v1783_v22 = vpop.permute.xlu1 %1782  ;;  %v8206_v41 = vcombine.low %v8179_v8, %v8183_v11  ;;  %v800_v12 = vrot.slane %v798_v59, 5  ;;  %v804_v34 = vrot.slane %v802_v19, 4 }
 0x12e   : > { %1712 = vrot.lane.b32.xlu0 %v5842_v56, %s6942_s16  ;;  %v2184_v50 = vsel %vm2164_vm9, %v2112_v28, %v1615_v10  ;;  %v1160_v56 = vrot.slane %v1158_v40, 4  ;;  %v810_v28 = vrot.slane %v808_v25, 5  ;;  %v5897_v59 = vcombine.low %v8113_v26, %v8179_v8 }
 0x12f   : > { %1940 = vrot.lane.b32.xlu1 %v8175_v52, %s6943_s25  ;;  %v805_v20 = vor.u32 %v804_v34, %v800_v12  ;;  %v801_v19 = vsel %vm7160_vm6, %v796_v18, %v800_v12 }
 0x130   : > { %v1699_v16 = vpop.permute.xlu0 %1698 }
 0x131   : > { %v2239_v32 = vsel %vm2219_vm10, %v2184_v50, %v1699_v16  ;;  %v1927_v43 = vpop.permute.xlu1 %1926  ;;  %v806_v23 = vrot.slane %v805_v20, 4 }
 0x132   : > { %1880 = vrot.lane.b32.xlu0 %v5896_v6, %s6946_s9  ;;  %v2294_v35 = vsel %vm2274_vm11, %v2239_v32, %v1783_v22  ;;  %v8241_v22 = vld [vmem:[%s7054_s13 + $0xe0] sm:$0xf] }
 0x133   : > { %2060 = vrot.lane.b32.xlu1 %v8206_v41, %s6945_s29  ;;  %v813_v50 = vshrl.u32 %v8241_v22, 16  ;;  %v816_v16 = vshll.u32 %v8241_v22, 16  ;;  %v8269_v32 = vsel %vm7160_vm6, %v806_v23, %v810_v28 }
 0x134   : > { %v1867_v13 = vpop.permute.xlu0 %1866 }
 0x135   : > { %v2349_v45 = vsel %vm2329_vm12, %v2294_v35, %v1867_v13  ;;  %v2047_v39 = vpop.permute.xlu1 %2046  ;;  %v8281_v35 = vcombine.low %v801_v19, %v8269_v32  ;;  %v815_v13 = vrot.slane %v813_v50, 4  ;;  %v818_v61 = vrot.slane %v816_v16, 5 }
 0x136   : > { %2000 = vrot.lane.b32.xlu0 %v8214_v47, %s6949_s15  ;;  %v2404_v2 = vsel %vm2384_vm13, %v2349_v45, %v1927_v43 }
 0x137   : > { %1630 = vrot.lane.b32.xlu1 %v8061_v44, %s6944_s27  ;;  %v5843_v44 = vcombine.low %v8042_v55, %v8076_v17  ;;  %v8249_v55 = vsel %vm7047_vm3, %v1160_v56, %v1161_v0  ;;  %v8254_v17 = vld [vmem:[%s7054_s13 + $0xe4] sm:$0xf] }
 0x138   : > { %v1987_v10 = vpop.permute.xlu0 %1986  ;;  %v822_v26 = vshll.u32 %v8254_v17, 16  ;;  %v826_v8 = vshrl.u32 %v8254_v17, 16  ;;  %v1165_v20 = vrot.slane %v8254_v17, 5 }
 0x139   : > { %v2459_v27 = vsel %vm2439_vm14, %v2404_v2, %v1987_v10  ;;  %v1617_v37 = vpop.permute.xlu1 %1616  ;;  %v819_v10 = vor.u32 %v818_v61, %v815_v13 }
 0x13a   : > { %v2514_v14 = vsel %vm2494_vm15, %v2459_v27, %v2047_v39  ;;  %1495 = vrot.lane.b32.xlu0 %v8069_v53, %s6947_s12  ;;  %v8245_v53 = vsel %vm7047_vm3, %v1157_v49, %v1158_v40  ;;  %v824_v40 = vrot.slane %v822_v26, 5  ;;  %v828_v45 = vrot.slane %v826_v8, 4 }
 0x13b   : > { %6341 = vmatmul.mubr.msk.bf16.gmra.mxu0 %vm2592_vm0, %v2514_v14  ;;  %1798 = vrot.lane.b32.xlu1 %v5870_v29, %s6948_s14  ;;  %v8287_v29 = vld [vmem:[%s7054_s13 + $0xe8] sm:$0xf]  ;;  %v5871_v49 = vcombine.low %v8202_v63, %v801_v19  ;;  %v5739_v14 = vrot.slane %v8241_v22, 9  ;;  %v820_v63 = vrot.slane %v819_v10, 4  ;;  %v5898_v26 = vcombine.low %v8183_v11, %v8245_v53  ;;  %v8356_v10 = vld [vmem:[%s7054_s13 + $0xf4] sm:$0xf] }
 0x13c   : > { %v1482_v6 = vpop.permute.xlu0 %1481  ;;  %6344 = vmatprep.mubr.msk.bf16.mxu0 %vm6950_vm7, %v6941_v1  ;;  %v829_v56 = vor.u32 %v828_v45, %v824_v40  ;;  %v832_v0 = vshll.u32 %v8287_v29, 16  ;;  %v1168_v18 = vrot.slane %v8287_v29, 5 }
 0x13d   : > { %v2115_v4 = vsel %vm2082_vm8, %v7550_v60, %v1482_v6  ;;  %v1785_v31 = vpop.permute.xlu1 %1784  ;;  %v8273_v60 = vcombine.low %v8245_v53, %v8249_v55  ;;  %v8314_v50 = vsel %vm7047_vm3, %v5739_v14, %v1165_v20  ;;  %v825_v8 = vsel %vm7160_vm6, %v820_v63, %v824_v40 }
 0x13e   : > { %1714 = vrot.lane.b32.xlu0 %v5843_v44, %s6942_s16  ;;  %v2186_v43 = vsel %vm2164_vm9, %v2115_v4, %v1617_v37  ;;  %v1167_v44 = vrot.slane %v1165_v20, 4  ;;  %v8310_v4 = vcombine.low %v8241_v22, %v8254_v17 }
 0x13f   : > { %1942 = vrot.lane.b32.xlu1 %v8238_v36, %s6943_s25 }
 0x140   : > { %v1701_v30 = vpop.permute.xlu0 %1700 }
 0x141   : > { %v2241_v12 = vsel %vm2219_vm10, %v2186_v43, %v1701_v30  ;;  %v1929_v34 = vpop.permute.xlu1 %1928  ;;  %v836_v43 = vshrl.u32 %v8287_v29, 16 }
 0x142   : > { %1882 = vrot.lane.b32.xlu0 %v5897_v59, %s6946_s9  ;;  %v2296_v39 = vsel %vm2274_vm11, %v2241_v12, %v1785_v31  ;;  %v830_v31 = vrot.slane %v829_v56, 4  ;;  %v834_v59 = vrot.slane %v832_v0, 5  ;;  %v5872_v0 = vcombine.low %v8269_v32, %v825_v8 }
 0x143   : > { %2062 = vrot.lane.b32.xlu1 %v8273_v60, %s6945_s29  ;;  %v838_v45 = vrot.slane %v836_v43, 4  ;;  %v8381_v43 = vld [vmem:[%s7054_s13 + $0xf8] sm:$0xf] }
 0x144   : > { %v1869_v62 = vpop.permute.xlu0 %1868  ;;  %v8337_v30 = vsel %vm7160_vm6, %v830_v31, %v834_v59  ;;  %v1175_v31 = vrot.slane %v8356_v10, 5 }
 0x145   : > { %v2351_v25 = vsel %vm2329_vm12, %v2296_v39, %v1869_v62  ;;  %v2049_v2 = vpop.permute.xlu1 %2048  ;;  %v8349_v40 = vcombine.low %v825_v8, %v8337_v30 }
 0x146   : > { %2002 = vrot.lane.b32.xlu0 %v8281_v35, %s6949_s15  ;;  %v2406_v27 = vsel %vm2384_vm13, %v2351_v25, %v1929_v34 }
 0x147   : > { %1632 = vrot.lane.b32.xlu1 %v8138_v38, %s6944_s27  ;;  %v5844_v38 = vcombine.low %v8118_v48, %v8153_v46  ;;  %v8323_v48 = vld [vmem:[%s7054_s13 + $0xf0] sm:$0xf] }
 0x148   : > { %v1989_v37 = vpop.permute.xlu0 %1988  ;;  %v847_v11 = vshrl.u32 %v8323_v48, 16  ;;  %v850_v53 = vshll.u32 %v8323_v48, 16  ;;  %v5740_v63 = vrot.slane %v8323_v48, 9 }
 0x149   : > { %v2461_v23 = vsel %vm2439_vm14, %v2406_v27, %v1989_v37  ;;  %v1619_v28 = vpop.permute.xlu1 %1618  ;;  %v839_v27 = vor.u32 %v838_v45, %v834_v59 }
 0x14a   : > { %v2516_v6 = vsel %vm2494_vm15, %v2461_v23, %v2049_v2  ;;  %1497 = vrot.lane.b32.xlu0 %v8146_v21, %s6947_s12  ;;  %v8318_v21 = vsel %vm7047_vm3, %v1167_v44, %v1168_v18  ;;  %v849_v39 = vrot.slane %v847_v11, 4  ;;  %v852_v62 = vrot.slane %v850_v53, 5  ;;  %v312_v2 = vld [vmem:[%s7054_s13 + $0xec] sm:$0x1] }
 0x14b   : > { %6345 = vmatmul.mubr.msk.bf16.gmra.mxu0 %vm2592_vm0, %v2516_v6  ;;  %1800 = vrot.lane.b32.xlu1 %v5871_v49, %s6948_s14  ;;  %v842_v37 = vshll.u32 %v312_v2, 16  ;;  %v856_v44 = vshll.u32 %v8356_v10, 16  ;;  %v1170_v23 = vrot.slane %v1168_v18, 4  ;;  %v8376_v18 = vcombine.low %v8287_v29, %v8323_v48 }
 0x14c   : > { %v1484_v19 = vpop.permute.xlu0 %1483  ;;  %6348 = vmatprep.mubr.msk.bf16.mxu0 %vm6950_vm7, %v6941_v1  ;;  %v853_v14 = vor.u32 %v852_v62, %v849_v39 }
 0x14d   : > { %v2118_v46 = vsel %vm2082_vm8, %v7617_v33, %v1484_v19  ;;  %v1787_v16 = vpop.permute.xlu1 %1786  ;;  %v8341_v33 = vcombine.low %v8314_v50, %v8318_v21  ;;  %v858_v8 = vrot.slane %v856_v44, 5 }
 0x14e   : > { %1716 = vrot.lane.b32.xlu0 %v5844_v38, %s6942_s16  ;;  %v2188_v12 = vsel %vm2164_vm9, %v2118_v46, %v1619_v28  ;;  %v1171_v38 = vrot.slane %v312_v2, 5  ;;  %v840_v46 = vrot.slane %v839_v27, 4  ;;  %v1178_v27 = vrot.slane %v8381_v43, 5 }
 0x14f   : > { %1944 = vrot.lane.b32.xlu1 %v8310_v4, %s6943_s25 }
 0x150   : > { %v1703_v34 = vpop.permute.xlu0 %1702 }
 0x151   : > { %v2243_v13 = vsel %vm2219_vm10, %v2188_v12, %v1703_v34  ;;  %v1931_v61 = vpop.permute.xlu1 %1930  ;;  %v5899_v12 = vcombine.low %v8249_v55, %v8314_v50  ;;  %v860_v34 = vshrl.u32 %v8356_v10, 16 }
 0x152   : > { %1884 = vrot.lane.b32.xlu0 %v5898_v26, %s6946_s9  ;;  %v2298_v20 = vsel %vm2274_vm11, %v2243_v13, %v1787_v16  ;;  %v844_v16 = vrot.slane %v842_v37, 5  ;;  %v854_v26 = vrot.slane %v853_v14, 4  ;;  %v866_v13 = vshll.u32 %v8381_v43, 16 }
 0x153   : > { %2064 = vrot.lane.b32.xlu1 %v8341_v33, %s6945_s29  ;;  %v862_v2 = vrot.slane %v860_v34, 4  ;;  %v8457_v34 = vld [vmem:[%s7054_s13 + $0x104] sm:$0xf] }
 0x154   : > { %v1871_v25 = vpop.permute.xlu0 %1870  ;;  %v845_v45 = vsel %vm7160_vm6, %v840_v46, %v844_v16 }
 0x155   : > { %v2353_v49 = vsel %vm2329_vm12, %v2298_v20, %v1871_v25  ;;  %v2051_v56 = vpop.permute.xlu1 %2050 }
 0x156   : > { %2004 = vrot.lane.b32.xlu0 %v8349_v40, %s6949_s15  ;;  %v2408_v28 = vsel %vm2384_vm13, %v2353_v49, %v1931_v61  ;;  %v870_v61 = vshrl.u32 %v8381_v43, 16  ;;  %v868_v49 = vrot.slane %v866_v13, 5 }
 0x157   : > { %1634 = vrot.lane.b32.xlu1 %v8206_v41, %s6944_s27  ;;  %v5845_v41 = vcombine.low %v8188_v54, %v8241_v22  ;;  %v8389_v54 = vsel %vm7047_vm3, %v5740_v63, %v1175_v31  ;;  %v5873_v63 = vcombine.low %v8337_v30, %v845_v45 }
 0x158   : > { %v1991_v6 = vpop.permute.xlu0 %1990 }
 0x159   : > { %v2463_v32 = vsel %vm2439_vm14, %v2408_v28, %v1991_v6  ;;  %v1621_v59 = vpop.permute.xlu1 %1620  ;;  %v863_v28 = vor.u32 %v862_v2, %v858_v8 }
 0x15a   : > { %v2518_v19 = vsel %vm2494_vm15, %v2463_v32, %v2051_v56  ;;  %1499 = vrot.lane.b32.xlu0 %v8214_v47, %s6947_s12  ;;  %v8385_v47 = vsel %vm7047_vm3, %v1170_v23, %v1171_v38  ;;  %v872_v56 = vrot.slane %v870_v61, 4  ;;  %v1177_v32 = vrot.slane %v1175_v31, 4 }
 0x15b   : > { %6349 = vmatmul.mubr.msk.bf16.gmra.mxu0 %vm2592_vm0, %v2518_v19  ;;  %1802 = vrot.lane.b32.xlu1 %v5872_v0, %s6948_s14  ;;  %v8411_v55 = vcombine.low %v8385_v47, %v8389_v54  ;;  %v316_v0 = vld [vmem:[%s7054_s13 + $0xfc] sm:$0x1] }
 0x15c   : > { %v1486_v11 = vpop.permute.xlu0 %1485  ;;  %6352 = vmatprep.mubr.msk.bf16.mxu0 %vm6950_vm7, %v6941_v1  ;;  %v873_v6 = vor.u32 %v872_v56, %v868_v49  ;;  %v876_v38 = vshll.u32 %v316_v0, 16  ;;  %v1181_v19 = vrot.slane %v316_v0, 5 }
 0x15d   : > { %v2121_v22 = vsel %vm2082_vm8, %v7693_v15, %v1486_v11  ;;  %v1789_v53 = vpop.permute.xlu1 %1788  ;;  %v8407_v15 = vsel %vm7160_vm6, %v854_v26, %v858_v8  ;;  %v5846_v8 = vcombine.low %v8254_v17, %v8287_v29  ;;  %v8445_v17 = vsel %vm7047_vm3, %v1177_v32, %v1178_v27 }
 0x15e   : > { %1718 = vrot.lane.b32.xlu0 %v5845_v41, %s6942_s16  ;;  %v2190_v50 = vsel %vm2164_vm9, %v2121_v22, %v1621_v59  ;;  %v8417_v25 = vcombine.low %v845_v45, %v8407_v15  ;;  %v1180_v59 = vrot.slane %v1178_v27, 4  ;;  %v874_v30 = vrot.slane %v873_v6, 4 }
 0x15f   : > { %1946 = vrot.lane.b32.xlu1 %v8376_v18, %s6943_s25  ;;  %v878_v31 = vrot.slane %v876_v38, 5 }
 0x160   : > { %v1705_v39 = vpop.permute.xlu0 %1704  ;;  %v8449_v29 = vsel %vm7047_vm3, %v1180_v59, %v1181_v19  ;;  %v8490_v59 = vld [vmem:[%s7054_s13 + $0x108] sm:$0xf]  ;;  %v1185_v19 = vrot.slane %v8457_v34, 5 }
 0x161   : > { %v2245_v62 = vsel %vm2219_vm10, %v2190_v50, %v1705_v39  ;;  %v1933_v20 = vpop.permute.xlu1 %1932  ;;  %v5900_v50 = vcombine.low %v8318_v21, %v8385_v47  ;;  %v890_v21 = vshll.u32 %v8457_v34, 16  ;;  %v894_v47 = vshrl.u32 %v8457_v34, 16 }
 0x162   : > { %1886 = vrot.lane.b32.xlu0 %v5899_v12, %s6946_s9  ;;  %v2300_v37 = vsel %vm2274_vm11, %v2245_v62, %v1789_v53  ;;  %v8441_v53 = vcombine.low %v8356_v10, %v8381_v43  ;;  %v8454_v12 = vld [vmem:[%s7054_s13 + $0x100] sm:$0xf]  ;;  %v8468_v62 = vsel %vm7160_vm6, %v874_v30, %v878_v31 }
 0x163   : > { %2066 = vrot.lane.b32.xlu1 %v8411_v55, %s6945_s29  ;;  %v884_v56 = vshll.u32 %v8454_v12, 16  ;;  %v892_v6 = vrot.slane %v890_v21, 5  ;;  %v896_v38 = vrot.slane %v894_v47, 4  ;;  %v5741_v31 = vrot.slane %v8454_v12, 9 }
 0x164   : > { %v1873_v14 = vpop.permute.xlu0 %1872 }
 0x165   : > { %v2355_v44 = vsel %vm2329_vm12, %v2300_v37, %v1873_v14  ;;  %v2053_v23 = vpop.permute.xlu1 %2052 }
 0x166   : > { %2006 = vrot.lane.b32.xlu0 %v8417_v25, %s6949_s15  ;;  %v2410_v41 = vsel %vm2384_vm13, %v2355_v44, %v1933_v20  ;;  %v8472_v20 = vcombine.low %v8445_v17, %v8449_v29 }
 0x167   : > { %1636 = vrot.lane.b32.xlu1 %v8273_v60, %s6944_s27  ;;  %v864_v60 = vrot.slane %v863_v28, 4  ;;  %v886_v28 = vrot.slane %v884_v56, 5  ;;  %v8516_v56 = vld [vmem:[%s7054_s13 + $0x110] sm:$0xf] }
 0x168   : > { %v1993_v46 = vpop.permute.xlu0 %1992 }
 0x169   : > { %v2465_v16 = vsel %vm2439_vm14, %v2410_v41, %v1993_v46  ;;  %v1623_v26 = vpop.permute.xlu1 %1622  ;;  %v869_v39 = vsel %vm7160_vm6, %v864_v60, %v868_v49 }
 0x16a   : > { %v2520_v11 = vsel %vm2494_vm15, %v2465_v16, %v2053_v23  ;;  %1501 = vrot.lane.b32.xlu0 %v8281_v35, %s6947_s12  ;;  %v8484_v44 = vcombine.low %v869_v39, %v8468_v62  ;;  %v5874_v16 = vcombine.low %v8407_v15, %v869_v39  ;;  %v5847_v15 = vcombine.low %v8323_v48, %v8356_v10 }
 0x16b   : > { %6353 = vmatmul.mubr.msk.bf16.gmra.mxu0 %vm2592_vm0, %v2520_v11  ;;  %v2685_v22 = vpop.f32.mrf.mxu0  ;;  %1804 = vrot.lane.b32.xlu1 %v5873_v63, %s6948_s14  ;;  %v900_v11 = vshll.u32 %v8490_v59, 16 }
 0x16c   : > { %v1488_v35 = vpop.permute.xlu0 %1487  ;;  %6356 = vmatprep.mubr.msk.bf16.mxu0 %vm6950_vm7, %v6941_v1  ;;  %v1187_v22 = vrot.slane %v1185_v19, 4 }
 0x16d   : > { %v2124_v13 = vsel %vm2082_vm8, %v7760_v9, %v1488_v35  ;;  %v6306_v61 = vpop.f32.mrf.mxu0  ;;  %v1791_v45 = vpop.permute.xlu1 %1790  ;;  %v881_v9 = vshrl.u32 %v8454_v12, 16  ;;  %v1188_v35 = vrot.slane %v8490_v59, 5 }
 0x16e   : > { %1720 = vrot.lane.b32.xlu0 %v5846_v8, %s6942_s16  ;;  %v2192_v49 = vsel %vm2164_vm9, %v2124_v13, %v1623_v26  ;;  %v897_v8 = vor.u32 %v896_v38, %v892_v6 }
 0x16f   : > { %v2688_v2 = vpop.f32.mrf.mxu0  ;;  %1948 = vrot.lane.b32.xlu1 %v8441_v53, %s6943_s25  ;;  %v883_v23 = vrot.slane %v881_v9, 4  ;;  %v902_v9 = vrot.slane %v900_v11, 5  ;;  %v8524_v48 = vsel %vm7047_vm3, %v1187_v22, %v1188_v35 }
 0x170   : > { %v1707_v0 = vpop.permute.xlu0 %1706  ;;  %v898_v2 = vrot.slane %v897_v8, 4 }
 0x171   : > { %v2247_v27 = vsel %vm2219_vm10, %v2192_v49, %v1707_v0  ;;  %v6307_v37 = vpop.f32.mrf.mxu0  ;;  %v1935_v14 = vpop.permute.xlu1 %1934  ;;  %v887_v26 = vor.u32 %v886_v28, %v883_v23  ;;  %v904_v0 = vshrl.u32 %v8490_v59, 16  ;;  %v2974_v28 = vlaneseq }
 0x172   : > { %1888 = vrot.lane.b32.xlu0 %v5900_v50, %s6946_s9  ;;  %v2302_v63 = vsel %vm2274_vm11, %v2247_v27, %v1791_v45  ;;  %v8513_v50 = vcombine.low %v8454_v12, %v8457_v34  ;;  %v5901_v27 = vcombine.low %v8389_v54, %v8445_v17  ;;  %v915_v37 = vshrl.u32 %v8516_v56, 16 }
 0x173   : > { %2068 = vrot.lane.b32.xlu1 %v8472_v20, %s6945_s29  ;;  %v888_v39 = vrot.slane %v887_v26, 4  ;;  %v8542_v38 = vsel %vm7160_vm6, %v898_v2, %v902_v9  ;;  %v2975_v11 = vshrl.u32 %v2974_v28, 7 }
 0x174   : > { %v1875_v32 = vpop.permute.xlu0 %1874  ;;  %v917_v26 = vrot.slane %v915_v37, 4 }
 0x175   : > { %v2357_v41 = vsel %vm2329_vm12, %v2302_v63, %v1875_v32  ;;  %v2055_v46 = vpop.permute.xlu1 %2054  ;;  %v2977_v28 = vadd.s32 16, %v2975_v11 }
 0x176   : > { %2008 = vrot.lane.b32.xlu0 %v8484_v44, %s6949_s15  ;;  %v2412_v60 = vsel %vm2384_vm13, %v2357_v41, %v1935_v14  ;;  %v918_v14 = vshll.u32 %v8516_v56, 16 }
 0x177   : > { %1638 = vrot.lane.b32.xlu1 %v8341_v33, %s6944_s27 }
 0x178   : > { %v1995_v30 = vpop.permute.xlu0 %1994  ;;  %v920_v8 = vrot.slane %v918_v14, 5 }
 0x179   : > { %v2467_v13 = vsel %vm2439_vm14, %v2412_v60, %v1995_v30  ;;  %v1625_v61 = vpop.permute.xlu1 %1624  ;;  %v8558_v60 = vld [vmem:[%s7054_s13 + $0x114] sm:$0xf]  ;;  %v8563_v30 = vld [vmem:[%s10515_s2] ss:$0 sm:$0xff] }
 0x17a   : > { %v2522_v33 = vsel %vm2494_vm15, %v2467_v13, %v2055_v46  ;;  %1503 = vrot.lane.b32.xlu0 %v8349_v40, %s6947_s12  ;;  %v8520_v40 = vsel %vm7047_vm3, %v5741_v31, %v1185_v19  ;;  %v906_v46 = vrot.slane %v904_v0, 4  ;;  %v1195_v37 = vrot.slane %v8558_v60, 5 }
 0x17b   : > { %v2693_v45 = vpop.f32.mrf.mxu0  ;;  %6357 = vmatmul.mubr.msk.bf16.gmra.mxu0 %vm2592_vm0, %v2522_v33  ;;  %1806 = vrot.lane.b32.xlu1 %v5874_v16, %s6948_s14  ;;  %v8546_v54 = vcombine.low %v8520_v40, %v8524_v48  ;;  %v320_v16 = vld [vmem:[%s7054_s13 + $0x10c] sm:$0x1] }
 0x17c   : > { %v1490_v21 = vpop.permute.xlu0 %1489  ;;  %6360 = vmatprep.mubr.msk.bf16.mxu0 %vm6950_vm7, %v6941_v1  ;;  %v907_v33 = vor.u32 %v906_v46, %v902_v9  ;;  %v921_v45 = vor.u32 %v920_v8, %v917_v26  ;;  %v1191_v0 = vrot.slane %v320_v16, 5  ;;  %v8595_v46 = vld [vmem:[%s7054_s13 + $0x118] sm:$0xf] }
 0x17d   : > { %v2127_v10 = vsel %vm2082_vm8, %v7826_v58, %v1490_v21  ;;  %v6310_v47 = vpop.f32.mrf.mxu0  ;;  %v1793_v49 = vpop.permute.xlu1 %1792  ;;  %v893_v58 = vsel %vm7160_vm6, %v888_v39, %v892_v6  ;;  %v924_v39 = vshll.u32 %v8558_v60, 16  ;;  %v8571_v21 = vadd.s32 4294967295, %v2975_v11 }
 0x17e   : > { %1722 = vrot.lane.b32.xlu0 %v5847_v15, %s6942_s16  ;;  %v2194_v17 = vsel %vm2164_vm9, %v2127_v10, %v1625_v61  ;;  %v8552_v6 = vcombine.low %v893_v58, %v8542_v38  ;;  %v910_v15 = vshll.u32 %v320_v16, 16  ;;  %v5875_v10 = vcombine.low %v8468_v62, %v893_v58 }
 0x17f   : > { %v2696_v23 = vpop.f32.mrf.mxu0  ;;  %1950 = vrot.lane.b32.xlu1 %v8513_v50, %s6943_s25  ;;  %v1190_v47 = vrot.slane %v1188_v35, 4  ;;  %v5848_v62 = vcombine.low %v8381_v43, %v8454_v12  ;;  %v922_v35 = vrot.slane %v921_v45, 4  ;;  %v8585_v58 = vrot.slane %v924_v39, 5 }
 0x180   : > { %v1709_v63 = vpop.permute.xlu0 %1708  ;;  %v2697_v2 = vadd.f32 %v8563_v30, %v2696_v23  ;;  %vm3035_vm1 = vcmp.ge.s32.totalorder %v8571_v21, 0  ;;  %v5902_v12 = vcombine.low %v8449_v29, %v8520_v40 }
 0x181   : > { %v2249_v32 = vsel %vm2219_vm10, %v2194_v17, %v1709_v63  ;;  %v6311_v19 = vpop.f32.mrf.mxu0  ;;  %v1937_v41 = vpop.permute.xlu1 %1936  ;;  %v908_v17 = vrot.slane %v907_v33, 4  ;;  %v912_v63 = vrot.slane %v910_v15, 5  ;;  %v8602_v16 = vsel %vm7047_vm3, %v1190_v47, %v1191_v0 }
 0x182   : > { %1890 = vrot.lane.b32.xlu0 %v5901_v27, %s6946_s9  ;;  %v2304_v31 = vsel %vm2274_vm11, %v2249_v32, %v1793_v49  ;;  %v5742_v27 = vrot.slane %v8516_v56, 9  ;;  %v2903_v32 = vmax.f32 %v2697_v2, 0.0  ;;  %v938_v33 = vshrl.u32 %v8595_v46, 16 }
 0x183   : > { %2070 = vrot.lane.b32.xlu1 %v8546_v54, %s6945_s29  ;;  %v8618_v40 = vsel %vm7160_vm6, %v908_v17, %v912_v63 }
 0x184   : > { %v1877_v22 = vpop.permute.xlu0 %1876  ;;  %v8608_v26 = vsel %vm7047_vm3, %v5742_v27, %v1195_v37  ;;  %v3260_v15 = vsel %vm3035_vm1, %v2903_v32, 0.0 }
 0x185   : > { %v2359_v13 = vsel %vm2329_vm12, %v2304_v31, %v1877_v22  ;;  %v2057_v61 = vpop.permute.xlu1 %2056  ;;  %v8614_v31 = vadd.s32 4294967295, %v2977_v28  ;;  %v928_v22 = vshrl.u32 %v8558_v60, 16  ;;  %v8635_v39 = vcombine.low %v8602_v16, %v8608_v26 }
 0x186   : > { %2010 = vrot.lane.b32.xlu0 %v8552_v6, %s6949_s15  ;;  %v2414_v49 = vsel %vm2384_vm13, %v2359_v13, %v1937_v41  ;;  %v8592_v41 = vcombine.low %v8490_v59, %v8516_v56 }
 0x187   : > { %1640 = vrot.lane.b32.xlu1 %v8411_v55, %s6944_s27  ;;  %vm3094_vm4 = vcmp.lt.s32.totalorder %v8614_v31, 16  ;;  %v930_v28 = vrot.slane %v928_v22, 4  ;;  %v5876_v22 = vcombine.low %v8542_v38, %v8618_v40 }
 0x188   : > { %v1997_v9 = vpop.permute.xlu0 %1996 }
 0x189   : > { %v2469_v14 = vsel %vm2439_vm14, %v2414_v49, %v1997_v9  ;;  %v1627_v23 = vpop.permute.xlu1 %1626 }
 0x18a   : > { %v2524_v55 = vsel %vm2494_vm15, %v2469_v14, %v2057_v61  ;;  %1505 = vrot.lane.b32.xlu0 %v8417_v25, %s6947_s12  ;;  %v8625_v61 = vsel %vm7160_vm6, %v922_v35, %v8585_v58  ;;  %v1198_v35 = vrot.slane %v8595_v46, 5 }
 0x18b   : > { %v2701_v19 = vpop.f32.mrf.mxu0  ;;  %6361 = vmatmul.mubr.msk.bf16.gmra.mxu0 %vm2592_vm0, %v2524_v55  ;;  %1808 = vrot.lane.b32.xlu1 %v5875_v10, %s6948_s14  ;;  %v8645_v14 = vcombine.low %v8618_v40, %v8625_v61  ;;  %v940_v55 = vrot.slane %v938_v33, 4 }
 0x18c   : > { %v2702_v25 = vadd.f32 %v8563_v30, %v2701_v19  ;;  %v1492_v43 = vpop.permute.xlu0 %1491  ;;  %6364 = vmatprep.mubr.msk.bf16.mxu0 %vm6950_vm7, %v6941_v1 }
 0x18d   : > { %v2130_v8 = vsel %vm2082_vm8, %v7895_v5, %v1492_v43  ;;  %v6314_v11 = vpop.f32.mrf.mxu0  ;;  %v1795_v29 = vpop.permute.xlu1 %1794  ;;  %v934_v5 = vshll.u32 %v8595_v46, 16 }
 0x18e   : > { %v2904_v13 = vmax.f32 %v2702_v25, 0.0  ;;  %1724 = vrot.lane.b32.xlu0 %v5848_v62, %s6942_s16  ;;  %v2196_v10 = vsel %vm2164_vm9, %v2130_v8, %v1627_v23  ;;  %v324_v62 = vld [vmem:[%s7054_s13 + $0x11c] sm:$0x1] }
 0x18f   : > { %v2704_v45 = vpop.f32.mrf.mxu0  ;;  %1952 = vrot.lane.b32.xlu1 %v8592_v41, %s6943_s25  ;;  %v936_v23 = vrot.slane %v934_v5, 5  ;;  %v944_v33 = vshll.u32 %v324_v62, 16 }
 0x190   : > { %v8637_v2 = vpack.c.bf16 %v2904_v13, %v3260_v15  ;;  %v2705_v47 = vadd.f32 %v8563_v30, %v2704_v45  ;;  %v1711_v49 = vpop.permute.xlu0 %1710  ;;  %v931_v13 = vor.u32 %v930_v28, %v8585_v58  ;;  %v5849_v58 = vcombine.low %v8457_v34, %v8490_v59 }
 0x191   : > { %v2251_v9 = vsel %vm2219_vm10, %v2196_v10, %v1711_v49  ;;  %v6315_v0 = vpop.f32.mrf.mxu0  ;;  %v1939_v27 = vpop.permute.xlu1 %1938  ;;  %v941_v5 = vor.u32 %v940_v55, %v936_v23  ;;  %v1200_v10 = vrot.slane %v1198_v35, 4 }
 0x192   : > { %v2905_v17 = vmax.f32 %v2705_v47, 0.0  ;;  %1892 = vrot.lane.b32.xlu0 %v5902_v12, %s6946_s9  ;;  %v3364_v63 = vshll.u32 %v8637_v2, 16  ;;  %v2306_v19 = vsel %vm2274_vm11, %v2251_v9, %v1795_v29  ;;  %v1197_v29 = vrot.slane %v1195_v37, 4 }
 0x193   : > { %2072 = vrot.lane.b32.xlu1 %v8635_v39, %s6945_s29  ;;  %v3362_v45 = vshrl.u32 %v8637_v2, 16  ;;  %v1201_v47 = vrot.slane %v324_v62, 5 }
 0x194   : > { %v3262_v32 = vsel %vm3094_vm4, %v2905_v17, 0.0  ;;  %v1879_v25 = vpop.permute.xlu0 %1878  ;;  %v3366_v11 = vrot.slane %v3364_v63, 1  ;;  %v942_v17 = vrot.slane %v941_v5, 4  ;;  %v946_v63 = vrot.slane %v944_v33, 5 }
 0x195   : > { %v8656_v43 = vpack.c.bf16 %v3262_v32, %v3262_v32  ;;  %v2361_v12 = vsel %vm2329_vm12, %v2306_v19, %v1879_v25  ;;  %v2059_v8 = vpop.permute.xlu1 %2058  ;;  %v8688_v55 = vsel %vm7047_vm3, %v1197_v29, %v1198_v35  ;;  %v8692_v62 = vsel %vm7047_vm3, %v1200_v10, %v1201_v47  ;;  %v8699_v32 = vld [vmem:[%s7054_s13 + $0x120] sm:$0xf]  ;;  %v8702_v19 = vld [vmem:[%s7054_s13 + $0x124] sm:$0xf] }
 0x196   : > { %2012 = vrot.lane.b32.xlu0 %v8645_v14, %s6949_s15  ;;  %v2416_v38 = vsel %vm2384_vm13, %v2361_v12, %v1939_v27  ;;  %v3367_v37 = vor.u32 %v3366_v11, %v3362_v45  ;;  %v932_v27 = vrot.slane %v931_v13, 4  ;;  %v8717_v13 = vcombine.low %v8688_v55, %v8692_v62 }
 0x197   : > { %v3369_v15 = vshll.u32 %v8656_v43, 16  ;;  %1642 = vrot.lane.b32.xlu1 %v8472_v20, %s6944_s27  ;;  %v8676_v20 = vcombine.low %v8558_v60, %v8595_v46  ;;  %v1207_v33 = vshll.u32 %v8699_v32, 16 }
 0x198   : > { %v1999_v40 = vpop.permute.xlu0 %1998  ;;  %v937_v11 = vsel %vm7160_vm6, %v932_v27, %v936_v23 }
 0x199   : > { %v3371_v49 = vrot.slane %v3369_v15, 1  ;;  %v2471_v9 = vsel %vm2439_vm14, %v2416_v38, %v1999_v40  ;;  %v1629_v0 = vpop.permute.xlu1 %1628 }
 0x19a   : > { %v2526_v28 = vsel %vm2494_vm15, %v2471_v9, %v2059_v8  ;;  %1507 = vrot.lane.b32.xlu0 %v8484_v44, %s6947_s12  ;;  %v5903_v8 = vcombine.low %v8524_v48, %v8602_v16  ;;  %v1213_v48 = vshll.u32 %v8702_v19, 16  ;;  %v1217_v16 = vshrl.u32 %v8702_v19, 16 }
 0x19b   : > { %v2709_v34 = vpop.f32.mrf.mxu0  ;;  %6365 = vmatmul.mubr.msk.bf16.gmra.mxu0 %vm2592_vm0, %v2526_v28  ;;  %v8683_v59 = vsel %vm3348_vm5, %v3367_v37, %v3371_v49  ;;  %1810 = vrot.lane.b32.xlu1 %v5876_v22, %s6948_s14  ;;  %v8713_v22 = vsel %vm7160_vm6, %v942_v17, %v946_v63  ;;  %v1209_v49 = vrot.slane %v1207_v33, 5  ;;  %v8737_v17 = vld [vmem:[%s7054_s13 + $0x128] sm:$0xf]  ;;  %v1243_v63 = vrot.slane %v8702_v19, 5 }
 0x19c   : > { %6415 = vmatmul.mubr.msk.bf16.vlgmr.msra.gmra.mxu1 %vm2082_vm8, %v8683_v59  ;;  %v1494_v44 = vpop.permute.xlu0 %1493  ;;  %6368 = vmatprep.mubr.msk.bf16.mxu0 %vm6950_vm7, %v6941_v1  ;;  %v2710_v23 = vadd.f32 %v8563_v30, %v2709_v34  ;;  %v8731_v40 = vcombine.low %v937_v11, %v8713_v22  ;;  %v1215_v9 = vrot.slane %v1213_v48, 5  ;;  %v1219_v37 = vrot.slane %v1217_v16, 4 }
 0x19d   : > { %v2133_v25 = vsel %vm2082_vm8, %v7961_v24, %v1494_v44  ;;  %v6318_v35 = vpop.f32.mrf.mxu0  ;;  %v1797_v12 = vpop.permute.xlu1 %1796  ;;  %v1204_v24 = vshrl.u32 %v8699_v32, 16 }
 0x19e   : > { %1726 = vrot.lane.b32.xlu0 %v5849_v58, %s6942_s16  ;;  %v2198_v29 = vsel %vm2164_vm9, %v2133_v25, %v1629_v0  ;;  %v2906_v0 = vmax.f32 %v2710_v23, 0.0  ;;  %v5877_v35 = vcombine.low %v8625_v61, %v937_v11  ;;  %v1245_v23 = vrot.slane %v1243_v63, 4 }
 0x19f   : > { %v2712_v5 = vpop.f32.mrf.mxu0  ;;  %1954 = vrot.lane.b32.xlu1 %v8676_v20, %s6943_s25  ;;  %v1206_v58 = vrot.slane %v1204_v24, 4  ;;  %v5743_v24 = vrot.slane %v8699_v32, 9 }
 0x1a0   : > { %v1713_v15 = vpop.permute.xlu0 %1712  ;;  %v2713_v45 = vadd.f32 %v8563_v30, %v2712_v5  ;;  %v1220_v5 = vor.u32 %v1219_v37, %v1215_v9  ;;  %v3263_v33 = vsel %vm3035_vm1, %v2906_v0, 0.0  ;;  %v8767_v37 = vld [vmem:[%s7054_s13 + $0x130] sm:$0xf] }
 0x1a1   : > { %v2253_v10 = vsel %vm2219_vm10, %v2198_v29, %v1713_v15  ;;  %v6319_v47 = vpop.f32.mrf.mxu0  ;;  %v1941_v38 = vpop.permute.xlu1 %1940  ;;  %v1246_v29 = vrot.slane %v8737_v17, 5 }
 0x1a2   : > { %1894 = vrot.lane.b32.xlu0 %v5903_v8, %s6946_s9  ;;  %v2308_v28 = vsel %vm2274_vm11, %v2253_v10, %v1797_v12  ;;  %v2907_v34 = vmax.f32 %v2713_v45, 0.0  ;;  %v1210_v8 = vor.u32 %v1209_v49, %v1206_v58  ;;  %v1223_v12 = vshll.u32 %v8737_v17, 16 }
 0x1a3   : > { %2074 = vrot.lane.b32.xlu1 %v8717_v13, %s6945_s29  ;;  %v5850_v45 = vcombine.low %v8516_v56, %v8558_v60  ;;  %v5907_v47 = vcombine.low %v8699_v32, %v8702_v19  ;;  %v1221_v58 = vrot.slane %v1220_v5, 4  ;;  %v8772_v56 = vsel %vm7047_vm3, %v5743_v24, %v1243_v63 }
 0x1a4   : > { %v1881_v27 = vpop.permute.xlu0 %1880  ;;  %v8752_v61 = vpack.c.bf16 %v2907_v34, %v3263_v33  ;;  %v8764_v49 = vrot.slane %v1223_v12, 5  ;;  %v8778_v60 = vsel %vm7047_vm3, %v1245_v23, %v1246_v29  ;;  %v1255_v5 = vshll.u32 %v8767_v37, 16 }
 0x1a5   : > { %v2363_v44 = vsel %vm2329_vm12, %v2308_v28, %v1881_v27  ;;  %v2061_v25 = vpop.permute.xlu1 %2060  ;;  %v5913_v33 = vcombine.low %v8772_v56, %v8778_v60 }
 0x1a6   : > { %2014 = vrot.lane.b32.xlu0 %v8731_v40, %s6949_s15  ;;  %v2418_v48 = vsel %vm2384_vm13, %v2363_v44, %v1941_v38  ;;  %v1211_v38 = vrot.slane %v1210_v8, 4  ;;  %v3376_v44 = vshll.u32 %v8752_v61, 16  ;;  %v1252_v8 = vshrl.u32 %v8767_v37, 16 }
 0x1a7   : > { %1644 = vrot.lane.b32.xlu1 %v8546_v54, %s6944_s27  ;;  %v8797_v24 = vsel %vm7160_vm6, %v1221_v58, %v8764_v49  ;;  %v3990_v21 = vrot.slane %v8752_v61, 1 }
 0x1a8   : > { %v2001_v16 = vpop.permute.xlu0 %2000 }
 0x1a9   : > { %v2473_v54 = vsel %vm2439_vm14, %v2418_v48, %v2001_v16  ;;  %v1631_v11 = vpop.permute.xlu1 %1630 }
 0x1aa   : > { %v2528_v15 = vsel %vm2494_vm15, %v2473_v54, %v2061_v25  ;;  %1509 = vrot.lane.b32.xlu0 %v8552_v6, %s6947_s12  ;;  %v1227_v25 = vshrl.u32 %v8737_v17, 16 }
 0x1ab   : > { %v2717_v10 = vpop.f32.mrf.mxu0  ;;  %6369 = vmatmul.mubr.msk.bf16.gmra.mxu0 %vm2592_vm0, %v2528_v15  ;;  %1812 = vrot.lane.b32.xlu1 %v5877_v35, %s6948_s14  ;;  %v5904_v35 = vcombine.low %v8608_v26, %v8688_v55  ;;  %v3378_v15 = vrot.slane %v3376_v44, 1 }
 0x1ac   : > { %v2718_v0 = vadd.f32 %v8563_v30, %v2717_v10  ;;  %v1496_v6 = vpop.permute.xlu0 %1495  ;;  %6372 = vmatprep.mubr.msk.bf16.mxu0 %vm6950_vm7, %v6941_v1 }
 0x1ad   : > { %v2136_v28 = vsel %vm2082_vm8, %v8026_v42, %v1496_v6  ;;  %v6322_v27 = vpop.f32.mrf.mxu0  ;;  %v1799_v34 = vpop.permute.xlu1 %1798  ;;  %v1216_v42 = vsel %vm7160_vm6, %v1211_v38, %v1215_v9  ;;  %v1257_v38 = vrot.slane %v1255_v5, 5  ;;  %v8814_v6 = vld [vmem:[%s7054_s13 + $0x134] sm:$0xf] }
 0x1ae   : > { %v2908_v63 = vmax.f32 %v2718_v0, 0.0  ;;  %1728 = vrot.lane.b32.xlu0 %v5850_v45, %s6942_s16  ;;  %v2200_v55 = vsel %vm2164_vm9, %v2136_v28, %v1631_v11  ;;  %v1229_v45 = vrot.slane %v1227_v25, 4  ;;  %v5910_v10 = vcombine.low %v1216_v42, %v8797_v24  ;;  %v328_v0 = vld [vmem:[%s7054_s13 + $0x12c] sm:$0x1] }
 0x1af   : > { %v2720_v12 = vpop.f32.mrf.mxu0  ;;  %1956 = vrot.lane.b32.xlu1 %v5907_v47, %s6943_s25  ;;  %v1254_v47 = vrot.slane %v1252_v8, 4  ;;  %v3374_v11 = vshrl.u32 %v8752_v61, 16  ;;  %v1233_v5 = vshll.u32 %v328_v0, 16 }
 0x1b0   : > { %v3265_v26 = vsel %vm3094_vm4, %v2908_v63, 0.0  ;;  %v1715_v48 = vpop.permute.xlu0 %1714  ;;  %v1230_v8 = vor.u32 %v1229_v45, %v8764_v49  ;;  %v1291_v45 = vrot.slane %v8814_v6, 5 }
 0x1b1   : > { %v8804_v16 = vpack.c.bf16 %v3265_v26, %v3265_v26  ;;  %v2255_v9 = vsel %vm2219_vm10, %v2200_v55, %v1715_v48  ;;  %v6323_v23 = vpop.f32.mrf.mxu0  ;;  %v1943_v54 = vpop.permute.xlu1 %1942  ;;  %v3379_v63 = vor.u32 %v3378_v15, %v3374_v11  ;;  %v1258_v26 = vor.u32 %v1257_v38, %v1254_v47 }
 0x1b2   : > { %1896 = vrot.lane.b32.xlu0 %v5904_v35, %s6946_s9  ;;  %v2310_v28 = vsel %vm2274_vm11, %v2255_v9, %v1799_v34  ;;  %v2721_v55 = vadd.f32 %v8563_v30, %v2720_v12  ;;  %v5878_v34 = vcombine.low %v8713_v22, %v1216_v42  ;;  %v1248_v9 = vrot.slane %v1246_v29, 4 }
 0x1b3   : > { %v3381_v58 = vshll.u32 %v8804_v16, 16  ;;  %2076 = vrot.lane.b32.xlu1 %v5913_v33, %s6945_s29  ;;  %v1261_v33 = vshll.u32 %v8814_v6, 16  ;;  %v1249_v15 = vrot.slane %v328_v0, 5  ;;  %v5744_v12 = vrot.slane %v8767_v37, 9 }
 0x1b4   : > { %v1883_v27 = vpop.permute.xlu0 %1882  ;;  %v1231_v22 = vrot.slane %v1230_v8, 4  ;;  %v1235_v42 = vrot.slane %v1233_v5, 5 }
 0x1b5   : > { %v3383_v44 = vrot.slane %v3381_v58, 1  ;;  %v2365_v25 = vsel %vm2329_vm12, %v2310_v28, %v1883_v27  ;;  %v2063_v35 = vpop.permute.xlu1 %2062  ;;  %v8841_v38 = vrot.slane %v1261_v33, 5  ;;  %v2909_v58 = vmax.f32 %v2721_v55, 0.0  ;;  %v8859_v27 = vld [vmem:[%s7054_s13 + $0x138] sm:$0xf] }
 0x1b6   : > { %2016 = vrot.lane.b32.xlu0 %v5910_v10, %s6949_s15  ;;  %v2420_v49 = vsel %vm2384_vm13, %v2365_v25, %v1943_v54  ;;  %v1259_v54 = vrot.slane %v1258_v26, 4  ;;  %v8850_v28 = vsel %vm7047_vm3, %v1248_v9, %v1249_v15  ;;  %v1236_v8 = vsel %vm7160_vm6, %v1231_v22, %v1235_v42 }
 0x1b7   : > { %v8823_v48 = vsel %vm3348_vm5, %v3379_v63, %v3383_v44  ;;  %1646 = vrot.lane.b32.xlu1 %v8635_v39, %s6944_s27  ;;  %v5851_v39 = vcombine.low %v8595_v46, %v8699_v32  ;;  %v5908_v46 = vcombine.low %v8737_v17, %v8767_v37  ;;  %v5905_v63 = vcombine.low %v8692_v62, %v8772_v56 }
 0x1b8   : > { %6418 = vmatprep.mubr.msk.bf16.mxu1 %vm2082_vm8, %v8823_v48  ;;  %v2003_v23 = vpop.permute.xlu0 %2002  ;;  %v1264_v5 = vsel %vm7160_vm6, %v1259_v54, %v8841_v38  ;;  %v1265_v26 = vshrl.u32 %v8814_v6, 16  ;;  %v1275_v56 = vshrl.u32 %v8859_v27, 16  ;;  %v1271_v55 = vshll.u32 %v8859_v27, 16 }
 0x1b9   : > { %v2475_v10 = vsel %vm2439_vm14, %v2420_v49, %v2003_v23  ;;  %v1633_v47 = vpop.permute.xlu1 %1632  ;;  %v5911_v22 = vcombine.low %v1236_v8, %v1264_v5 }
 0x1ba   : > { %v2530_v29 = vsel %vm2494_vm15, %v2475_v10, %v2063_v35  ;;  %1511 = vrot.lane.b32.xlu0 %v8645_v14, %s6947_s12  ;;  %v1292_v14 = vsel %vm7047_vm3, %v5744_v12, %v1291_v45  ;;  %v8886_v54 = vrot.slane %v1271_v55, 5  ;;  %v1293_v55 = vrot.slane %v1291_v45, 4 }
 0x1bb   : > { %v2725_v11 = vpop.f32.mrf.mxu0  ;;  %6373 = vmatmul.mubr.msk.bf16.gmra.mxu0 %vm2592_vm0, %v2530_v29  ;;  %1814 = vrot.lane.b32.xlu1 %v5878_v34, %s6948_s14  ;;  %v5914_v62 = vcombine.low %v8850_v28, %v1292_v14  ;;  %v1267_v29 = vrot.slane %v1265_v26, 4 }
 0x1bc   : > { %v2726_v32 = vadd.f32 %v8563_v30, %v2725_v11  ;;  %v1498_v0 = vpop.permute.xlu0 %1497  ;;  %6376 = vmatprep.mubr.msk.bf16.mxu0 %vm6950_vm7, %v6941_v1 }
 0x1bd   : > { %v2139_v37 = vsel %vm2082_vm8, %v8105_v51, %v1498_v0  ;;  %v6326_v44 = vpop.f32.mrf.mxu0  ;;  %v1801_v25 = vpop.permute.xlu1 %1800  ;;  %v3266_v51 = vsel %vm3035_vm1, %v2909_v58, 0.0  ;;  %v1294_v0 = vrot.slane %v8859_v27, 5  ;;  %v1268_v5 = vor.u32 %v1267_v29, %v8841_v38 }
 0x1be   : > { %v2910_v35 = vmax.f32 %v2726_v32, 0.0  ;;  %1730 = vrot.lane.b32.xlu0 %v5851_v39, %s6942_s16  ;;  %v2202_v9 = vsel %vm2164_vm9, %v2139_v37, %v1633_v47  ;;  %v1277_v47 = vrot.slane %v1275_v56, 4  ;;  %v332_v32 = vld [vmem:[%s7054_s13 + $0x13c] sm:$0x1] }
 0x1bf   : > { %v2728_v33 = vpop.f32.mrf.mxu0  ;;  %1958 = vrot.lane.b32.xlu1 %v5908_v46, %s6943_s25 }
 0x1c0   : > { %v8878_v34 = vpack.c.bf16 %v2910_v35, %v3266_v51  ;;  %v2729_v49 = vadd.f32 %v8563_v30, %v2728_v33  ;;  %v1717_v23 = vpop.permute.xlu0 %1716  ;;  %v5879_v35 = vcombine.low %v8797_v24, %v1236_v8  ;;  %v1278_v51 = vor.u32 %v1277_v47, %v8886_v54 }
 0x1c1   : > { %v2257_v15 = vsel %vm2219_vm10, %v2202_v9, %v1717_v23  ;;  %v6327_v12 = vpop.f32.mrf.mxu0  ;;  %v1945_v10 = vpop.permute.xlu1 %1944  ;;  %v1281_v33 = vshll.u32 %v332_v32, 16  ;;  %v1296_v9 = vrot.slane %v1294_v0, 4  ;;  %v1297_v24 = vrot.slane %v332_v32, 5 }
 0x1c2   : > { %v2911_v39 = vmax.f32 %v2729_v49, 0.0  ;;  %1898 = vrot.lane.b32.xlu0 %v5905_v63, %s6946_s9  ;;  %v3388_v42 = vshll.u32 %v8878_v34, 16  ;;  %v2312_v11 = vsel %vm2274_vm11, %v2257_v15, %v1801_v25  ;;  %v3386_v25 = vshrl.u32 %v8878_v34, 16 }
 0x1c3   : > { %2078 = vrot.lane.b32.xlu1 %v5914_v62, %s6945_s29  ;;  %v5852_v15 = vcombine.low %v8702_v19, %v8737_v17  ;;  %v5909_v12 = vcombine.low %v8814_v6, %v8859_v27  ;;  %v1283_v29 = vrot.slane %v1281_v33, 5  ;;  %v1295_v19 = vsel %vm7047_vm3, %v1293_v55, %v1294_v0 }
 0x1c4   : > { %v3268_v58 = vsel %vm3094_vm4, %v2911_v39, 0.0  ;;  %v1885_v46 = vpop.permute.xlu0 %1884  ;;  %v3390_v63 = vrot.slane %v3388_v42, 1  ;;  %v1269_v39 = vrot.slane %v1268_v5, 4  ;;  %v1298_v17 = vsel %vm7047_vm3, %v1296_v9, %v1297_v24 }
 0x1c5   : > { %v8893_v14 = vpack.c.bf16 %v3268_v58, %v3268_v58  ;;  %v2367_v37 = vsel %vm2329_vm12, %v2312_v11, %v1885_v46  ;;  %v2065_v44 = vpop.permute.xlu1 %2064  ;;  %v5906_v47 = vcombine.low %v8778_v60, %v8850_v28  ;;  %v5915_v46 = vcombine.low %v1295_v19, %v1298_v17 }
 0x1c6   : > { %2018 = vrot.lane.b32.xlu0 %v5911_v22, %s6949_s15  ;;  %v2422_v62 = vsel %vm2384_vm13, %v2367_v37, %v1945_v10  ;;  %v3391_v49 = vor.u32 %v3390_v63, %v3386_v25  ;;  %v1279_v22 = vrot.slane %v1278_v51, 4  ;;  %v1274_v3 = vsel %vm7160_vm6, %v1269_v39, %v8886_v54 }
 0x1c7   : > { %v3393_v26 = vshll.u32 %v8893_v14, 16  ;;  %1648 = vrot.lane.b32.xlu1 %v8717_v13, %s6944_s27  ;;  %vm3983_vm3 = vcmask 1046528   ;;  %s10459_s27 = scalar_lea.hbm %s10518_s5, %s6108_s24 }
 0x1c8   : > { %v2005_v56 = vpop.permute.xlu0 %2004  ;;  %v1284_v11 = vsel %vm7160_vm6, %v1279_v22, %v1283_v29 }
 0x1c9   : > { %v3395_v8 = vrot.slane %v3393_v26, 1  ;;  %v2477_v38 = vsel %vm2439_vm14, %v2422_v62, %v2005_v56  ;;  %v1635_v23 = vpop.permute.xlu1 %1634  ;;  %v5912_v63 = vcombine.low %v1274_v3, %v1284_v11 }
 0x1ca   : > { %v2532_v13 = vsel %vm2494_vm15, %v2477_v38, %v2065_v44  ;;  %1513 = vrot.lane.b32.xlu0 %v8731_v40, %s6947_s12 }
 0x1cb   : > { %v2733_v10 = vpop.f32.mrf.mxu0  ;;  %6377 = vmatmul.mubr.msk.bf16.gmra.mxu0 %vm2592_vm0, %v2532_v13  ;;  %v8917_v45 = vsel %vm3348_vm5, %v3391_v49, %v3395_v8  ;;  %1816 = vrot.lane.b32.xlu1 %v5879_v35, %s6948_s14 }
 0x1cc   : > { %6419 = vmatmul.mubr.msk.bf16.gmra.mxu1 %vm2082_vm8, %v8917_v45  ;;  %v1500_v40 = vpop.permute.xlu0 %1499  ;;  %6380 = vmatprep.mubr.msk.bf16.mxu0 %vm6950_vm7, %v6941_v1  ;;  %v2734_v32 = vadd.f32 %v8563_v30, %v2733_v10 }
 0x1cd   : > { %v2142_v6 = vsel %vm2082_vm8, %v8175_v52, %v1500_v40  ;;  %v6330_v27 = vpop.f32.mrf.mxu0  ;;  %v1803_v42 = vpop.permute.xlu1 %1802  ;;  %v6018_v52 = vld [vmem:[%s10516_s3 + $0x10] sm:$0xf] }
 0x1ce   : > { %1732 = vrot.lane.b32.xlu0 %v5852_v15, %s6942_s16  ;;  %v2204_v0 = vsel %vm2164_vm9, %v2142_v6, %v1635_v23  ;;  %6724 = vmatprep.subr.msk.bf16.mxu0 %vm2647_vm2, %v6018_v52  ;;  %v8946_v28 = vsel %vm2647_vm2, %v6018_v52, 0  ;;  %v2912_v35 = vmax.f32 %v2734_v32, 0.0 }
 0x1cf   : > { %v2736_v58 = vpop.f32.mrf.mxu0  ;;  %1960 = vrot.lane.b32.xlu1 %v5909_v12, %s6943_s25  ;;  %6549 = vmatpush3.bf16.msra.mxu0 %v8946_v28  ;;  %s6953_s25 = smov [#allocation2]  }
 0x1d0   : > { %v1719_v60 = vpop.permute.xlu0 %1718  ;;  %v2737_v54 = vadd.f32 %v8563_v30, %v2736_v58  ;;  %v3269_v62 = vsel %vm3035_vm1, %v2912_v35, 0.0 }
 0x1d1   : > { %v2259_v57 = vsel %vm2219_vm10, %v2204_v0, %v1719_v60  ;;  %v6331_v37 = vpop.f32.mrf.mxu0  ;;  %v1947_v44 = vpop.permute.xlu1 %1946 }
 0x1d2   : > { %1900 = vrot.lane.b32.xlu0 %v5906_v47, %s6946_s9  ;;  %v2314_v5 = vsel %vm2274_vm11, %v2259_v57, %v1803_v42  ;;  %v2913_v25 = vmax.f32 %v2737_v54, 0.0 }
 0x1d3   : > { %2080 = vrot.lane.b32.xlu1 %v5915_v46, %s6945_s29  ;;  %s6867_s29 = sshll.u32 %s6953_s25, 4  ;;  %s6868_s29 = int_to_ptr.vmem [resolvable:$false] %s6867_s29 }
 0x1d4   : > { %v1887_v26 = vpop.permute.xlu0 %1886  ;;  %v8959_v9 = vpack.c.bf16 %v2913_v25, %v3269_v62  ;;  %s6869_s9 = scalar_lea.vmem %s6868_s29, 8192 }
 0x1d5   : > { %v2369_v51 = vsel %vm2329_vm12, %v2314_v5, %v1887_v26  ;;  %v2067_v33 = vpop.permute.xlu1 %2066 }
 0x1d6   : > { %2020 = vrot.lane.b32.xlu0 %v5912_v63, %s6949_s15  ;;  %v2424_v56 = vsel %vm2384_vm13, %v2369_v51, %v1947_v44  ;;  %v3400_v39 = vshll.u32 %v8959_v9, 16  ;;  %v3398_v3 = vshrl.u32 %v8959_v9, 16  ;;  %s5723_s15 = sshll.u32 %s239_s10, 8 }
 0x1d7   : > { %s10269_s17 = scalar_lea.vmem [#allocation2], %s5723_s15 }
 0x1d8   : > { %v2007_v55 = vpop.permute.xlu0 %2006  ;;  %v3402_v58 = vrot.slane %v3400_v39, 1  ;;  %s5636_s7 = sshll.u32 %s10269_s17, 4  ;;  %s10462_s7 = int_to_ptr.vmem [resolvable:$true] %s5636_s7 }
 0x1d9   : > { %v2479_v24 = vsel %vm2439_vm14, %v2424_v56, %v2007_v55  ;;  %v1637_v8 = vpop.permute.xlu1 %1636  ;;  %s6863_s16 = scalar_lea.vmem %s10462_s7, 4096  ;;  %p6870_p1 = scmp.lt.s32.totalorder %s10462_s7, %s6868_s29 }
 0x1da   : > { %v2534_v38 = vsel %vm2494_vm15, %v2479_v24, %v2067_v33  ;;  %v3403_v0 = vor.u32 %v3402_v58, %v3398_v3  ;;  %p6864_p12 = scmp.ne.s32.totalorder %s10462_s7, %s6863_s16  ;;  %p6871_p2 = scmp.lt.s32.totalorder %s6869_s9, %s6863_s16 }
 0x1db   : > { %v2741_v49 = vpop.f32.mrf.mxu0  ;;  %6381 = vmatmul.mubr.msk.bf16.gmra.mxu0 %vm2592_vm0, %v2534_v38 }
 0x1dc   : > { %v2742_v23 = vadd.f32 %v8563_v30, %v2741_v49  ;;  %v1502_v13 = vpop.permute.xlu0 %1501  ;;  %6384 = vmatprep.mubr.msk.bf16.mxu0 %vm6950_vm7, %v6941_v1  ;;  %p6865_p13 = pnand %p6864_p12, %p7025_p4  ;;  %p6872_p3 = por %p6871_p2, %p6870_p1 }
 0x1dd   : > { %v2145_v15 = vsel %vm2082_vm8, %v8238_v36, %v1502_v13  ;;  %v6334_v12 = vpop.f32.mrf.mxu0  ;;  %v1805_v10 = vpop.permute.xlu1 %1804 }
 0x1de   : > { %v2914_v22 = vmax.f32 %v2742_v23, 0.0  ;;  %v2206_v19 = vsel %vm2164_vm9, %v2145_v15, %v1637_v8  ;;  %p6866_p0 = pneg %p6865_p13 }
 0x1df   : > { %v2744_v29 = vpop.f32.mrf.mxu0 }
 0x1e0   : > { %v3271_v40 = vsel %vm3094_vm4, %v2914_v22, 0.0  ;;  %v1721_v17 = vpop.permute.xlu0 %1720  ;;  %v2745_v54 = vadd.f32 %v8563_v30, %v2744_v29  ;;  %p6873_p5 = pnand %p6872_p3, %p6866_p0 }
 0x1e1   : > { %v8973_v6 = vpack.c.bf16 %v3271_v40, %v3271_v40  ;;  %v2261_v27 = vsel %vm2219_vm10, %v2206_v19, %v1721_v17  ;;  %v6335_v42 = vpop.f32.mrf.mxu0  ;;  %v1949_v47 = vpop.permute.xlu1 %1948 }
 0x1e2   : > { %v2316_v11 = vsel %vm2274_vm11, %v2261_v27, %v1805_v10  ;;  %v2915_v26 = vmax.f32 %v2745_v54, 0.0 }
 0x1e3   : > { %v3405_v36 = vshll.u32 %v8973_v6, 16 }
 0x1e4   : > { %v1889_v46 = vpop.permute.xlu0 %1888  ;;  %v3272_v8 = vsel %vm3035_vm1, %v2915_v26, 0.0 }
 0x1e5   : > { %v3407_v52 = vrot.slane %v3405_v36, 1  ;;  %v2371_v32 = vsel %vm2329_vm12, %v2316_v11, %v1889_v46  ;;  %v2069_v60 = vpop.permute.xlu1 %2068 }
 0x1e6   : > { %v2426_v37 = vsel %vm2384_vm13, %v2371_v32, %v1949_v47 }
 0x1e7   : > { %v8982_v57 = vsel %vm3348_vm5, %v3403_v0, %v3407_v52 }
 0x1e8   : > { %6422 = vmatprep.mubr.msk.bf16.mxu1 %vm2082_vm8, %v8982_v57  ;;  %v2009_v44 = vpop.permute.xlu0 %2008 }
 0x1e9   : > { %v2481_v63 = vsel %vm2439_vm14, %v2426_v37, %v2009_v44  ;;  %v1639_v35 = vpop.permute.xlu1 %1638 }
 0x1ea   : > { %v2536_v5 = vsel %vm2494_vm15, %v2481_v63, %v2069_v60 }
 0x1eb   : > { %v2749_v25 = vpop.f32.mrf.mxu0  ;;  %6385 = vmatmul.mubr.msk.bf16.gmra.mxu0 %vm2592_vm0, %v2536_v5 }
 0x1ec   : > { %v2750_v51 = vadd.f32 %v8563_v30, %v2749_v25  ;;  %v1504_v33 = vpop.permute.xlu0 %1503  ;;  %6388 = vmatprep.mubr.msk.bf16.mxu0 %vm6950_vm7, %v6941_v1 }
 0x1ed   : > { %v2148_v62 = vsel %vm2082_vm8, %v8310_v4, %v1504_v33  ;;  %v6338_v56 = vpop.f32.mrf.mxu0  ;;  %v1807_v55 = vpop.permute.xlu1 %1806 }
 0x1ee   : > { %v2916_v24 = vmax.f32 %v2750_v51, 0.0  ;;  %v2208_v23 = vsel %vm2164_vm9, %v2148_v62, %v1639_v35 }
 0x1ef   : > { %v2752_v38 = vpop.f32.mrf.mxu0 }
 0x1f0   : > { %v8997_v49 = vpack.c.bf16 %v2916_v24, %v3272_v8  ;;  %v2753_v13 = vadd.f32 %v8563_v30, %v2752_v38  ;;  %v1723_v15 = vpop.permute.xlu0 %1722 }
 0x1f1   : > { %v2263_v12 = vsel %vm2219_vm10, %v2208_v23, %v1723_v15  ;;  %v6339_v10 = vpop.f32.mrf.mxu0  ;;  %v1951_v39 = vpop.permute.xlu1 %1950 }
 0x1f2   : > { %v2917_v22 = vmax.f32 %v2753_v13, 0.0  ;;  %v3412_v4 = vshll.u32 %v8997_v49, 16  ;;  %v2318_v40 = vsel %vm2274_vm11, %v2263_v12, %v1807_v55  ;;  %v3410_v36 = vshrl.u32 %v8997_v49, 16 }
 0x1f4   : > { %v3274_v29 = vsel %vm3094_vm4, %v2917_v22, 0.0  ;;  %v1891_v19 = vpop.permute.xlu0 %1890  ;;  %v3414_v47 = vrot.slane %v3412_v4, 1 }
 0x1f5   : > { %v9006_v17 = vpack.c.bf16 %v3274_v29, %v3274_v29  ;;  %v2373_v27 = vsel %vm2329_vm12, %v2318_v40, %v1891_v19  ;;  %v2071_v42 = vpop.permute.xlu1 %2070 }
 0x1f6   : > { %v2428_v3 = vsel %vm2384_vm13, %v2373_v27, %v1951_v39  ;;  %v3415_v32 = vor.u32 %v3414_v47, %v3410_v36 }
 0x1f7   : > { %v3417_v58 = vshll.u32 %v9006_v17, 16 }
 0x1f8   : > { %v2011_v11 = vpop.permute.xlu0 %2010 }
 0x1f9   : > { %v3419_v46 = vrot.slane %v3417_v58, 1  ;;  %v2483_v52 = vsel %vm2439_vm14, %v2428_v3, %v2011_v11  ;;  %v1641_v0 = vpop.permute.xlu1 %1640 }
 0x1fa   : > { %v2538_v60 = vsel %vm2494_vm15, %v2483_v52, %v2071_v42 }
 0x1fb   : > { %v2757_v54 = vpop.f32.mrf.mxu0  ;;  %6389 = vmatmul.mubr.msk.bf16.gmra.mxu0 %vm2592_vm0, %v2538_v60  ;;  %v9016_v37 = vsel %vm3348_vm5, %v3415_v32, %v3419_v46 }
 0x1fc   : > { %6423 = vmatmul.mubr.msk.bf16.gmra.mxu1 %vm2082_vm8, %v9016_v37  ;;  %v1506_v44 = vpop.permute.xlu0 %1505  ;;  %6392 = vmatprep.mubr.msk.bf16.mxu0 %vm6950_vm7, %v6941_v1  ;;  %v2758_v25 = vadd.f32 %v8563_v30, %v2757_v54 }
 0x1fd   : > { %v2151_v63 = vsel %vm2082_vm8, %v8376_v18, %v1506_v44  ;;  %v6342_v35 = vpop.f32.mrf.mxu0  ;;  %v1809_v5 = vpop.permute.xlu1 %1808 }
 0x1fe   : > { %v2210_v51 = vsel %vm2164_vm9, %v2151_v63, %v1641_v0  ;;  %v2918_v8 = vmax.f32 %v2758_v25, 0.0 }
 0x1ff   : > { %v2760_v26 = vpop.f32.mrf.mxu0 }
 0x200   : > { %v1725_v33 = vpop.permute.xlu0 %1724  ;;  %v2761_v62 = vadd.f32 %v8563_v30, %v2760_v26  ;;  %v3275_v12 = vsel %vm3035_vm1, %v2918_v8, 0.0 }
 0x201   : > { %v2265_v56 = vsel %vm2219_vm10, %v2210_v51, %v1725_v33  ;;  %v6343_v55 = vpop.f32.mrf.mxu0  ;;  %v1953_v24 = vpop.permute.xlu1 %1952 }
 0x202   : > { %v2320_v38 = vsel %vm2274_vm11, %v2265_v56, %v1809_v5  ;;  %v2919_v13 = vmax.f32 %v2761_v62, 0.0 }
 0x204   : > { %v1893_v23 = vpop.permute.xlu0 %1892  ;;  %v9033_v22 = vpack.c.bf16 %v2919_v13, %v3275_v12 }
 0x205   : > { %v2375_v18 = vsel %vm2329_vm12, %v2320_v38, %v1893_v23  ;;  %v2073_v15 = vpop.permute.xlu1 %2072 }
 0x206   : > { %v2430_v10 = vsel %vm2384_vm13, %v2375_v18, %v1953_v24  ;;  %v3424_v3 = vshll.u32 %v9033_v22, 16  ;;  %v3422_v5 = vshrl.u32 %v9033_v22, 16 }
 0x208   : > { %v2013_v39 = vpop.permute.xlu0 %2012  ;;  %v3426_v35 = vrot.slane %v3424_v3, 1 }
 0x209   : > { %v2485_v4 = vsel %vm2439_vm14, %v2430_v10, %v2013_v39  ;;  %v1643_v29 = vpop.permute.xlu1 %1642 }
 0x20a   : > { %v2540_v40 = vsel %vm2494_vm15, %v2485_v4, %v2073_v15  ;;  %v3427_v62 = vor.u32 %v3426_v35, %v3422_v5 }
 0x20b   : > { %v2765_v19 = vpop.f32.mrf.mxu0  ;;  %6393 = vmatmul.mubr.msk.bf16.gmra.mxu0 %vm2592_vm0, %v2540_v40 }
 0x20c   : > { %v2766_v27 = vadd.f32 %v8563_v30, %v2765_v19  ;;  %v1508_v42 = vpop.permute.xlu0 %1507  ;;  %6396 = vmatprep.mubr.msk.bf16.mxu0 %vm6950_vm7, %v6941_v1 }
 0x20d   : > { %v2154_v47 = vsel %vm2082_vm8, %v8441_v53, %v1508_v42  ;;  %v6346_v58 = vpop.f32.mrf.mxu0  ;;  %v1811_v36 = vpop.permute.xlu1 %1810 }
 0x20e   : > { %v2920_v11 = vmax.f32 %v2766_v27, 0.0  ;;  %v2212_v32 = vsel %vm2164_vm9, %v2154_v47, %v1643_v29 }
 0x20f   : > { %v2768_v46 = vpop.f32.mrf.mxu0 }
 0x210   : > { %v3277_v52 = vsel %vm3094_vm4, %v2920_v11, 0.0  ;;  %v1727_v0 = vpop.permute.xlu0 %1726  ;;  %v2769_v55 = vadd.f32 %v8563_v30, %v2768_v46 }
 0x211   : > { %v9047_v60 = vpack.c.bf16 %v3277_v52, %v3277_v52  ;;  %v2267_v54 = vsel %vm2219_vm10, %v2212_v32, %v1727_v0  ;;  %v6347_v44 = vpop.f32.mrf.mxu0  ;;  %v1955_v63 = vpop.permute.xlu1 %1954 }
 0x212   : > { %v2322_v26 = vsel %vm2274_vm11, %v2267_v54, %v1811_v36  ;;  %v2921_v15 = vmax.f32 %v2769_v55, 0.0 }
 0x213   : > { %v3429_v53 = vshll.u32 %v9047_v60, 16 }
 0x214   : > { %v1895_v25 = vpop.permute.xlu0 %1894  ;;  %v3278_v42 = vsel %vm3035_vm1, %v2921_v15, 0.0  ;;  %v9104_v15 = vld [vmem:[%s10516_s3 + $0x18] sm:$0xf] }
 0x215   : > { %v3431_v51 = vrot.slane %v3429_v53, 1  ;;  %v2377_v33 = vsel %vm2329_vm12, %v2322_v26, %v1895_v25  ;;  %v2075_v56 = vpop.permute.xlu1 %2074  ;;  %6727 = vmatprep.subr.msk.bf16.mxu0 %vm2647_vm2, %v9104_v15 }
 0x216   : > { %v2432_v8 = vsel %vm2384_vm13, %v2377_v33, %v1955_v63 }
 0x217   : > { %v9056_v24 = vsel %vm3348_vm5, %v3427_v62, %v3431_v51 }
 0x218   : > { %6426 = vmatprep.mubr.msk.bf16.mxu1 %vm2082_vm8, %v9056_v24  ;;  %v2015_v38 = vpop.permute.xlu0 %2014 }
 0x219   : > { %v2487_v23 = vsel %vm2439_vm14, %v2432_v8, %v2015_v38  ;;  %v1645_v13 = vpop.permute.xlu1 %1644 }
 0x21a   : > { %v2542_v18 = vsel %vm2494_vm15, %v2487_v23, %v2075_v56 }
 0x21b   : > { %v2773_v12 = vpop.f32.mrf.mxu0  ;;  %6397 = vmatmul.mubr.msk.bf16.gmra.mxu0 %vm2592_vm0, %v2542_v18 }
 0x21c   : > { %v2774_v10 = vadd.f32 %v8563_v30, %v2773_v12  ;;  %v1510_v39 = vpop.permute.xlu0 %1509  ;;  %6400 = vmatprep.mubr.msk.bf16.mxu0 %vm6950_vm7, %v6941_v1  ;;  %v9077_v30 = vld [vmem:[%s10515_s2] ss:$0 sm:$0xff] }
 0x21d   : > { %v2157_v4 = vsel %vm2082_vm8, %v8513_v50, %v1510_v39  ;;  %v6350_v29 = vpop.f32.mrf.mxu0  ;;  %v1813_v40 = vpop.permute.xlu1 %1812 }
 0x21e   : > { %v2922_v19 = vmax.f32 %v2774_v10, 0.0  ;;  %v2214_v27 = vsel %vm2164_vm9, %v2157_v4, %v1645_v13 }
 0x21f   : > { %v2776_v47 = vpop.f32.mrf.mxu0 }
 0x220   : > { %v9072_v58 = vpack.c.bf16 %v2922_v19, %v3278_v42  ;;  %v2777_v36 = vadd.f32 %v9077_v30, %v2776_v47  ;;  %v1729_v3 = vpop.permute.xlu0 %1728 }
 0x221   : > { %v2269_v50 = vsel %vm2219_vm10, %v2214_v27, %v1729_v3  ;;  %v6351_v11 = vpop.f32.mrf.mxu0  ;;  %v1957_v46 = vpop.permute.xlu1 %1956 }
 0x222   : > { %v2923_v52 = vmax.f32 %v2777_v36, 0.0  ;;  %v2324_v32 = vsel %vm2274_vm11, %v2269_v50, %v1813_v40  ;;  %v3436_v0 = vshll.u32 %v9072_v58, 16  ;;  %v3434_v51 = vshrl.u32 %v9072_v58, 16 }
 0x224   : > { %v3280_v54 = vsel %vm3094_vm4, %v2923_v52, 0.0  ;;  %v1897_v44 = vpop.permute.xlu0 %1896  ;;  %v3438_v5 = vrot.slane %v3436_v0, 1 }
 0x225   : > { %v9085_v63 = vpack.c.bf16 %v3280_v54, %v3280_v54  ;;  %v2379_v35 = vsel %vm2329_vm12, %v2324_v32, %v1897_v44  ;;  %v2077_v53 = vpop.permute.xlu1 %2076 }
 0x226   : > { %v2434_v26 = vsel %vm2384_vm13, %v2379_v35, %v1957_v46  ;;  %v3439_v55 = vor.u32 %v3438_v5, %v3434_v51  ;;  %v3347_v5 = vld [vmem:[%s10516_s3] sm:$0xf] }
 0x227   : > { %v3441_v25 = vshll.u32 %v9085_v63, 16  ;;  %6721 = vmatprep.subr.msk.bf16.mxu1 %vm2647_vm2, %v3347_v5 }
 0x228   : > { %v2017_v33 = vpop.permute.xlu0 %2016 }
 0x229   : > { %v3443_v62 = vrot.slane %v3441_v25, 1  ;;  %v2489_v56 = vsel %vm2439_vm14, %v2434_v26, %v2017_v33  ;;  %v1647_v8 = vpop.permute.xlu1 %1646  ;;  %v3788_v25 = vsel %vm2647_vm2, %v3347_v5, 0 }
 0x22a   : > { %v2544_v38 = vsel %vm2494_vm15, %v2489_v56, %v2077_v53  ;;  %6447 = vmatpush3.bf16.msra.mxu1 %v3788_v25 }
 0x22b   : > { %v2781_v23 = vpop.f32.mrf.mxu0  ;;  %6401 = vmatmul.mubr.msk.bf16.gmra.mxu0 %vm2592_vm0, %v2544_v38  ;;  %v9095_v13 = vsel %vm3348_vm5, %v3439_v55, %v3443_v62 }
 0x22c   : > { %6427 = vmatmul.mubr.msk.bf16.gmra.mxu1 %vm2082_vm8, %v9095_v13  ;;  %v1512_v18 = vpop.permute.xlu0 %1511  ;;  %6404 = vmatprep.mubr.msk.bf16.mxu0 %vm6950_vm7, %v6941_v1  ;;  %v2782_v40 = vadd.f32 %v9077_v30, %v2781_v23 }
 0x22d   : > { %v2160_v12 = vsel %vm2082_vm8, %v8592_v41, %v1512_v18  ;;  %v6354_v10 = vpop.f32.mrf.mxu0  ;;  %v1815_v39 = vpop.permute.xlu1 %1814 }
 0x22e   : > { %v2216_v4 = vsel %vm2164_vm9, %v2160_v12, %v1647_v8  ;;  %v2924_v41 = vmax.f32 %v2782_v40, 0.0 }
 0x22f   : > { %v2784_v29 = vpop.f32.mrf.mxu0 }
 0x230   : > { %v1731_v19 = vpop.permute.xlu0 %1730  ;;  %v2785_v27 = vadd.f32 %v9077_v30, %v2784_v29  ;;  %v3281_v0 = vsel %vm3035_vm1, %v2924_v41, 0.0 }
 0x231   : > { %v2271_v42 = vsel %vm2219_vm10, %v2216_v4, %v1731_v19  ;;  %v6355_v47 = vpop.f32.mrf.mxu0  ;;  %v1959_v36 = vpop.permute.xlu1 %1958 }
 0x232   : > { %v2326_v3 = vsel %vm2274_vm11, %v2271_v42, %v1815_v39  ;;  %v2925_v11 = vmax.f32 %v2785_v27, 0.0 }
 0x234   : > { %v1899_v50 = vpop.permute.xlu0 %1898  ;;  %v9119_v44 = vpack.c.bf16 %v2925_v11, %v3281_v0 }
 0x235   : > { %v2381_v46 = vsel %vm2329_vm12, %v2326_v3, %v1899_v50  ;;  %v2079_v52 = vpop.permute.xlu1 %2078 }
 0x236   : > { %v2436_v32 = vsel %vm2384_vm13, %v2381_v46, %v1959_v36  ;;  %v3448_v38 = vshll.u32 %v9119_v44, 16  ;;  %v3446_v42 = vshrl.u32 %v9119_v44, 16 }
 0x238   : > { %v2019_v54 = vpop.permute.xlu0 %2018  ;;  %v3450_v19 = vrot.slane %v3448_v38, 1 }
 0x239   : > { %v2491_v35 = vsel %vm2439_vm14, %v2436_v32, %v2019_v54  ;;  %v1649_v53 = vpop.permute.xlu1 %1648 }
 0x23a   : > { %v2546_v26 = vsel %vm2494_vm15, %v2491_v35, %v2079_v52  ;;  %v3451_v41 = vor.u32 %v3450_v19, %v3446_v42 }
 0x23b   : > { %v2789_v51 = vpop.f32.mrf.mxu0  ;;  %6405 = vmatmul.mubr.msk.bf16.gmra.mxu0 %vm2592_vm0, %v2546_v26 }
 0x23c   : > { %v2790_v33 = vadd.f32 %v9077_v30, %v2789_v51  ;;  %v1514_v62 = vpop.permute.xlu0 %1513  ;;  %6408 = vmatprep.mubr.msk.bf16.mxu0 %vm6950_vm7, %v6941_v1 }
 0x23d   : > { %v2163_v56 = vsel %vm2082_vm8, %v8676_v20, %v1514_v62  ;;  %v6358_v55 = vpop.f32.mrf.mxu0  ;;  %v1817_v8 = vpop.permute.xlu1 %1816 }
 0x23e   : > { %v2926_v23 = vmax.f32 %v2790_v33, 0.0  ;;  %v2218_v18 = vsel %vm2164_vm9, %v2163_v56, %v1649_v53 }
 0x23f   : > { %v2792_v12 = vpop.f32.mrf.mxu0 }
 0x240   : > { %v3283_v10 = vsel %vm3094_vm4, %v2926_v23, 0.0  ;;  %v1733_v39 = vpop.permute.xlu0 %1732  ;;  %v2793_v11 = vadd.f32 %v9077_v30, %v2792_v12 }
 0x241   : > { %v9138_v4 = vpack.c.bf16 %v3283_v10, %v3283_v10  ;;  %v2273_v29 = vsel %vm2219_vm10, %v2218_v18, %v1733_v39  ;;  %v6359_v1 = vpop.f32.mrf.mxu0  ;;  %v1961_v40 = vpop.permute.xlu1 %1960 }
 0x242   : > { %v2328_v20 = vsel %vm2274_vm11, %v2273_v29, %v1817_v8  ;;  %v2927_v35 = vmax.f32 %v2793_v11, 0.0  ;;  %v4903_v8 = vsel %vm2647_vm2, %v9104_v15, 0 }
 0x243   : > { %v3453_v27 = vshll.u32 %v9138_v4, 16 }
 0x244   : > { %v1901_v47 = vpop.permute.xlu0 %1900  ;;  %v3284_v51 = vsel %vm3035_vm1, %v2927_v35, 0.0 }
 0x245   : > { %v3455_v36 = vrot.slane %v3453_v27, 1  ;;  %v2383_v3 = vsel %vm2329_vm12, %v2328_v20, %v1901_v47  ;;  %v2081_v52 = vpop.permute.xlu1 %2080 }
 0x246   : > { %v2438_v50 = vsel %vm2384_vm13, %v2383_v3, %v1961_v40 }
 0x247   : > { %v9148_v46 = vsel %vm3348_vm5, %v3451_v41, %v3455_v36 }
 0x248   : > { %10536 = vst [vmem:[#allocation6_spill] sm:$0xff] %v9148_v46  ;;  %6430 = vmatprep.mubr.msk.bf16.mxu1 %vm2082_vm8, %v9148_v46  ;;  %v2021_v32 = vpop.permute.xlu0 %2020 }
 0x249   : > { %v2493_v0 = vsel %vm2439_vm14, %v2438_v50, %v2021_v32 }
 0x24a   : > { %v2548_v54 = vsel %vm2494_vm15, %v2493_v0, %v2081_v52 }
 0x24b   : > { %v2797_v53 = vpop.f32.mrf.mxu0  ;;  %6409 = vmatmul.mubr.msk.bf16.gmra.mxu0 %vm2592_vm0, %v2548_v54 }
 0x24c   : > { %v2798_v5 = vadd.f32 %v9077_v30, %v2797_v53  ;;  %6550 = vmatprep.mubr.msk.bf16.mxu0 %vm2082_vm8, %v8683_v59 }
 0x24d   : > { %v6362_v26 = vpop.f32.mrf.mxu0 }
 0x24e   : > { %v2928_v25 = vmax.f32 %v2798_v5, 0.0 }
 0x24f   : > { %v2800_v33 = vpop.f32.mrf.mxu0 }
 0x250   : > { %v9160_v62 = vpack.c.bf16 %v2928_v25, %v3284_v51  ;;  %v2801_v56 = vadd.f32 %v9077_v30, %v2800_v33 }
 0x251   : > { %v6363_v55 = vpop.f32.mrf.mxu0 }
 0x252   : > { %v2929_v38 = vmax.f32 %v2801_v56, 0.0  ;;  %v3460_v23 = vshll.u32 %v9160_v62, 16  ;;  %v3458_v15 = vshrl.u32 %v9160_v62, 16  ;;  %v9210_v56 = vld [vmem:[%s10516_s3 + $0x8] sm:$0xf] }
 0x253   : > { %6551 = vmatmul.mubr.msk.bf16.vlgmr.msra.gmra.mxu0 %vm2082_vm8, %v8823_v48  ;;  %6722 = vmatprep.subr.msk.bf16.mxu1 %vm2647_vm2, %v9210_v56 }
 0x254   : > { %v3286_v59 = vsel %vm3094_vm4, %v2929_v38, 0.0  ;;  %6554 = vmatprep.mubr.msk.bf16.mxu0 %vm2082_vm8, %v8917_v45  ;;  %6617 = vmatpush3.bf16.msra.mxu0 %v4903_v8  ;;  %v3462_v12 = vrot.slane %v3460_v23, 1 }
 0x255   : > { %v9172_v18 = vpack.c.bf16 %v3286_v59, %v3286_v59  ;;  %v6085_v59 = vld [vmem:[%s10516_s3 + $0x20] sm:$0xf] }
 0x256   : > { %v3463_v29 = vor.u32 %v3462_v12, %v3458_v15  ;;  %6729 = vmatprep.subr.msk.bf16.mxu0 %vm2647_vm2, %v6085_v59 }
 0x257   : > { %v3465_v10 = vshll.u32 %v9172_v18, 16 }
 0x259   : > { %v3467_v39 = vrot.slane %v3465_v10, 1 }
 0x25b   : > { %v2805_v1 = vpop.f32.mrf.mxu0  ;;  %6555 = vmatmul.mubr.msk.bf16.gmra.mxu0 %vm2082_vm8, %v8982_v57  ;;  %v9179_v40 = vsel %vm3348_vm5, %v3463_v29, %v3467_v39 }
 0x25c   : > { %10537 = vst [vmem:[#allocation7_spill] sm:$0xff] %v9179_v40  ;;  %6431 = vmatmul.mubr.msk.bf16.gmra.mxu1 %vm2082_vm8, %v9179_v40  ;;  %6558 = vmatprep.mubr.msk.bf16.mxu0 %vm2082_vm8, %v9016_v37  ;;  %v2806_v27 = vadd.f32 %v9077_v30, %v2805_v1 }
 0x25d   : > { %v6366_v19 = vpop.f32.mrf.mxu0 }
 0x25e   : > { %v2930_v36 = vmax.f32 %v2806_v27, 0.0 }
 0x25f   : > { %v2808_v20 = vpop.f32.mrf.mxu0 }
 0x260   : > { %v2809_v42 = vadd.f32 %v9077_v30, %v2808_v20  ;;  %v3287_v41 = vsel %vm3035_vm1, %v2930_v36, 0.0 }
 0x261   : > { %v6367_v47 = vpop.f32.mrf.mxu0 }
 0x262   : > { %v2931_v3 = vmax.f32 %v2809_v42, 0.0 }
 0x263   : > { %6559 = vmatmul.mubr.msk.bf16.gmra.mxu0 %vm2082_vm8, %v9056_v24 }
 0x264   : > { %6562 = vmatprep.mubr.msk.bf16.mxu0 %vm2082_vm8, %v9095_v13  ;;  %v9193_v50 = vpack.c.bf16 %v2931_v3, %v3287_v41 }
 0x266   : > { %v3472_v0 = vshll.u32 %v9193_v50, 16  ;;  %v3470_v33 = vshrl.u32 %v9193_v50, 16 }
 0x268   : > { %v3474_v25 = vrot.slane %v3472_v0, 1 }
 0x26a   : > { %v3475_v8 = vor.u32 %v3474_v25, %v3470_v33 }
 0x26b   : > { %v2813_v11 = vpop.f32.mrf.mxu0  ;;  %6563 = vmatmul.mubr.msk.bf16.gmra.mxu0 %vm2082_vm8, %v9148_v46 }
 0x26c   : > { %v2814_v52 = vadd.f32 %v9077_v30, %v2813_v11  ;;  %6566 = vmatprep.mubr.msk.bf16.mxu0 %vm2082_vm8, %v9179_v40 }
 0x26d   : > { %v6370_v32 = vpop.f32.mrf.mxu0 }
 0x26e   : > { %v2932_v54 = vmax.f32 %v2814_v52, 0.0 }
 0x26f   : > { %v2816_v35 = vpop.f32.mrf.mxu0 }
 0x270   : > { %v3289_v53 = vsel %vm3094_vm4, %v2932_v54, 0.0  ;;  %v2817_v38 = vadd.f32 %v9077_v30, %v2816_v35 }
 0x271   : > { %v9203_v5 = vpack.c.bf16 %v3289_v53, %v3289_v53  ;;  %v6371_v26 = vpop.f32.mrf.mxu0 }
 0x272   : > { %v2933_v12 = vmax.f32 %v2817_v38, 0.0 }
 0x273   : > { %v3477_v51 = vshll.u32 %v9203_v5, 16 }
 0x274   : > { %v3290_v1 = vsel %vm3035_vm1, %v2933_v12, 0.0 }
 0x275   : > { %v3479_v55 = vrot.slane %v3477_v51, 1 }
 0x277   : > { %v9216_v23 = vsel %vm3348_vm5, %v3475_v8, %v3479_v55 }
 0x278   : > { %10538 = vst [vmem:[#allocation8_spill] sm:$0xff] %v9216_v23  ;;  %6434 = vmatprep.mubr.msk.bf16.mxu1 %vm2082_vm8, %v9216_v23  ;;  %6567 = vmatmul.mubr.msk.bf16.gmra.mxu0 %vm2082_vm8, %v9216_v23 }
 0x27b   : > { %v2821_v10 = vpop.f32.mrf.mxu0 }
 0x27c   : > { %v2822_v15 = vadd.f32 %v9077_v30, %v2821_v10 }
 0x27d   : > { %v6374_v39 = vpop.f32.mrf.mxu0 }
 0x27e   : > { %v2934_v29 = vmax.f32 %v2822_v15, 0.0 }
 0x27f   : > { %v2824_v19 = vpop.f32.mrf.mxu0 }
 0x280   : > { %v9229_v20 = vpack.c.bf16 %v2934_v29, %v3290_v1  ;;  %v2825_v27 = vadd.f32 %v9077_v30, %v2824_v19 }
 0x281   : > { %v6375_v42 = vpop.f32.mrf.mxu0 }
 0x282   : > { %v2935_v47 = vmax.f32 %v2825_v27, 0.0  ;;  %v3484_v36 = vshll.u32 %v9229_v20, 16  ;;  %v3482_v32 = vshrl.u32 %v9229_v20, 16 }
 0x284   : > { %v3292_v3 = vsel %vm3094_vm4, %v2935_v47, 0.0  ;;  %v3486_v11 = vrot.slane %v3484_v36, 1 }
 0x285   : > { %v9235_v41 = vpack.c.bf16 %v3292_v3, %v3292_v3 }
 0x286   : > { %v3487_v54 = vor.u32 %v3486_v11, %v3482_v32 }
 0x287   : > { %v3489_v52 = vshll.u32 %v9235_v41, 16 }
 0x289   : > { %v3491_v0 = vrot.slane %v3489_v52, 1 }
 0x28b   : > { %v2829_v35 = vpop.f32.mrf.mxu0  ;;  %v9240_v53 = vsel %vm3348_vm5, %v3487_v54, %v3491_v0 }
 0x28c   : > { %10539 = vst [vmem:[#allocation9_spill] sm:$0xff] %v9240_v53  ;;  %6435 = vmatmul.mubr.msk.bf16.gmra.mxu1 %vm2082_vm8, %v9240_v53  ;;  %6570 = vmatprep.mubr.msk.bf16.mxu0 %vm2082_vm8, %v9240_v53  ;;  %v2830_v51 = vadd.f32 %v9077_v30, %v2829_v35 }
 0x28d   : > { %v6378_v26 = vpop.f32.mrf.mxu0 }
 0x28e   : > { %v2936_v8 = vmax.f32 %v2830_v51, 0.0 }
 0x28f   : > { %v2832_v25 = vpop.f32.mrf.mxu0 }
 0x290   : > { %v2833_v33 = vadd.f32 %v9077_v30, %v2832_v25  ;;  %v3293_v12 = vsel %vm3035_vm1, %v2936_v8, 0.0  ;;  %v5321_v8 = vsel %vm2647_vm2, %v6085_v59, 0 }
 0x291   : > { %v6379_v55 = vpop.f32.mrf.mxu0 }
 0x292   : > { %v2937_v38 = vmax.f32 %v2833_v33, 0.0 }
 0x294   : > { %v9250_v10 = vpack.c.bf16 %v2937_v38, %v3293_v12 }
 0x296   : > { %v3496_v1 = vshll.u32 %v9250_v10, 16  ;;  %v3494_v52 = vshrl.u32 %v9250_v10, 16 }
 0x298   : > { %v3498_v3 = vrot.slane %v3496_v1, 1 }
 0x29a   : > { %v3499_v0 = vor.u32 %v3498_v3, %v3494_v52 }
 0x29b   : > { %v2837_v15 = vpop.f32.mrf.mxu0 }
 0x29c   : > { %v2838_v39 = vadd.f32 %v9077_v30, %v2837_v15 }
 0x29d   : > { %v6382_v29 = vpop.f32.mrf.mxu0 }
 0x29e   : > { %v2938_v19 = vmax.f32 %v2838_v39, 0.0 }
 0x29f   : > { %v2840_v27 = vpop.f32.mrf.mxu0 }
 0x2a0   : > { %v3295_v42 = vsel %vm3094_vm4, %v2938_v19, 0.0  ;;  %v2841_v54 = vadd.f32 %v9077_v30, %v2840_v27 }
 0x2a1   : > { %v9256_v47 = vpack.c.bf16 %v3295_v42, %v3295_v42  ;;  %v6383_v36 = vpop.f32.mrf.mxu0 }
 0x2a2   : > { %v2939_v26 = vmax.f32 %v2841_v54, 0.0 }
 0x2a3   : > { %v3501_v11 = vshll.u32 %v9256_v47, 16 }
 0x2a4   : > { %v3296_v38 = vsel %vm3035_vm1, %v2939_v26, 0.0 }
 0x2a5   : > { %v3503_v32 = vrot.slane %v3501_v11, 1 }
 0x2a7   : > { %v9262_v35 = vsel %vm3348_vm5, %v3499_v0, %v3503_v32 }
 0x2a8   : > { %10540 = vst [vmem:[#allocation10_spill] sm:$0xff] %v9262_v35  ;;  %6438 = vmatprep.mubr.msk.bf16.mxu1 %vm2082_vm8, %v9262_v35  ;;  %6571 = vmatmul.mubr.msk.bf16.gmra.mxu0 %vm2082_vm8, %v9262_v35 }
 0x2a9   : > { %6618 = vmatprep.mubr.msk.bf16.mxu0 %vm2082_vm8, %v8752_v61 }
 0x2ab   : > { %v2845_v25 = vpop.f32.mrf.mxu0 }
 0x2ac   : > { %v2846_v51 = vadd.f32 %v9077_v30, %v2845_v25 }
 0x2ad   : > { %v6386_v33 = vpop.f32.mrf.mxu0 }
 0x2ae   : > { %v2940_v55 = vmax.f32 %v2846_v51, 0.0 }
 0x2af   : > { %v2848_v12 = vpop.f32.mrf.mxu0 }
 0x2b0   : > { %v9274_v15 = vpack.c.bf16 %v2940_v55, %v3296_v38  ;;  %v2849_v39 = vadd.f32 %v9077_v30, %v2848_v12  ;;  %6619 = vmatmul.mubr.msk.bf16.vlgmr.msra.gmra.mxu0 %vm2082_vm8, %v8878_v34 }
 0x2b1   : > { %v6387_v29 = vpop.f32.mrf.mxu0  ;;  %6622 = vmatprep.mubr.msk.bf16.mxu0 %vm2082_vm8, %v8959_v9  ;;  %6685 = vmatpush3.bf16.msra.mxu0 %v5321_v8 }
 0x2b2   : > { %v2941_v1 = vmax.f32 %v2849_v39, 0.0  ;;  %v3508_v19 = vshll.u32 %v9274_v15, 16  ;;  %v3506_v3 = vshrl.u32 %v9274_v15, 16 }
 0x2b4   : > { %v3298_v59 = vsel %vm3094_vm4, %v2941_v1, 0.0  ;;  %v3510_v42 = vrot.slane %v3508_v19, 1 }
 0x2b5   : > { %v9284_v27 = vpack.c.bf16 %v3298_v59, %v3298_v59 }
 0x2b6   : > { %v3511_v52 = vor.u32 %v3510_v42, %v3506_v3 }
 0x2b7   : > { %v3513_v36 = vshll.u32 %v9284_v27, 16 }
 0x2b8   : > { %6623 = vmatmul.mubr.msk.bf16.gmra.mxu0 %vm2082_vm8, %v8997_v49 }
 0x2b9   : > { %v3515_v11 = vrot.slane %v3513_v36, 1  ;;  %6626 = vmatprep.mubr.msk.bf16.mxu0 %vm2082_vm8, %v9033_v22 }
 0x2bb   : > { %v2853_v32 = vpop.f32.mrf.mxu0  ;;  %v9293_v0 = vsel %vm3348_vm5, %v3511_v52, %v3515_v11 }
 0x2bc   : > { %10541 = vst [vmem:[#allocation11_spill] sm:$0xff] %v9293_v0  ;;  %6439 = vmatmul.mubr.msk.bf16.gmra.mxu1 %vm2082_vm8, %v9293_v0  ;;  %v2854_v25 = vadd.f32 %v9077_v30, %v2853_v32 }
 0x2bd   : > { %v6390_v54 = vpop.f32.mrf.mxu0 }
 0x2be   : > { %v2942_v55 = vmax.f32 %v2854_v25, 0.0 }
 0x2bf   : > { %v2856_v26 = vpop.f32.mrf.mxu0 }
 0x2c0   : > { %6627 = vmatmul.mubr.msk.bf16.gmra.mxu0 %vm2082_vm8, %v9072_v58  ;;  %v2857_v51 = vadd.f32 %v9077_v30, %v2856_v26  ;;  %v3299_v38 = vsel %vm3035_vm1, %v2942_v55, 0.0 }
 0x2c1   : > { %v6391_v33 = vpop.f32.mrf.mxu0  ;;  %6630 = vmatprep.mubr.msk.bf16.mxu0 %vm2082_vm8, %v9119_v44 }
 0x2c2   : > { %v2943_v8 = vmax.f32 %v2857_v51, 0.0 }
 0x2c4   : > { %v9307_v12 = vpack.c.bf16 %v2943_v8, %v3299_v38 }
 0x2c6   : > { %v3520_v19 = vshll.u32 %v9307_v12, 16  ;;  %v3518_v54 = vshrl.u32 %v9307_v12, 16 }
 0x2c8   : > { %6631 = vmatmul.mubr.msk.bf16.gmra.mxu0 %vm2082_vm8, %v9160_v62  ;;  %v3522_v52 = vrot.slane %v3520_v19, 1 }
 0x2c9   : > { %6634 = vmatprep.mubr.msk.bf16.mxu0 %vm2082_vm8, %v9193_v50 }
 0x2ca   : > { %v3523_v25 = vor.u32 %v3522_v52, %v3518_v54 }
 0x2cb   : > { %v2861_v39 = vpop.f32.mrf.mxu0 }
 0x2cc   : > { %v2862_v29 = vadd.f32 %v9077_v30, %v2861_v39 }
 0x2cd   : > { %v6394_v1 = vpop.f32.mrf.mxu0 }
 0x2ce   : > { %v2944_v59 = vmax.f32 %v2862_v29, 0.0 }
 0x2cf   : > { %v2864_v42 = vpop.f32.mrf.mxu0 }
 0x2d0   : > { %v3301_v36 = vsel %vm3094_vm4, %v2944_v59, 0.0  ;;  %6635 = vmatmul.mubr.msk.bf16.gmra.mxu0 %vm2082_vm8, %v9229_v20  ;;  %v2865_v51 = vadd.f32 %v9077_v30, %v2864_v42 }
 0x2d1   : > { %v9317_v3 = vpack.c.bf16 %v3301_v36, %v3301_v36  ;;  %v6395_v11 = vpop.f32.mrf.mxu0  ;;  %6638 = vmatprep.mubr.msk.bf16.mxu0 %vm2082_vm8, %v9250_v10 }
 0x2d2   : > { %v2945_v55 = vmax.f32 %v2865_v51, 0.0 }
 0x2d3   : > { %v3525_v32 = vshll.u32 %v9317_v3, 16 }
 0x2d4   : > { %v3302_v1 = vsel %vm3035_vm1, %v2945_v55, 0.0 }
 0x2d5   : > { %v3527_v26 = vrot.slane %v3525_v32, 1 }
 0x2d7   : > { %v9325_v33 = vsel %vm3348_vm5, %v3523_v25, %v3527_v26 }
 0x2d8   : > { %10542 = vst [vmem:[#allocation12_spill] sm:$0xff] %v9325_v33  ;;  %6442 = vmatprep.mubr.msk.bf16.mxu1 %vm2082_vm8, %v9325_v33  ;;  %6639 = vmatmul.mubr.msk.bf16.gmra.mxu0 %vm2082_vm8, %v9274_v15 }
 0x2d9   : > { %6642 = vmatprep.mubr.msk.bf16.mxu0 %vm2082_vm8, %v9307_v12 }
 0x2db   : > { %v2869_v8 = vpop.f32.mrf.mxu0 }
 0x2dc   : > { %v2870_v38 = vadd.f32 %v9077_v30, %v2869_v8 }
 0x2dd   : > { %v6398_v39 = vpop.f32.mrf.mxu0 }
 0x2de   : > { %v2946_v29 = vmax.f32 %v2870_v38, 0.0 }
 0x2df   : > { %v2872_v19 = vpop.f32.mrf.mxu0 }
 0x2e0   : > { %v9336_v59 = vpack.c.bf16 %v2946_v29, %v3302_v1  ;;  %v2873_v42 = vadd.f32 %v9077_v30, %v2872_v19  ;;  %v6952_v19 = vmov 0.0|0.0  }
 0x2e1   : > { %v6399_v36 = vpop.f32.mrf.mxu0 }
 0x2e2   : > { %v2947_v11 = vmax.f32 %v2873_v42, 0.0  ;;  %6643 = vmatmul.mubr.msk.bf16.gmra.mxu0 %vm2082_vm8, %v9336_v59  ;;  %v3532_v52 = vshll.u32 %v9336_v59, 16  ;;  %v3530_v51 = vshrl.u32 %v9336_v59, 16 }
 0x2e4   : > { %v3304_v32 = vsel %vm3094_vm4, %v2947_v11, 0.0  ;;  %v3534_v26 = vrot.slane %v3532_v52, 1 }
 0x2e5   : > { %v9344_v54 = vpack.c.bf16 %v3304_v32, %v3304_v32 }
 0x2e6   : > { %v3535_v8 = vor.u32 %v3534_v26, %v3530_v51  ;;  %v3991_v51 = vrot.slane %v8804_v16, 1 }
 0x2e7   : > { %v3537_v25 = vshll.u32 %v9344_v54, 16 }
 0x2e8   : > { %v9379_v16 = vsel %vm3983_vm3, %v3990_v21, %v3991_v51  ;;  %v4002_v51 = vrot.slane %v9033_v22, 1 }
 0x2e9   : > { %v3539_v55 = vrot.slane %v3537_v25, 1  ;;  %v4083_v25 = vsel %vm2647_vm2, %v9210_v56, 0  ;;  %v3994_v56 = vrot.slane %v8893_v14, 1 }
 0x2eb   : > { %v2877_v38 = vpop.f32.mrf.mxu0  ;;  %v9349_v39 = vsel %vm3348_vm5, %v3535_v8, %v3539_v55  ;;  %v9364_v55 = vld [vmem:[%s10516_s3 + $0xc] sm:$0xf] }
 0x2ec   : > { %10543 = vst [vmem:[#allocation13_spill] sm:$0xff] %v9349_v39  ;;  %v2878_v29 = vadd.f32 %v9077_v30, %v2877_v38  ;;  %6443 = vmatmul.mubr.msk.bf16.gmra.mxu1 %vm2082_vm8, %v9349_v39  ;;  %v3997_v38 = vrot.slane %v8973_v6, 1 }
 0x2ed   : > { %v6402_v1 = vpop.f32.mrf.mxu0  ;;  %6448 = vmatprep.mubr.bf16.mxu1 %v6952_v19 }
 0x2ee   : > { %v2948_v42 = vmax.f32 %v2878_v29, 0.0  ;;  %v3993_v1 = vrot.slane %v8878_v34, 1 }
 0x2ef   : > { %v2880_v36 = vpop.f32.mrf.mxu0 }
 0x2f0   : > { %v2881_v11 = vadd.f32 %v9077_v30, %v2880_v36  ;;  %v3305_v52 = vsel %vm3035_vm1, %v2948_v42, 0.0  ;;  %v3996_v42 = vrot.slane %v8959_v9, 1 }
 0x2f1   : > { %v6403_v32 = vpop.f32.mrf.mxu0 }
 0x2f2   : > { %v2949_v26 = vmax.f32 %v2881_v11, 0.0  ;;  %v9392_v11 = vsel %vm3983_vm3, %v3993_v1, %v3994_v56  ;;  %v9397_v14 = vsel %vm3983_vm3, %v3996_v42, %v3997_v38  ;;  %v4000_v32 = vrot.slane %v9006_v17, 1 }
 0x2f3   : > { %v4009_v56 = vrot.slane %v9138_v4, 1  ;;  %v4005_v1 = vrot.slane %v9072_v58, 1 }
 0x2f4   : > { %v9366_v8 = vpack.c.bf16 %v2949_v26, %v3305_v52  ;;  %6449 = vmatmul.mubr.msk.bf16.vlgmr.msra.gmra.mxu1 %vm2082_vm8, %v8637_v2  ;;  %v4003_v26 = vrot.slane %v9047_v60, 1  ;;  %v4006_v60 = vrot.slane %v9085_v63, 1 }
 0x2f5   : > { %6481 = vmatpush3.bf16.msra.mxu1 %v4083_v25  ;;  %6452 = vmatprep.mubr.msk.bf16.mxu1 %vm2082_vm8, %v8752_v61  ;;  %v3999_v25 = vrot.slane %v8997_v49, 1 }
 0x2f6   : > { %6646 = vmatprep.mubr.msk.bf16.mxu0 %vm2082_vm8, %v9366_v8  ;;  %6723 = vmatprep.subr.msk.bf16.mxu1 %vm2647_vm2, %v9364_v55  ;;  %v9415_v17 = vsel %vm3983_vm3, %v4002_v51, %v4003_v26  ;;  %v4015_v26 = vrot.slane %v9203_v5, 1  ;;  %v4014_v51 = vrot.slane %v9193_v50, 1  ;;  %v4018_v5 = vrot.slane %v9235_v41, 1 }
 0x2f7   : > { %6647 = vmatmul.mubr.bf16.gmra.mxu0 %v6952_v19  ;;  %v9410_v21 = vsel %vm3983_vm3, %v3999_v25, %v4000_v32  ;;  %v4012_v32 = vrot.slane %v9172_v18, 1  ;;  %v4011_v25 = vrot.slane %v9160_v62, 1  ;;  %v4024_v41 = vrot.slane %v9284_v27, 1 }
 0x2f8   : > { %6686 = vmatprep.mubr.msk.bf16.mxu0 %vm2082_vm8, %v9379_v16  ;;  %v9451_v18 = vsel %vm3983_vm3, %v4014_v51, %v4015_v26  ;;  %v4026_v26 = vrot.slane %v9307_v12, 1  ;;  %v3984_v27 = vrot.slane %v6952_v19, 1  ;;  %v4693_v51 = vrot.slane %v9366_v8, 1 }
 0x2f9   : > { %v3988_v19 = vrot.slane %v8656_v43, 1  ;;  %v6862_v43 = vld [vmem:[%s10516_s3 + $0x10] sm:$0xf] }
 0x2fb   : > { %v2885_v29 = vpop.f32.mrf.mxu0 }
 0x2fc   : > { %6453 = vmatmul.mubr.msk.bf16.gmra.mxu1 %vm2082_vm8, %v8878_v34 }
 0x2fd   : > { %6456 = vmatprep.mubr.msk.bf16.mxu1 %vm2082_vm8, %v8959_v9  ;;  %v6406_v36 = vpop.f32.mrf.mxu0 }
 0x2fe   : > { %v4008_v36 = vrot.slane %v9119_v44, 1 }
 0x2ff   : > { %6687 = vmatmul.mubr.msk.bf16.vlgmr.msra.gmra.mxu0 %vm2082_vm8, %v9392_v11  ;;  %v2888_v6 = vpop.f32.mrf.mxu0 }
 0x300   : > { %6690 = vmatprep.mubr.msk.bf16.mxu0 %vm2082_vm8, %v9397_v14  ;;  %v9428_v6 = vsel %vm3983_vm3, %v4005_v1, %v4006_v60  ;;  %v9433_v63 = vsel %vm3983_vm3, %v4008_v36, %v4009_v56  ;;  %v9446_v60 = vsel %vm3983_vm3, %v4011_v25, %v4012_v32  ;;  %v2886_v56 = vadd.f32 %v9077_v30, %v2885_v29 }
 0x301   : > { %v6407_v52 = vpop.f32.mrf.mxu0  ;;  %v4017_v1 = vrot.slane %v9229_v20, 1  ;;  %v4027_v29 = vrot.slane %v9317_v3, 1 }
 0x302   : > { %v2950_v36 = vmax.f32 %v2886_v56, 0.0  ;;  %v4029_v56 = vrot.slane %v9336_v59, 1 }
 0x303   : > { %v9492_v31 = vsel %vm3983_vm3, %v4026_v26, %v4027_v29 }
 0x304   : > { %6457 = vmatmul.mubr.msk.bf16.gmra.mxu1 %vm2082_vm8, %v8997_v49 }
 0x305   : > { %6460 = vmatprep.mubr.msk.bf16.mxu1 %vm2082_vm8, %v9033_v22 }
 0x307   : > { %6691 = vmatmul.mubr.msk.bf16.gmra.mxu0 %vm2082_vm8, %v9410_v21 }
 0x308   : > { %6694 = vmatprep.mubr.msk.bf16.mxu0 %vm2082_vm8, %v9415_v17 }
 0x30b   : > { %v2893_v38 = vpop.f32.mrf.mxu0 }
 0x30c   : > { %6461 = vmatmul.mubr.msk.bf16.gmra.mxu1 %vm2082_vm8, %v9072_v58  ;;  %v4021_v38 = vrot.slane %v9256_v47, 1  ;;  %v3307_v47 = vsel %vm3094_vm4, %v2950_v36, 0.0 }
 0x30d   : > { %v6410_v42 = vpop.f32.mrf.mxu0  ;;  %6464 = vmatprep.mubr.msk.bf16.mxu1 %vm2082_vm8, %v9119_v44  ;;  %v9481_v32 = vpack.c.bf16 %v3307_v47, %v3307_v47 }
 0x30e   : > { %v4020_v42 = vrot.slane %v9250_v10, 1 }
 0x30f   : > { %v2896_v52 = vpop.f32.mrf.mxu0  ;;  %6695 = vmatmul.mubr.msk.bf16.gmra.mxu0 %vm2082_vm8, %v9428_v6  ;;  %v4694_v3 = vrot.slane %v9481_v32, 1 }
 0x310   : > { %6698 = vmatprep.mubr.msk.bf16.mxu0 %vm2082_vm8, %v9433_v63  ;;  %v9465_v52 = vsel %vm3983_vm3, %v4017_v1, %v4018_v5  ;;  %v9470_v30 = vsel %vm3983_vm3, %v4020_v42, %v4021_v38  ;;  %v4030_v5 = vrot.slane %v9344_v54, 1  ;;  %v3987_v54 = vrot.slane %v8637_v2, 1 }
 0x311   : > { %v6411_v4 = vpop.f32.mrf.mxu0  ;;  %v9505_v38 = vsel %vm3983_vm3, %v4693_v51, %v4694_v3  ;;  %v4284_v42 = vsel %vm2647_vm2, %v9364_v55, 0  ;;  %v9538_v55 = vpop.f32.mrf.mxu1 }
 0x312   : > { %v4023_v4 = vrot.slane %v9274_v15, 1  ;;  %v9508_v1 = vsel %vm3983_vm3, %v4029_v56, %v4030_v5  ;;  %v9519_v36 = vsel %vm3983_vm3, %v3987_v54, %v3988_v19  ;;  %v6035_v54 = vld [vmem:[%s10516_s3 + $0x14] sm:$0xf] }
 0x314   : > { %6465 = vmatmul.mubr.msk.bf16.gmra.mxu1 %vm2082_vm8, %v9160_v62  ;;  %v9487_v25 = vsel %vm3983_vm3, %v4023_v4, %v4024_v41  ;;  %v9544_v41 = vpop.f32.mrf.mxu1 }
 0x315   : > { %6468 = vmatprep.mubr.msk.bf16.mxu1 %vm2082_vm8, %v9193_v50 }
 0x316   : > { %v9546_v47 = vpop.f32.mrf.mxu1 }
 0x317   : > { %6699 = vmatmul.mubr.msk.bf16.gmra.mxu0 %vm2082_vm8, %v9446_v60 }
 0x318   : > { %6702 = vmatprep.mubr.msk.bf16.mxu0 %vm2082_vm8, %v9451_v18  ;;  %v9552_v29 = vpop.f32.mrf.mxu1 }
 0x31a   : > { %v9554_v4 = vpop.f32.mrf.mxu1 }
 0x31c   : > { %6469 = vmatmul.mubr.msk.bf16.gmra.mxu1 %vm2082_vm8, %v9229_v20  ;;  %v9556_v26 = vpop.f32.mrf.mxu1 }
 0x31d   : > { %6472 = vmatprep.mubr.msk.bf16.mxu1 %vm2082_vm8, %v9250_v10 }
 0x31f   : > { %6703 = vmatmul.mubr.msk.bf16.gmra.mxu0 %vm2082_vm8, %v9465_v52 }
 0x320   : > { %6706 = vmatprep.mubr.msk.bf16.mxu0 %vm2082_vm8, %v9470_v30 }
 0x324   : > { %6473 = vmatmul.mubr.msk.bf16.gmra.mxu1 %vm2082_vm8, %v9274_v15 }
 0x325   : > { %6476 = vmatprep.mubr.msk.bf16.mxu1 %vm2082_vm8, %v9307_v12 }
 0x327   : > { %6707 = vmatmul.mubr.msk.bf16.gmra.mxu0 %vm2082_vm8, %v9487_v25 }
 0x328   : > { %6710 = vmatprep.mubr.msk.bf16.mxu0 %vm2082_vm8, %v9492_v31 }
 0x32c   : > { %6477 = vmatmul.mubr.msk.bf16.gmra.mxu1 %vm2082_vm8, %v9336_v59 }
 0x32d   : > { %6482 = vmatprep.mubr.msk.bf16.mxu1 %vm2082_vm8, %v3984_v27 }
 0x32f   : > { %6711 = vmatmul.mubr.msk.bf16.gmra.mxu0 %vm2082_vm8, %v9508_v1 }
 0x330   : > { %6714 = vmatprep.mubr.msk.bf16.mxu0 %vm2082_vm8, %v9505_v38 }
 0x334   : > { %6483 = vmatmul.mubr.msk.bf16.vlgmr.msra.gmra.mxu1 %vm2082_vm8, %v9519_v36 }
 0x335   : > { %6515 = vmatpush3.bf16.msra.mxu1 %v4284_v42  ;;  %6486 = vmatprep.mubr.msk.bf16.mxu1 %vm2082_vm8, %v9379_v16 }
 0x336   : > { %6725 = vmatprep.subr.msk.bf16.mxu1 %vm2647_vm2, %v6862_v43 }
 0x337   : > { %6715 = vmatmul.mubr.msk.bf16.gmra.mxu0 %vm2082_vm8, %v3984_v27  ;;  %v9562_v27 = vpop.f32.mrf.mxu1 }
 0x339   : > { %v9564_v3 = vpop.f32.mrf.mxu1 }
 0x33b   : > { %v9570_v51 = vpop.f32.mrf.mxu1 }
 0x33c   : > { %6487 = vmatmul.mubr.msk.bf16.gmra.mxu1 %vm2082_vm8, %v9392_v11 }
 0x33d   : > { %6490 = vmatprep.mubr.msk.bf16.mxu1 %vm2082_vm8, %v9397_v14  ;;  %v9572_v5 = vpop.f32.mrf.mxu1 }
 0x33f   : > { %v9578_v56 = vpop.f32.mrf.mxu1 }
 0x341   : > { %v9580_v19 = vpop.f32.mrf.mxu1 }
 0x343   : > { %v9585_v42 = vpop.f32.mrf.mxu1 }
 0x344   : > { %6491 = vmatmul.mubr.msk.bf16.gmra.mxu1 %vm2082_vm8, %v9410_v21 }
 0x345   : > { %6494 = vmatprep.mubr.msk.bf16.mxu1 %vm2082_vm8, %v9415_v17 }
 0x34c   : > { %6495 = vmatmul.mubr.msk.bf16.gmra.mxu1 %vm2082_vm8, %v9428_v6 }
 0x34d   : > { %6498 = vmatprep.mubr.msk.bf16.mxu1 %vm2082_vm8, %v9433_v63 }
 0x354   : > { %6499 = vmatmul.mubr.msk.bf16.gmra.mxu1 %vm2082_vm8, %v9446_v60 }
 0x355   : > { %6502 = vmatprep.mubr.msk.bf16.mxu1 %vm2082_vm8, %v9451_v18 }
 0x35c   : > { %6503 = vmatmul.mubr.msk.bf16.gmra.mxu1 %vm2082_vm8, %v9465_v52 }
 0x35d   : > { %6506 = vmatprep.mubr.msk.bf16.mxu1 %vm2082_vm8, %v9470_v30 }
 0x364   : > { %6507 = vmatmul.mubr.msk.bf16.gmra.mxu1 %vm2082_vm8, %v9487_v25 }
 0x365   : > { %6510 = vmatprep.mubr.msk.bf16.mxu1 %vm2082_vm8, %v9492_v31 }
 0x36c   : > { %6511 = vmatmul.mubr.msk.bf16.gmra.mxu1 %vm2082_vm8, %v9508_v1 }
 0x36d   : > { %6516 = vmatprep.mubr.msk.bf16.mxu1 %vm2082_vm8, %v8637_v2  ;;  %v9593_v2 = vpop.f32.mrf.mxu1 }
 0x36f   : > { %v9595_v43 = vpop.f32.mrf.mxu1 }
 0x371   : > { %v9601_v7 = vpop.f32.mrf.mxu1 }
 0x374   : > { %6517 = vmatmul.mubr.msk.bf16.vlgmr.msra.gmra.mxu1 %vm2082_vm8, %v8752_v61  ;;  %v9603_v61 = vpop.f32.mrf.mxu1 }
 0x375   : > { %6719 = vmatpush3.bf16.msra.mxu1 %v8946_v28  ;;  %6520 = vmatprep.mubr.msk.bf16.mxu1 %vm2082_vm8, %v8878_v34 }
 0x376   : > { %6726 = vmatprep.subr.msk.bf16.mxu1 %vm2647_vm2, %v6035_v54  ;;  %v9609_v34 = vpop.f32.mrf.mxu1 }
 0x378   : > { %v9611_v28 = vpop.f32.mrf.mxu1 }
 0x379   : > { %10544 = vst [vmem:[#allocation14_spill] sm:$0xff] %v9611_v28 }
 0x37c   : > { %6521 = vmatmul.mubr.msk.bf16.gmra.mxu1 %vm2082_vm8, %v8959_v9  ;;  %v9617_v9 = vpop.f32.mrf.mxu1 }
 0x37d   : > { %6524 = vmatprep.mubr.msk.bf16.mxu1 %vm2082_vm8, %v8997_v49  ;;  %10545 = vst [vmem:[#allocation15_spill] sm:$0xff] %v9617_v9 }
 0x37e   : > { %v9619_v49 = vpop.f32.mrf.mxu1 }
 0x37f   : > { %10546 = vst [vmem:[#allocation16_spill] sm:$0xff] %v9619_v49 }
 0x380   : > { %v9621_v35 = vpop.f32.mrf.mxu1 }
 0x381   : > { %10547 = vst [vmem:[#allocation17_spill] sm:$0xff] %v9621_v35 }
 0x384   : > { %6525 = vmatmul.mubr.msk.bf16.gmra.mxu1 %vm2082_vm8, %v9033_v22  ;;  %v9627_v22 = vpop.f32.mrf.mxu1 }
 0x385   : > { %6528 = vmatprep.mubr.msk.bf16.mxu1 %vm2082_vm8, %v9072_v58  ;;  %10548 = vst [vmem:[#allocation18_spill] sm:$0xff] %v9627_v22 }
 0x386   : > { %v9629_v58 = vpop.f32.mrf.mxu1 }
 0x387   : > { %10549 = vst [vmem:[#allocation19_spill] sm:$0xff] %v9629_v58  ;;  %v4479_v58 = vshrl.u32 %v9366_v8, 16 }
 0x38c   : > { %6529 = vmatmul.mubr.msk.bf16.gmra.mxu1 %vm2082_vm8, %v9119_v44  ;;  %v9635_v44 = vpop.f32.mrf.mxu1 }
 0x38d   : > { %6532 = vmatprep.mubr.msk.bf16.mxu1 %vm2082_vm8, %v9160_v62  ;;  %10550 = vst [vmem:[#allocation20_spill] sm:$0xff] %v9635_v44  ;;  %v4486_v44 = vshll.u32 %v9481_v32, 16 }
 0x38e   : > { %v9637_v62 = vpop.f32.mrf.mxu1 }
 0x38f   : > { %10551 = vst [vmem:[#allocation21_spill] sm:$0xff] %v9637_v62  ;;  %v9658_v62 = vpop.f32.mrf.mxu0 }
 0x390   : > { %10553 = vst [vmem:[#allocation23_spill] sm:$0xff] %v9658_v62 }
 0x391   : > { %v9674_v62 = vpop.f32.mrf.mxu0 }
 0x392   : > { %10554 = vst [vmem:[#allocation24_spill] sm:$0xff] %v9674_v62 }
 0x393   : > { %v9681_v35 = vpop.f32.mrf.mxu0 }
 0x394   : > { %6533 = vmatmul.mubr.msk.bf16.gmra.mxu1 %vm2082_vm8, %v9193_v50  ;;  %v9643_v50 = vpop.f32.mrf.mxu1  ;;  %10555 = vst [vmem:[#allocation25_spill] sm:$0xff] %v9681_v35 }
 0x395   : > { %6536 = vmatprep.mubr.msk.bf16.mxu1 %vm2082_vm8, %v9229_v20  ;;  %10552 = vst [vmem:[#allocation22_spill] sm:$0xff] %v9643_v50  ;;  %v4702_v50 = vsel %vm2647_vm2, %v6035_v54, 0  ;;  %v9694_v62 = vpop.f32.mrf.mxu0 }
 0x396   : > { %v9645_v20 = vpop.f32.mrf.mxu1  ;;  %10557 = vst [vmem:[#allocation27_spill] sm:$0xff] %v9694_v62 }
 0x39c   : > { %6537 = vmatmul.mubr.msk.bf16.gmra.mxu1 %vm2082_vm8, %v9250_v10 }
 0x39d   : > { %6540 = vmatprep.mubr.msk.bf16.mxu1 %vm2082_vm8, %v9274_v15  ;;  %v4481_v15 = vshll.u32 %v9366_v8, 16 }
 0x39f   : > { %v4483_v22 = vrot.slane %v4481_v15, 1 }
 0x3a1   : > { %v4484_v32 = vor.u32 %v4483_v22, %v4479_v58 }
 0x3a4   : > { %6541 = vmatmul.mubr.msk.bf16.gmra.mxu1 %vm2082_vm8, %v9307_v12 }
 0x3a5   : > { %6544 = vmatprep.mubr.msk.bf16.mxu1 %vm2082_vm8, %v9336_v59 }
 0x3ac   : > { %v9647_v53 = vpop.f32.mrf.mxu1  ;;  %6545 = vmatmul.mubr.msk.bf16.gmra.mxu1 %vm2082_vm8, %v9366_v8  ;;  %v4488_v8 = vrot.slane %v4486_v44, 1  ;;  %v9700_v44 = vpop.f32.mrf.mxu0 }
 0x3ad   : > { %6574 = vmatprep.mubr.msk.bf16.mxu1 %vm2082_vm8, %v9293_v0  ;;  %v6068_v0 = vld [vmem:[%s10516_s3 + $0x1c] sm:$0xf]  ;;  %10558 = vst [vmem:[#allocation28_spill] sm:$0xff] %v9700_v44 }
 0x3ae   : > { %v9653_v10 = vpop.f32.mrf.mxu1 }
 0x3b0   : > { %v9656_v12 = vpop.f32.mrf.mxu1 }
 0x3b2   : > { %v9660_v59 = vpop.f32.mrf.mxu1 }
 0x3b4   : > { %v9668_v23 = vpop.f32.mrf.mxu1  ;;  %6575 = vmatmul.mubr.msk.bf16.vlgmr.msra.gmra.mxu1 %vm2082_vm8, %v9325_v33  ;;  %v9686_v33 = vsel %vm3348_vm5, %v4484_v32, %v4488_v8  ;;  %v5115_v8 = vsel %vm2647_vm2, %v6068_v0, 0 }
 0x3b5   : > { %6583 = vmatpush3.bf16.msra.mxu1 %v4702_v50  ;;  %6578 = vmatprep.mubr.msk.bf16.mxu1 %vm2082_vm8, %v9349_v39  ;;  %10556 = vst [vmem:[#allocation26_spill] sm:$0xff] %v9686_v33 }
 0x3b6   : > { %v9676_v54 = vpop.f32.mrf.mxu1  ;;  %6728 = vmatprep.subr.msk.bf16.mxu1 %vm2647_vm2, %v6068_v0 }
 0x3b8   : > { %v9679_v15 = vpop.f32.mrf.mxu1 }
 0x3ba   : > { %v9683_v40 = vpop.f32.mrf.mxu1 }
 0x3bc   : > { %v9688_v50 = vpop.f32.mrf.mxu1  ;;  %6579 = vmatmul.mubr.msk.bf16.gmra.mxu1 %vm2082_vm8, %v9686_v33 }
 0x3bd   : > { %6584 = vmatprep.mubr.msk.bf16.mxu1 %vm2082_vm8, %v9519_v36  ;;  %v9711_v36 = vpop.f32.mrf.mxu0 }
 0x3be   : > { %v9696_v22 = vpop.f32.mrf.mxu1  ;;  %10559 = vst [vmem:[#allocation29_spill] sm:$0xff] %v9711_v36 }
 0x3bf   : > { %v9717_v44 = vpop.f32.mrf.mxu0 }
 0x3c0   : > { %v9698_v58 = vpop.f32.mrf.mxu1  ;;  %10560 = vst [vmem:[#allocation30_spill] sm:$0xff] %v9717_v44 }
 0x3c2   : > { %v9702_v35 = vpop.f32.mrf.mxu1 }
 0x3c4   : > { %v9705_v32 = vpop.f32.mrf.mxu1  ;;  %6585 = vmatmul.mubr.msk.bf16.vlgmr.msra.gmra.mxu1 %vm2082_vm8, %v9379_v16  ;;  %v9727_v16 = vpop.f32.mrf.mxu0 }
 0x3c5   : > { %6651 = vmatpush3.bf16.msra.mxu1 %v5115_v8  ;;  %6588 = vmatprep.mubr.msk.bf16.mxu1 %vm2082_vm8, %v9392_v11  ;;  %10561 = vst [vmem:[#allocation31_spill] sm:$0xff] %v9727_v16 }
 0x3c6   : > { %v9713_v62 = vpop.f32.mrf.mxu1  ;;  %v9733_v36 = vpop.f32.mrf.mxu0 }
 0x3c7   : > { %10562 = vst [vmem:[#allocation32_spill] sm:$0xff] %v9733_v36 }
 0x3c8   : > { %v9715_v33 = vpop.f32.mrf.mxu1 }
 0x3ca   : > { %v9719_v39 = vpop.f32.mrf.mxu1 }
 0x3cc   : > { %v9721_v0 = vpop.f32.mrf.mxu1  ;;  %6589 = vmatmul.mubr.msk.bf16.gmra.mxu1 %vm2082_vm8, %v9397_v14  ;;  %v9743_v14 = vpop.f32.mrf.mxu0 }
 0x3cd   : > { %6592 = vmatprep.mubr.msk.bf16.mxu1 %vm2082_vm8, %v9410_v21  ;;  %10563 = vst [vmem:[#allocation33_spill] sm:$0xff] %v9743_v14 }
 0x3ce   : > { %v9729_v11 = vpop.f32.mrf.mxu1  ;;  %v9749_v9 = vpop.f32.mrf.mxu0 }
 0x3cf   : > { %10565 = vst [vmem:[#allocation35_spill] sm:$0xff] %v9749_v9 }
 0x3d0   : > { %v9731_v8 = vpop.f32.mrf.mxu1 }
 0x3d2   : > { %v9735_v49 = vpop.f32.mrf.mxu1 }
 0x3d4   : > { %v9737_v44 = vpop.f32.mrf.mxu1  ;;  %6593 = vmatmul.mubr.msk.bf16.gmra.mxu1 %vm2082_vm8, %v9415_v17  ;;  %v9759_v17 = vpop.f32.mrf.mxu0 }
 0x3d5   : > { %6596 = vmatprep.mubr.msk.bf16.mxu1 %vm2082_vm8, %v9428_v6  ;;  %10566 = vst [vmem:[#allocation36_spill] sm:$0xff] %v9759_v17 }
 0x3d6   : > { %v9745_v21 = vpop.f32.mrf.mxu1  ;;  %v9765_v46 = vpop.f32.mrf.mxu0 }
 0x3d7   : > { %10569 = vst [vmem:[#allocation39_spill] sm:$0xff] %v9765_v46 }
 0x3d8   : > { %v9747_v16 = vpop.f32.mrf.mxu1 }
 0x3d9   : > { %10564 = vst [vmem:[#allocation34_spill] sm:$0xff] %v9747_v16 }
 0x3da   : > { %v9751_v28 = vpop.f32.mrf.mxu1 }
 0x3dc   : > { %v9753_v36 = vpop.f32.mrf.mxu1  ;;  %6597 = vmatmul.mubr.msk.bf16.gmra.mxu1 %vm2082_vm8, %v9433_v63  ;;  %v9775_v63 = vpop.f32.mrf.mxu0 }
 0x3dd   : > { %6600 = vmatprep.mubr.msk.bf16.mxu1 %vm2082_vm8, %v9446_v60  ;;  %10571 = vst [vmem:[#allocation41_spill] sm:$0xff] %v9775_v63 }
 0x3de   : > { %v9761_v6 = vpop.f32.mrf.mxu1 }
 0x3df   : > { %10567 = vst [vmem:[#allocation37_spill] sm:$0xff] %v9761_v6  ;;  %v9781_v6 = vpop.f32.mrf.mxu0 }
 0x3e0   : > { %v9763_v14 = vpop.f32.mrf.mxu1  ;;  %10573 = vst [vmem:[#allocation43_spill] sm:$0xff] %v9781_v6 }
 0x3e1   : > { %10568 = vst [vmem:[#allocation38_spill] sm:$0xff] %v9763_v14 }
 0x3e2   : > { %v9767_v16 = vpop.f32.mrf.mxu1 }
 0x3e3   : > { %10570 = vst [vmem:[#allocation40_spill] sm:$0xff] %v9767_v16 }
 0x3e4   : > { %v9769_v9 = vpop.f32.mrf.mxu1  ;;  %6601 = vmatmul.mubr.msk.bf16.gmra.mxu1 %vm2082_vm8, %v9451_v18 }
 0x3e5   : > { %6604 = vmatprep.mubr.msk.bf16.mxu1 %vm2082_vm8, %v9465_v52  ;;  %v9793_v52 = vpop.f32.mrf.mxu0 }
 0x3e6   : > { %v9777_v60 = vpop.f32.mrf.mxu1  ;;  %10575 = vst [vmem:[#allocation45_spill] sm:$0xff] %v9793_v52 }
 0x3e7   : > { %v9798_v6 = vpop.f32.mrf.mxu0 }
 0x3e8   : > { %v9779_v17 = vpop.f32.mrf.mxu1  ;;  %10576 = vst [vmem:[#allocation46_spill] sm:$0xff] %v9798_v6 }
 0x3e9   : > { %10572 = vst [vmem:[#allocation42_spill] sm:$0xff] %v9779_v17 }
 0x3ea   : > { %v3923_v14 = vpop.f32.mrf.mxu1 }
 0x3eb   : > { %v9784_v46 = vadd.f32 %v3923_v14, %v9645_v20 }
 0x3ec   : > { %v6478_v16 = vpop.f32.mrf.mxu1  ;;  %6605 = vmatmul.mubr.msk.bf16.gmra.mxu1 %vm2082_vm8, %v9470_v30 }
 0x3ed   : > { %10574 = vst [vmem:[#allocation44_spill] sm:$0xff] %v9784_v46  ;;  %v9789_v18 = vadd.f32 %v6478_v16, %v9647_v53  ;;  %6608 = vmatprep.mubr.msk.bf16.mxu1 %vm2082_vm8, %v9487_v25  ;;  %v3833_v53 = vadd.f32 %v9668_v23, %v9538_v55  ;;  %v9808_v25 = vpop.f32.mrf.mxu0  ;;  %v3836_v23 = vadd.f32 %v9679_v15, %v9546_v47 }
 0x3ee   : > { %v3936_v63 = vpop.f32.mrf.mxu1  ;;  %10577 = vst [vmem:[#allocation47_spill] sm:$0xff] %v9808_v25  ;;  %v3841_v47 = vadd.f32 %v9696_v22, %v9556_v26 }
 0x3ef   : > { %v9796_v17 = vadd.f32 %v3936_v63, %v9653_v10  ;;  %v3825_v10 = vadd.f32 %v9676_v54, %v9544_v41  ;;  %v9822_v55 = vpop.f32.mrf.mxu0  ;;  %v3849_v54 = vadd.f32 %v9688_v50, %v9554_v4  ;;  %v3852_v4 = vadd.f32 %v9698_v58, %v9562_v27 }
 0x3f0   : > { %v6479_v20 = vpop.f32.mrf.mxu1  ;;  %10578 = vst [vmem:[#allocation48_spill] sm:$0xff] %v9822_v55  ;;  %v3857_v27 = vadd.f32 %v9713_v62, %v9572_v5 }
 0x3f1   : > { %v9801_v14 = vadd.f32 %v6479_v20, %v9656_v12 }
 0x3f2   : > { %v3939_v46 = vpop.f32.mrf.mxu1 }
 0x3f3   : > { %v9806_v30 = vadd.f32 %v3939_v46, %v9660_v59 }
 0x3f4   : > { %v6484_v16 = vpop.f32.mrf.mxu1  ;;  %6609 = vmatmul.mubr.msk.bf16.gmra.mxu1 %vm2082_vm8, %v9492_v31  ;;  %v3828_v31 = vadd.f32 %v9683_v40, %v9552_v29 }
 0x3f5   : > { %v9814_v63 = vadd.f32 %v6484_v16, %v3833_v53  ;;  %6612 = vmatprep.mubr.msk.bf16.mxu1 %vm2082_vm8, %v9508_v1  ;;  %v9832_v1 = vpop.f32.mrf.mxu0 }
 0x3f6   : > { %v4119_v12 = vpop.f32.mrf.mxu1  ;;  %10579 = vst [vmem:[#allocation49_spill] sm:$0xff] %v9832_v1 }
 0x3f7   : > { %v9820_v46 = vadd.f32 %v4119_v12, %v3825_v10  ;;  %v9842_v40 = vpop.f32.mrf.mxu0 }
 0x3f8   : > { %v6485_v59 = vpop.f32.mrf.mxu1  ;;  %10580 = vst [vmem:[#allocation50_spill] sm:$0xff] %v9842_v40 }
 0x3f9   : > { %v9826_v20 = vadd.f32 %v6485_v59, %v3836_v23  ;;  %v9852_v26 = vpop.f32.mrf.mxu0 }
 0x3fa   : > { %v4122_v41 = vpop.f32.mrf.mxu1  ;;  %10581 = vst [vmem:[#allocation51_spill] sm:$0xff] %v9852_v26 }
 0x3fb   : > { %v9830_v53 = vadd.f32 %v4122_v41, %v3828_v31 }
 0x3fc   : > { %v6488_v16 = vpop.f32.mrf.mxu1  ;;  %6613 = vmatmul.mubr.msk.bf16.gmra.mxu1 %vm2082_vm8, %v9505_v38  ;;  %v3844_v38 = vadd.f32 %v9702_v35, %v9564_v3  ;;  %v9866_v35 = vpop.f32.mrf.mxu0 }
 0x3fd   : > { %v9838_v15 = vadd.f32 %v6488_v16, %v3849_v54  ;;  %6652 = vmatprep.mubr.msk.bf16.mxu1 %vm2082_vm8, %v8823_v48  ;;  %v3865_v48 = vadd.f32 %v9705_v32, %v9570_v51  ;;  %10582 = vst [vmem:[#allocation52_spill] sm:$0xff] %v9866_v35  ;;  %v3868_v51 = vadd.f32 %v9715_v33, %v9578_v56 }
 0x3fe   : > { %v4135_v29 = vpop.f32.mrf.mxu1  ;;  %v9876_v5 = vpop.f32.mrf.mxu0  ;;  %v3873_v33 = vadd.f32 %v9729_v11, %v9593_v2 }
 0x3ff   : > { %v9846_v50 = vadd.f32 %v4135_v29, %v3841_v47  ;;  %10583 = vst [vmem:[#allocation53_spill] sm:$0xff] %v9876_v5 }
 0x400   : > { %v6489_v10 = vpop.f32.mrf.mxu1 }
 0x401   : > { %v9850_v12 = vadd.f32 %v6489_v10, %v3852_v4 }
 0x402   : > { %v4138_v22 = vpop.f32.mrf.mxu1 }
 0x403   : > { %v9856_v23 = vadd.f32 %v4138_v22, %v3844_v38  ;;  %v10585_v22 = vld [vmem:[#allocation14_spill] sm:$0xff] }
 0x404   : > { %v6492_v59 = vpop.f32.mrf.mxu1  ;;  %6653 = vmatmul.mubr.msk.bf16.vlgmr.msra.gmra.mxu1 %vm2082_vm8, %v8917_v45  ;;  %v3860_v45 = vadd.f32 %v9719_v39, %v9580_v19  ;;  %v9890_v39 = vpop.f32.mrf.mxu0 }
 0x405   : > { %v9862_v58 = vadd.f32 %v6492_v59, %v3865_v48  ;;  %6656 = vmatprep.mubr.msk.bf16.mxu1 %vm2082_vm8, %v8982_v57  ;;  %v3881_v57 = vadd.f32 %v9721_v0, %v9585_v42  ;;  %v3884_v42 = vadd.f32 %v9731_v8, %v9595_v43  ;;  %v3889_v43 = vadd.f32 %v9745_v21, %v9609_v34  ;;  %v10586_v48 = vld [vmem:[#allocation34_spill] sm:$0xff] }
 0x406   : > { %v4151_v3 = vpop.f32.mrf.mxu1  ;;  %v9900_v2 = vpop.f32.mrf.mxu0 }
 0x407   : > { %v9870_v32 = vadd.f32 %v4151_v3, %v3857_v27  ;;  %v10587_v27 = vld [vmem:[#allocation15_spill] sm:$0xff] }
 0x408   : > { %v6493_v31 = vpop.f32.mrf.mxu1 }
 0x409   : > { %v9874_v41 = vadd.f32 %v6493_v31, %v3868_v51  ;;  %v10588_v51 = vld [vmem:[#allocation16_spill] sm:$0xff] }
 0x40a   : > { %v4154_v62 = vpop.f32.mrf.mxu1  ;;  %v3913_v31 = vadd.f32 %v9753_v36, %v10588_v51 }
 0x40b   : > { %v9880_v54 = vadd.f32 %v4154_v62, %v3860_v45 }
 0x40c   : > { %v6496_v16 = vpop.f32.mrf.mxu1  ;;  %6657 = vmatmul.mubr.msk.bf16.gmra.mxu1 %vm2082_vm8, %v9016_v37  ;;  %v3876_v37 = vadd.f32 %v9735_v49, %v9601_v7  ;;  %v10584_v7 = vld [vmem:[#allocation6_spill] sm:$0xff]  ;;  %v9914_v49 = vpop.f32.mrf.mxu0 }
 0x40d   : > { %v9886_v56 = vadd.f32 %v6496_v16, %v3881_v57  ;;  %6660 = vmatprep.mubr.msk.bf16.mxu1 %vm2082_vm8, %v9056_v24  ;;  %v3897_v24 = vadd.f32 %v9737_v44, %v9603_v61  ;;  %v3900_v61 = vadd.f32 %v10586_v48, %v10585_v22  ;;  %v10589_v57 = vld [vmem:[#allocation7_spill] sm:$0xff]  ;;  %v10590_v16 = vld [vmem:[#allocation17_spill] sm:$0xff] }
 0x40e   : > { %v4167_v19 = vpop.f32.mrf.mxu1  ;;  %v9924_v34 = vpop.f32.mrf.mxu0 }
 0x40f   : > { %v9894_v0 = vadd.f32 %v4167_v19, %v3873_v33  ;;  %v10591_v33 = vld [vmem:[#allocation37_spill] sm:$0xff] }
 0x410   : > { %v6497_v47 = vpop.f32.mrf.mxu1  ;;  %v3905_v19 = vadd.f32 %v10591_v33, %v10590_v16  ;;  %v10600_v33 = vld [vmem:[#allocation10_spill] sm:$0xff] }
 0x411   : > { %v9898_v29 = vadd.f32 %v6497_v47, %v3884_v42  ;;  %v9938_v47 = vpop.f32.mrf.mxu0 }
 0x412   : > { %v4170_v11 = vpop.f32.mrf.mxu1 }
 0x413   : > { %v9904_v4 = vadd.f32 %v4170_v11, %v3876_v37  ;;  %v10593_v11 = vld [vmem:[#allocation18_spill] sm:$0xff] }
 0x414   : > { %v6500_v10 = vpop.f32.mrf.mxu1  ;;  %6661 = vmatmul.mubr.msk.bf16.gmra.mxu1 %vm2082_vm8, %v9095_v13  ;;  %v3892_v13 = vadd.f32 %v9751_v28, %v10587_v27  ;;  %v10592_v28 = vld [vmem:[#allocation8_spill] sm:$0xff] }
 0x415   : > { %v9910_v8 = vadd.f32 %v6500_v10, %v3897_v24  ;;  %6664 = vmatprep.mubr.msk.bf16.mxu1 %vm2082_vm8, %v10584_v7  ;;  %v10594_v24 = vld [vmem:[#allocation38_spill] sm:$0xff]  ;;  %v10595_v7 = vld [vmem:[#allocation19_spill] sm:$0xff]  ;;  %v10597_v27 = vld [vmem:[#allocation20_spill] sm:$0xff] }
 0x416   : > { %v4183_v38 = vpop.f32.mrf.mxu1  ;;  %v3916_v36 = vadd.f32 %v10594_v24, %v10593_v11  ;;  %v10602_v11 = vld [vmem:[#allocation42_spill] sm:$0xff] }
 0x417   : > { %v9918_v44 = vadd.f32 %v4183_v38, %v3889_v43  ;;  %v10596_v38 = vld [vmem:[#allocation40_spill] sm:$0xff] }
 0x418   : > { %v6501_v59 = vpop.f32.mrf.mxu1  ;;  %v3908_v22 = vadd.f32 %v10596_v38, %v10595_v7 }
 0x419   : > { %v9922_v3 = vadd.f32 %v6501_v59, %v3900_v61  ;;  %v9948_v61 = vpop.f32.mrf.mxu0 }
 0x41a   : > { %v4186_v21 = vpop.f32.mrf.mxu1 }
 0x41b   : > { %v9928_v45 = vadd.f32 %v4186_v21, %v3892_v13  ;;  %v3929_v13 = vadd.f32 %v9769_v9, %v10597_v27  ;;  %v10604_v27 = vld [vmem:[#allocation11_spill] sm:$0xff] }
 0x41c   : > { %v6504_v62 = vpop.f32.mrf.mxu1  ;;  %6665 = vmatmul.mubr.msk.bf16.gmra.mxu1 %vm2082_vm8, %v10589_v57 }
 0x41d   : > { %v9934_v42 = vadd.f32 %v6504_v62, %v3913_v31  ;;  %6668 = vmatprep.mubr.msk.bf16.mxu1 %vm2082_vm8, %v10592_v28  ;;  %v10598_v31 = vld [vmem:[#allocation9_spill] sm:$0xff] }
 0x41e   : > { %v4199_v37 = vpop.f32.mrf.mxu1  ;;  %v10599_v62 = vld [vmem:[#allocation21_spill] sm:$0xff] }
 0x41f   : > { %v9942_v10 = vadd.f32 %v4199_v37, %v3905_v19  ;;  %v3921_v57 = vadd.f32 %v9777_v60, %v10599_v62  ;;  %v9962_v19 = vpop.f32.mrf.mxu0  ;;  %v10601_v37 = vld [vmem:[#allocation22_spill] sm:$0xff]  ;;  %v10603_v60 = vld [vmem:[#allocation44_spill] sm:$0xff] }
 0x420   : > { %v6505_v43 = vpop.f32.mrf.mxu1  ;;  %v3932_v9 = vadd.f32 %v10602_v11, %v10601_v37 }
 0x421   : > { %v9946_v48 = vadd.f32 %v6505_v43, %v3916_v36  ;;  %v9970_v7 = vpop.f32.mrf.mxu0 }
 0x422   : > { %v4202_v59 = vpop.f32.mrf.mxu1 }
 0x423   : > { %v9952_v21 = vadd.f32 %v4202_v59, %v3908_v22 }
 0x424   : > { %v6508_v51 = vpop.f32.mrf.mxu1  ;;  %6669 = vmatmul.mubr.msk.bf16.gmra.mxu1 %vm2082_vm8, %v10598_v31  ;;  %v9982_v31 = vpop.f32.mrf.mxu0 }
 0x425   : > { %v9958_v16 = vadd.f32 %v6508_v51, %v3929_v13  ;;  %6672 = vmatprep.mubr.msk.bf16.mxu1 %vm2082_vm8, %v10600_v33  ;;  %v10605_v51 = vld [vmem:[#allocation12_spill] sm:$0xff] }
 0x426   : > { %v4215_v28 = vpop.f32.mrf.mxu1  ;;  %v9990_v37 = vpop.f32.mrf.mxu0 }
 0x427   : > { %v9966_v24 = vadd.f32 %v4215_v28, %v3921_v57 }
 0x428   : > { %v6509_v36 = vpop.f32.mrf.mxu1 }
 0x429   : > { %v9968_v43 = vadd.f32 %v6509_v36, %v3932_v9  ;;  %v10606_v36 = vld [vmem:[#allocation13_spill] sm:$0xff] }
 0x42a   : > { %v4218_v38 = vpop.f32.mrf.mxu1 }
 0x42b   : > { %v9973_v22 = vadd.f32 %v4218_v38, %v10603_v60  ;;  %v10607_v60 = vld [vmem:[#allocation26_spill] sm:$0xff] }
 0x42c   : > { %v6512_v59 = vpop.f32.mrf.mxu1  ;;  %6673 = vmatmul.mubr.msk.bf16.gmra.mxu1 %vm2082_vm8, %v10604_v27 }
 0x42d   : > { %v9978_v13 = vadd.f32 %v6512_v59, %v9789_v18  ;;  %6676 = vmatprep.mubr.msk.bf16.mxu1 %vm2082_vm8, %v10605_v51 }
 0x42e   : > { %v4231_v62 = vpop.f32.mrf.mxu1 }
 0x42f   : > { %v9985_v57 = vadd.f32 %v4231_v62, %v9796_v17  ;;  %v10002_v17 = vpop.f32.mrf.mxu0 }
 0x430   : > { %v6513_v33 = vpop.f32.mrf.mxu1 }
 0x431   : > { %v9988_v28 = vadd.f32 %v6513_v33, %v9801_v14  ;;  %v10010_v51 = vpop.f32.mrf.mxu0 }
 0x432   : > { %v4234_v11 = vpop.f32.mrf.mxu1 }
 0x433   : > { %v9993_v9 = vadd.f32 %v4234_v11, %v9806_v30  ;;  %v10608_v11 = vld [vmem:[#allocation5_spill] sm:$0xff] }
 0x434   : > { %v6518_v18 = vpop.f32.mrf.mxu1  ;;  %6677 = vmatmul.mubr.msk.bf16.gmra.mxu1 %vm2082_vm8, %v10606_v36  ;;  %v10020_v36 = vpop.f32.mrf.mxu0 }
 0x435   : > { %v9998_v38 = vadd.f32 %v6518_v18, %v9814_v63  ;;  %6680 = vmatprep.mubr.msk.bf16.mxu1 %vm2082_vm8, %v10607_v60  ;;  %10609 = vst [vmem:[#allocation6_spill] sm:$0xff] %v10020_v36 }
 0x436   : > { %v4320_v14 = vpop.f32.mrf.mxu1 }
 0x437   : > { %v10005_v59 = vadd.f32 %v4320_v14, %v9820_v46 }
 0x438   : > { %v6519_v27 = vpop.f32.mrf.mxu1 }
 0x439   : > { %v10008_v30 = vadd.f32 %v6519_v27, %v9826_v20  ;;  %v10028_v27 = vpop.f32.mrf.mxu0 }
 0x43a   : > { %v4323_v62 = vpop.f32.mrf.mxu1  ;;  %10610 = vst [vmem:[#allocation14_spill] sm:$0xff] %v10028_v27 }
 0x43b   : > { %v10013_v33 = vadd.f32 %v4323_v62, %v9830_v53 }
 0x43c   : > { %v6522_v63 = vpop.f32.mrf.mxu1  ;;  %6681 = vmatmul.mubr.msk.bf16.gmra.mxu1 %vm2082_vm8, %v10608_v11 }
 0x43d   : > { %v10018_v18 = vadd.f32 %v6522_v63, %v9838_v15  ;;  %v10036_v63 = vpop.f32.mrf.mxu0 }
 0x43e   : > { %v4336_v46 = vpop.f32.mrf.mxu1  ;;  %10611 = vst [vmem:[#allocation34_spill] sm:$0xff] %v10036_v63 }
 0x43f   : > { %v10023_v60 = vadd.f32 %v4336_v46, %v9846_v50 }
 0x440   : > { %v6523_v20 = vpop.f32.mrf.mxu1 }
 0x441   : > { %v10026_v14 = vadd.f32 %v6523_v20, %v9850_v12  ;;  %v10044_v20 = vpop.f32.mrf.mxu0 }
 0x442   : > { %v4339_v53 = vpop.f32.mrf.mxu1  ;;  %10612 = vst [vmem:[#allocation15_spill] sm:$0xff] %v10044_v20 }
 0x443   : > { %v10031_v62 = vadd.f32 %v4339_v53, %v9856_v23 }
 0x444   : > { %v6526_v11 = vpop.f32.mrf.mxu1 }
 0x445   : > { %v10034_v15 = vadd.f32 %v6526_v11, %v9862_v58  ;;  %v10052_v11 = vpop.f32.mrf.mxu0 }
 0x446   : > { %v4352_v5 = vpop.f32.mrf.mxu1  ;;  %10613 = vst [vmem:[#allocation16_spill] sm:$0xff] %v10052_v11 }
 0x447   : > { %v10039_v50 = vadd.f32 %v4352_v5, %v9870_v32 }
 0x448   : > { %v6527_v46 = vpop.f32.mrf.mxu1 }
 0x449   : > { %v10042_v12 = vadd.f32 %v6527_v46, %v9874_v41  ;;  %v10060_v46 = vpop.f32.mrf.mxu0 }
 0x44a   : > { %v4355_v35 = vpop.f32.mrf.mxu1  ;;  %10614 = vst [vmem:[#allocation7_spill] sm:$0xff] %v10060_v46 }
 0x44b   : > { %v10047_v23 = vadd.f32 %v4355_v35, %v9880_v54 }
 0x44c   : > { %v6530_v53 = vpop.f32.mrf.mxu1 }
 0x44d   : > { %v10050_v58 = vadd.f32 %v6530_v53, %v9886_v56  ;;  %v10068_v53 = vpop.f32.mrf.mxu0 }
 0x44e   : > { %v4368_v26 = vpop.f32.mrf.mxu1  ;;  %10617 = vst [vmem:[#allocation8_spill] sm:$0xff] %v10068_v53 }
 0x44f   : > { %v10055_v32 = vadd.f32 %v4368_v26, %v9894_v0 }
 0x450   : > { %v6531_v5 = vpop.f32.mrf.mxu1 }
 0x451   : > { %v10058_v41 = vadd.f32 %v6531_v5, %v9898_v29  ;;  %v10076_v5 = vpop.f32.mrf.mxu0 }
 0x452   : > { %v4371_v40 = vpop.f32.mrf.mxu1  ;;  %10620 = vst [vmem:[#allocation19_spill] sm:$0xff] %v10076_v5 }
 0x453   : > { %v10063_v35 = vadd.f32 %v4371_v40, %v9904_v4 }
 0x454   : > { %v6534_v54 = vpop.f32.mrf.mxu1 }
 0x455   : > { %10615 = vst [vmem:[#allocation17_spill] sm:$0xff] %v10063_v35  ;;  %v10066_v56 = vadd.f32 %v6534_v54, %v9910_v8  ;;  %v10084_v54 = vpop.f32.mrf.mxu0 }
 0x456   : > { %v4384_v11 = vpop.f32.mrf.mxu1  ;;  %10623 = vst [vmem:[#allocation9_spill] sm:$0xff] %v10084_v54 }
 0x457   : > { %10616 = vst [vmem:[#allocation37_spill] sm:$0xff] %v10066_v56  ;;  %v10071_v26 = vadd.f32 %v4384_v11, %v9918_v44 }
 0x458   : > { %v6535_v0 = vpop.f32.mrf.mxu1 }
 0x459   : > { %10618 = vst [vmem:[#allocation18_spill] sm:$0xff] %v10071_v26  ;;  %v10074_v29 = vadd.f32 %v6535_v0, %v9922_v3  ;;  %v10092_v0 = vpop.f32.mrf.mxu0 }
 0x45a   : > { %v4387_v46 = vpop.f32.mrf.mxu1  ;;  %10626 = vst [vmem:[#allocation22_spill] sm:$0xff] %v10092_v0 }
 0x45b   : > { %10619 = vst [vmem:[#allocation38_spill] sm:$0xff] %v10074_v29  ;;  %v10079_v40 = vadd.f32 %v4387_v46, %v9928_v45 }
 0x45c   : > { %v6538_v4 = vpop.f32.mrf.mxu1 }
 0x45d   : > { %10621 = vst [vmem:[#allocation40_spill] sm:$0xff] %v10079_v40  ;;  %v10082_v8 = vadd.f32 %v6538_v4, %v9934_v42  ;;  %v10098_v4 = vpop.f32.mrf.mxu0 }
 0x45e   : > { %v4400_v53 = vpop.f32.mrf.mxu1  ;;  %10628 = vst [vmem:[#allocation44_spill] sm:$0xff] %v10098_v4 }
 0x45f   : > { %10622 = vst [vmem:[#allocation20_spill] sm:$0xff] %v10082_v8  ;;  %v10087_v44 = vadd.f32 %v4400_v53, %v9942_v10 }
 0x460   : > { %v6539_v11 = vpop.f32.mrf.mxu1 }
 0x461   : > { %10624 = vst [vmem:[#allocation21_spill] sm:$0xff] %v10087_v44  ;;  %v10090_v3 = vadd.f32 %v6539_v11, %v9946_v48  ;;  %v10102_v44 = vpop.f32.mrf.mxu0 }
 0x462   : > { %v4403_v5 = vpop.f32.mrf.mxu1  ;;  %10629 = vst [vmem:[#allocation11_spill] sm:$0xff] %v10102_v44 }
 0x463   : > { %10625 = vst [vmem:[#allocation10_spill] sm:$0xff] %v10090_v3  ;;  %v10095_v45 = vadd.f32 %v4403_v5, %v9952_v21  ;;  %v10105_v0 = vpop.f32.mrf.mxu0 }
 0x464   : > { %v6542_v46 = vpop.f32.mrf.mxu1  ;;  %10630 = vst [vmem:[#allocation12_spill] sm:$0xff] %v10105_v0 }
 0x465   : > { %10627 = vst [vmem:[#allocation42_spill] sm:$0xff] %v10095_v45  ;;  %v4473_v42 = vadd.f32 %v6542_v46, %v9958_v16  ;;  %v10109_v46 = vpop.f32.mrf.mxu0 }
 0x466   : > { %v4416_v54 = vpop.f32.mrf.mxu1  ;;  %10631 = vst [vmem:[#allocation13_spill] sm:$0xff] %v10109_v46 }
 0x467   : > { %v4471_v8 = vadd.f32 %v4416_v54, %v9966_v24 }
 0x468   : > { %v6543_v10 = vpop.f32.mrf.mxu1 }
 0x469   : > { %v4474_v53 = vadd.f32 %v6543_v10, %v9968_v43  ;;  %v10113_v10 = vpop.f32.mrf.mxu0 }
 0x46a   : > { %v4419_v48 = vpop.f32.mrf.mxu1  ;;  %10632 = vst [vmem:[#allocation26_spill] sm:$0xff] %v10113_v10 }
 0x46b   : > { %v4472_v11 = vadd.f32 %v4419_v48, %v9973_v22 }
 0x46c   : > { %v6546_v21 = vpop.f32.mrf.mxu1 }
 0x46d   : > { %v4477_v5 = vadd.f32 %v6546_v21, %v9978_v13  ;;  %v10119_v13 = vpop.f32.mrf.mxu0 }
 0x46e   : > { %v4432_v45 = vpop.f32.mrf.mxu1  ;;  %10635 = vst [vmem:[#allocation55_spill] sm:$0xff] %v10119_v13 }
 0x46f   : > { %v4475_v16 = vadd.f32 %v4432_v45, %v9985_v57  ;;  %v10123_v45 = vpop.f32.mrf.mxu0 }
 0x470   : > { %v6547_v4 = vpop.f32.mrf.mxu1  ;;  %10637 = vst [vmem:[#allocation57_spill] sm:$0xff] %v10123_v45 }
 0x471   : > { %v4478_v24 = vadd.f32 %v6547_v4, %v9988_v28 }
 0x472   : > { %v4435_v54 = vpop.f32.mrf.mxu1 }
 0x473   : > { %v4476_v43 = vadd.f32 %v4435_v54, %v9993_v9  ;;  %v10129_v54 = vpop.f32.mrf.mxu0 }
 0x474   : > { %v6576_v44 = vpop.f32.mrf.mxu1  ;;  %10640 = vst [vmem:[#allocation60_spill] sm:$0xff] %v10129_v54 }
 0x475   : > { %v10115_v22 = vadd.f32 %v6576_v44, %v4473_v42  ;;  %v10135_v13 = vpop.f32.mrf.mxu0 }
 0x476   : > { %v4628_v48 = vpop.f32.mrf.mxu1  ;;  %10643 = vst [vmem:[#allocation63_spill] sm:$0xff] %v10135_v13 }
 0x477   : > { %10633 = vst [vmem:[#allocation5_spill] sm:$0xff] %v10115_v22  ;;  %v10117_v0 = vadd.f32 %v4628_v48, %v4471_v8  ;;  %v10139_v10 = vpop.f32.mrf.mxu0 }
 0x478   : > { %v6577_v21 = vpop.f32.mrf.mxu1  ;;  %10645 = vst [vmem:[#allocation65_spill] sm:$0xff] %v10139_v10 }
 0x479   : > { %10634 = vst [vmem:[#allocation54_spill] sm:$0xff] %v10117_v0  ;;  %v10121_v57 = vadd.f32 %v6577_v21, %v4474_v53 }
 0x47a   : > { %v4631_v46 = vpop.f32.mrf.mxu1 }
 0x47b   : > { %10636 = vst [vmem:[#allocation56_spill] sm:$0xff] %v10121_v57  ;;  %v10125_v28 = vadd.f32 %v4631_v46, %v4472_v11 }
 0x47c   : > { %v6580_v4 = vpop.f32.mrf.mxu1 }
 0x47d   : > { %10638 = vst [vmem:[#allocation58_spill] sm:$0xff] %v10125_v28  ;;  %v10127_v9 = vadd.f32 %v6580_v4, %v4477_v5  ;;  %v10141_v5 = vpop.f32.mrf.mxu0 }
 0x47e   : > { %v4644_v44 = vpop.f32.mrf.mxu1 }
 0x47f   : > { %10639 = vst [vmem:[#allocation59_spill] sm:$0xff] %v10127_v9  ;;  %v10131_v42 = vadd.f32 %v4644_v44, %v4475_v16  ;;  %v10143_v9 = vpop.f32.mrf.mxu0 }
 0x480   : > { %v6581_v8 = vpop.f32.mrf.mxu1 }
 0x481   : > { %10641 = vst [vmem:[#allocation61_spill] sm:$0xff] %v10131_v42  ;;  %v10133_v48 = vadd.f32 %v6581_v8, %v4478_v24  ;;  %v10149_v44 = vpop.f32.mrf.mxu0 }
 0x482   : > { %v4647_v53 = vpop.f32.mrf.mxu1 }
 0x483   : > { %10642 = vst [vmem:[#allocation62_spill] sm:$0xff] %v10133_v48  ;;  %v10137_v21 = vadd.f32 %v4647_v53, %v4476_v43  ;;  %v10155_v53 = vpop.f32.mrf.mxu0 }
 0x484   : > { %v6586_v45 = vpop.f32.mrf.mxu1 }
 0x485   : > { %10644 = vst [vmem:[#allocation64_spill] sm:$0xff] %v10137_v21  ;;  %v10161_v21 = vpop.f32.mrf.mxu0 }
 0x486   : > { %v4738_v11 = vpop.f32.mrf.mxu1 }
 0x487   : > { %v10167_v28 = vpop.f32.mrf.mxu0 }
 0x488   : > { %v6587_v46 = vpop.f32.mrf.mxu1 }
 0x489   : > { %v10173_v22 = vpop.f32.mrf.mxu0 }
 0x48a   : > { %v4741_v4 = vpop.f32.mrf.mxu1 }
 0x48b   : > { %v10179_v40 = vpop.f32.mrf.mxu0 }
 0x48c   : > { %v6590_v54 = vpop.f32.mrf.mxu1 }
 0x48d   : > { %v10185_v29 = vpop.f32.mrf.mxu0 }
 0x48e   : > { %v10145_v16 = vpop.f32.mrf.mxu1 }
 0x48f   : > { %v10191_v26 = vpop.f32.mrf.mxu0 }
 0x490   : > { %v10147_v24 = vpop.f32.mrf.mxu1 }
 0x491   : > { %v10197_v56 = vpop.f32.mrf.mxu0 }
 0x492   : > { %v10151_v8 = vpop.f32.mrf.mxu1  ;;  %10655 = vst [vmem:[#allocation75_spill] sm:$0xff] %v10197_v56 }
 0x494   : > { %v10153_v43 = vpop.f32.mrf.mxu1 }
 0x496   : > { %v10157_v10 = vpop.f32.mrf.mxu1 }
 0x498   : > { %v10159_v13 = vpop.f32.mrf.mxu1 }
 0x49a   : > { %v10163_v48 = vpop.f32.mrf.mxu1 }
 0x49c   : > { %v10165_v42 = vpop.f32.mrf.mxu1 }
 0x49e   : > { %v10169_v57 = vpop.f32.mrf.mxu1 }
 0x4a0   : > { %v10171_v0 = vpop.f32.mrf.mxu1 }
 0x4a1   : > { %10646 = vst [vmem:[#allocation66_spill] sm:$0xff] %v10171_v0 }
 0x4a2   : > { %v10175_v3 = vpop.f32.mrf.mxu1 }
 0x4a3   : > { %10647 = vst [vmem:[#allocation67_spill] sm:$0xff] %v10175_v3 }
 0x4a4   : > { %v10177_v1 = vpop.f32.mrf.mxu1 }
 0x4a5   : > { %10648 = vst [vmem:[#allocation68_spill] sm:$0xff] %v10177_v1 }
 0x4a6   : > { %v10181_v20 = vpop.f32.mrf.mxu1 }
 0x4a7   : > { %10649 = vst [vmem:[#allocation69_spill] sm:$0xff] %v10181_v20  ;;  %v10203_v20 = vpop.f32.mrf.mxu0 }
 0x4a8   : > { %v10183_v55 = vpop.f32.mrf.mxu1  ;;  %10658 = vst [vmem:[#allocation78_spill] sm:$0xff] %v10203_v20  ;;  %v10666_v20 = vld [vmem:[#allocation24_spill] sm:$0xff] }
 0x4a9   : > { %10650 = vst [vmem:[#allocation70_spill] sm:$0xff] %v10183_v55 }
 0x4aa   : > { %v10187_v63 = vpop.f32.mrf.mxu1 }
 0x4ab   : > { %10651 = vst [vmem:[#allocation71_spill] sm:$0xff] %v10187_v63  ;;  %v10209_v63 = vpop.f32.mrf.mxu0 }
 0x4ac   : > { %v10189_v25 = vpop.f32.mrf.mxu1  ;;  %10661 = vst [vmem:[#allocation81_spill] sm:$0xff] %v10209_v63  ;;  %v10668_v63 = vld [vmem:[#allocation25_spill] sm:$0xff] }
 0x4ad   : > { %10652 = vst [vmem:[#allocation72_spill] sm:$0xff] %v10189_v25  ;;  %v10217_v52 = vpop.f32.mrf.mxu0 }
 0x4ae   : > { %v10193_v27 = vpop.f32.mrf.mxu1 }
 0x4af   : > { %10653 = vst [vmem:[#allocation73_spill] sm:$0xff] %v10193_v27  ;;  %v10227_v0 = vpop.f32.mrf.mxu0 }
 0x4b0   : > { %v10195_v6 = vpop.f32.mrf.mxu1 }
 0x4b1   : > { %10654 = vst [vmem:[#allocation74_spill] sm:$0xff] %v10195_v6  ;;  %v10664_v6 = vld [vmem:[#allocation23_spill] sm:$0xff] }
 0x4b2   : > { %v10199_v1 = vpop.f32.mrf.mxu1  ;;  %v4661_v56 = vadd.f32 %v10664_v6, %v9998_v38  ;;  %10665 = vst [vmem:[#allocation23_spill] sm:$0xff] %v10217_v52  ;;  %v10670_v38 = vld [vmem:[#allocation27_spill] sm:$0xff] }
 0x4b3   : > { %10656 = vst [vmem:[#allocation76_spill] sm:$0xff] %v10199_v1  ;;  %v4660_v52 = vadd.f32 %v10670_v38, %v10013_v33  ;;  %v10245_v33 = vld [vmem:[%s10517_s4] ss:$0 sm:$0xff] }
 0x4b4   : > { %v10201_v3 = vpop.f32.mrf.mxu1 }
 0x4b5   : > { %10657 = vst [vmem:[#allocation77_spill] sm:$0xff] %v10201_v3  ;;  %v4867_v3 = vadd.f32 %v6586_v45, %v4661_v56  ;;  %v10671_v45 = vld [vmem:[#allocation28_spill] sm:$0xff] }
 0x4b6   : > { %v10205_v55 = vpop.f32.mrf.mxu1 }
 0x4b7   : > { %10659 = vst [vmem:[#allocation79_spill] sm:$0xff] %v10205_v55  ;;  %v4659_v55 = vadd.f32 %v10666_v20, %v10005_v59  ;;  %v5068_v56 = vadd.f32 %v9890_v39, %v4867_v3  ;;  %v4665_v59 = vadd.f32 %v10671_v45, %v10018_v18  ;;  %v10674_v45 = vld [vmem:[#allocation31_spill] sm:$0xff] }
 0x4b8   : > { %v10207_v36 = vpop.f32.mrf.mxu1 }
 0x4b9   : > { %10660 = vst [vmem:[#allocation80_spill] sm:$0xff] %v10207_v36  ;;  %v4865_v36 = vadd.f32 %v4738_v11, %v4659_v55  ;;  %v4866_v55 = vadd.f32 %v4741_v4, %v4660_v52 }
 0x4ba   : > { %v10211_v25 = vpop.f32.mrf.mxu1 }
 0x4bb   : > { %10662 = vst [vmem:[#allocation82_spill] sm:$0xff] %v10211_v25  ;;  %v4662_v25 = vadd.f32 %v10668_v63, %v10008_v30  ;;  %v5066_v30 = vadd.f32 %v9900_v2, %v4865_v36  ;;  %v10238_v63 = vpop.f32.mrf.mxu0  ;;  %v10673_v36 = vld [vmem:[#allocation30_spill] sm:$0xff]  ;;  %v5067_v38 = vadd.f32 %v9924_v34, %v4866_v55  ;;  %v10675_v34 = vld [vmem:[#allocation32_spill] sm:$0xff] }
 0x4bc   : > { %v10213_v27 = vpop.f32.mrf.mxu1  ;;  %v4669_v55 = vadd.f32 %v10675_v34, %v10034_v15  ;;  %v10676_v15 = vld [vmem:[#allocation33_spill] sm:$0xff] }
 0x4bd   : > { %10663 = vst [vmem:[#allocation83_spill] sm:$0xff] %v10213_v27  ;;  %v4868_v6 = vadd.f32 %v6587_v46, %v4662_v25 }
 0x4be   : > { %v10219_v1 = vpop.f32.mrf.mxu1 }
 0x4bf   : > { %v5069_v3 = vadd.f32 %v9914_v49, %v4868_v6  ;;  %v4664_v49 = vadd.f32 %v10674_v45, %v10031_v62 }
 0x4c0   : > { %v10223_v35 = vpop.f32.mrf.mxu1 }
 0x4c1   : > { %10667 = vst [vmem:[#allocation24_spill] sm:$0xff] %v10223_v35  ;;  %v4871_v35 = vadd.f32 %v6590_v54, %v4665_v59  ;;  %v4666_v54 = vadd.f32 %v10673_v36, %v10026_v14 }
 0x4c2   : > { %v10229_v27 = vpop.f32.mrf.mxu1 }
 0x4c3   : > { %10669 = vst [vmem:[#allocation25_spill] sm:$0xff] %v10229_v27  ;;  %v10672_v27 = vld [vmem:[#allocation29_spill] sm:$0xff] }
 0x4c4   : > { %v6654_v20 = vpop.f32.mrf.mxu1  ;;  %v4663_v25 = vadd.f32 %v10672_v27, %v10023_v60 }
 0x4c5   : > { %v5280_v11 = vadd.f32 %v6654_v20, %v5068_v56  ;;  %v10257_v56 = vpop.f32.mrf.mxu0 }
 0x4c6   : > { %v5151_v39 = vpop.f32.mrf.mxu1  ;;  %v4869_v2 = vadd.f32 %v10145_v16, %v4663_v25  ;;  %v5072_v16 = vadd.f32 %v9938_v47, %v4871_v35 }
 0x4c7   : > { %v5486_v18 = vadd.f32 %v10141_v5, %v5280_v11  ;;  %v5278_v52 = vadd.f32 %v5151_v39, %v5066_v30  ;;  %v4872_v5 = vadd.f32 %v10147_v24, %v4666_v54  ;;  %v10274_v25 = vpop.f32.mrf.mxu0  ;;  %v4667_v39 = vadd.f32 %v10676_v15, %v10039_v50  ;;  %v10677_v54 = vld [vmem:[#allocation35_spill] sm:$0xff] }
 0x4c8   : > { %v6655_v46 = vpop.f32.mrf.mxu1  ;;  %v5070_v24 = vadd.f32 %v9948_v61, %v4869_v2 }
 0x4c9   : > { %v5525_v60 = vadd.f32 %v10245_v33, %v5486_v18  ;;  %v5484_v27 = vadd.f32 %v10143_v9, %v5278_v52  ;;  %v5281_v4 = vadd.f32 %v6655_v46, %v5069_v3  ;;  %v4870_v9 = vadd.f32 %v10151_v8, %v4664_v49 }
 0x4ca   : > { %v5154_v6 = vpop.f32.mrf.mxu1  ;;  %v4875_v8 = vadd.f32 %v10153_v43, %v4669_v55  ;;  %v5073_v18 = vadd.f32 %v9962_v19, %v4872_v5  ;;  %v4873_v36 = vadd.f32 %v10157_v10, %v4667_v39  ;;  %v4670_v46 = vadd.f32 %v10677_v54, %v10042_v12  ;;  %v10678_v10 = vld [vmem:[#allocation36_spill] sm:$0xff]  ;;  %v10686_v54 = vld [vmem:[#allocation75_spill] sm:$0xff] }
 0x4cb   : > { %v5557_v59 = vmax.f32 %v5525_v60, 0.0  ;;  %v5523_v14 = vadd.f32 %v10245_v33, %v5484_v27  ;;  %v5487_v20 = vadd.f32 %v10149_v44, %v5281_v4  ;;  %v5279_v11 = vadd.f32 %v5154_v6, %v5067_v38  ;;  %v10290_v38 = vpop.f32.mrf.mxu0 }
 0x4cc   : > { %v6658_v30 = vpop.f32.mrf.mxu1  ;;  %v5071_v60 = vadd.f32 %v9970_v7, %v4870_v9  ;;  %v4668_v5 = vadd.f32 %v10678_v10, %v10047_v23  ;;  %v5076_v12 = vadd.f32 %v9982_v31, %v4875_v8 }
 0x4cd   : > { %5589 = vst [vmem:[%s10269_s17 + $0x10] sm:$0xff] %v5557_v59  ;;  %v5555_v47 = vmax.f32 %v5523_v14, 0.0  ;;  %v5526_v62 = vadd.f32 %v10245_v33, %v5487_v20  ;;  %v5485_v35 = vadd.f32 %v10155_v53, %v5279_v11  ;;  %v5284_v44 = vadd.f32 %v6658_v30, %v5072_v16  ;;  %v10679_v59 = vld [vmem:[#allocation39_spill] sm:$0xff]  ;;  %v10306_v34 = vpop.f32.mrf.mxu0 }
 0x4ce   : > { %v5167_v61 = vpop.f32.mrf.mxu1  ;;  %v4874_v16 = vadd.f32 %v10163_v48, %v4668_v5  ;;  %v4673_v14 = vadd.f32 %v10679_v59, %v10050_v58  ;;  %v5074_v20 = vadd.f32 %v9990_v37, %v4873_v36  ;;  %v10680_v48 = vld [vmem:[#allocation41_spill] sm:$0xff]  ;;  %v10693_v59 = vld [vmem:[#allocation18_spill] sm:$0xff] }
 0x4cf   : > { %5587 = vst [vmem:[%s10269_s17] sm:$0xff] %v5555_v47  ;;  %v5558_v52 = vmax.f32 %v5526_v62, 0.0  ;;  %v5524_v3 = vadd.f32 %v10245_v33, %v5485_v35  ;;  %v5490_v2 = vadd.f32 %v10161_v21, %v5284_v44  ;;  %v5282_v53 = vadd.f32 %v5167_v61, %v5070_v24  ;;  %v10681_v35 = vld [vmem:[#allocation43_spill] sm:$0xff]  ;;  %v10322_v61 = vpop.f32.mrf.mxu0 }
 0x4d0   : > { %v6659_v43 = vpop.f32.mrf.mxu1  ;;  %v4876_v21 = vadd.f32 %v10159_v13, %v4670_v46  ;;  %v4671_v55 = vadd.f32 %v10680_v48, %v10055_v32  ;;  %v4674_v44 = vadd.f32 %v10681_v35, %v10058_v41  ;;  %v5075_v8 = vadd.f32 %v10010_v51, %v4874_v16  ;;  %v10685_v41 = vld [vmem:[#allocation6_spill] sm:$0xff] }
 0x4d1   : > { %5590 = vst [vmem:[%s10269_s17 + $0x18] sm:$0xff] %v5558_v52  ;;  %v5556_v50 = vmax.f32 %v5524_v3, 0.0  ;;  %v5529_v19 = vadd.f32 %v10245_v33, %v5490_v2  ;;  %v5488_v27 = vadd.f32 %v10167_v28, %v5282_v53  ;;  %v5285_v4 = vadd.f32 %v6659_v43, %v5073_v18  ;;  %v10683_v52 = vld [vmem:[#allocation17_spill] sm:$0xff]  ;;  %v10687_v43 = vld [vmem:[#allocation67_spill] sm:$0xff] }
 0x4d2   : > { %v5170_v45 = vpop.f32.mrf.mxu1  ;;  %v5077_v58 = vadd.f32 %v10002_v17, %v4876_v21  ;;  %v4877_v62 = vadd.f32 %v10169_v57, %v4671_v55  ;;  %v10684_v57 = vld [vmem:[#allocation45_spill] sm:$0xff]  ;;  %v10690_v21 = vld [vmem:[#allocation14_spill] sm:$0xff] }
 0x4d3   : > { %5588 = vst [vmem:[%s10269_s17 + $0x8] sm:$0xff] %v5556_v50  ;;  %v5561_v7 = vmax.f32 %v5529_v19, 0.0  ;;  %v5527_v49 = vadd.f32 %v10245_v33, %v5488_v27  ;;  %v5491_v6 = vadd.f32 %v10173_v22, %v5285_v4  ;;  %v5283_v28 = vadd.f32 %v5170_v45, %v5071_v60  ;;  %v10688_v50 = vld [vmem:[#allocation37_spill] sm:$0xff]  ;;  %v10689_v19 = vld [vmem:[#allocation46_spill] sm:$0xff] }
 0x4d4   : > { %v6662_v13 = vpop.f32.mrf.mxu1  ;;  %v4879_v22 = vadd.f32 %v10165_v42, %v4673_v14  ;;  %v4672_v3 = vadd.f32 %v10684_v57, %v10683_v52  ;;  %v4677_v27 = vadd.f32 %v10689_v19, %v10688_v50  ;;  %v5078_v10 = vadd.f32 %v10690_v21, %v4877_v62  ;;  %v10694_v14 = vld [vmem:[#allocation47_spill] sm:$0xff]  ;;  %v10704_v52 = vld [vmem:[#allocation49_spill] sm:$0xff] }
 0x4d5   : > { %5593 = vst [vmem:[%s10269_s17 + $0x30] sm:$0xff] %v5561_v7  ;;  %v5559_v23 = vmax.f32 %v5527_v49, 0.0  ;;  %v5530_v31 = vadd.f32 %v10245_v33, %v5491_v6  ;;  %v5489_v11 = vadd.f32 %v10179_v40, %v5283_v28  ;;  %v5288_v9 = vadd.f32 %v6662_v13, %v5076_v12  ;;  %v10691_v12 = vld [vmem:[#allocation78_spill] sm:$0xff]  ;;  %v10338_v6 = vpop.f32.mrf.mxu0  ;;  %v10692_v28 = vld [vmem:[#allocation68_spill] sm:$0xff]  ;;  %v10700_v62 = vld [vmem:[#allocation15_spill] sm:$0xff] }
 0x4d6   : > { %v5183_v30 = vpop.f32.mrf.mxu1  ;;  %v5080_v53 = vadd.f32 %v10685_v41, %v4879_v22  ;;  %v4878_v60 = vadd.f32 %v10687_v43, %v4672_v3  ;;  %v4883_v16 = vadd.f32 %v10692_v28, %v4677_v27  ;;  %v4675_v13 = vadd.f32 %v10694_v14, %v10693_v59  ;;  %v10696_v22 = vld [vmem:[#allocation81_spill] sm:$0xff]  ;;  %v10707_v43 = vld [vmem:[#allocation20_spill] sm:$0xff]  ;;  %v10709_v27 = vld [vmem:[#allocation7_spill] sm:$0xff] }
 0x4d7   : > { %5591 = vst [vmem:[%s10269_s17 + $0x20] sm:$0xff] %v5559_v23  ;;  %v5562_v37 = vmax.f32 %v5530_v31, 0.0  ;;  %v5528_v24 = vadd.f32 %v10245_v33, %v5489_v11  ;;  %v5494_v47 = vadd.f32 %v10185_v29, %v5288_v9  ;;  %v5286_v40 = vadd.f32 %v5183_v30, %v5074_v20  ;;  %v10682_v29 = vld [vmem:[#allocation66_spill] sm:$0xff]  ;;  %v10697_v30 = vld [vmem:[#allocation69_spill] sm:$0xff]  ;;  %v10712_v28 = vld [vmem:[#allocation51_spill] sm:$0xff] }
 0x4d8   : > { %v6663_v42 = vpop.f32.mrf.mxu1  ;;  %v4880_v18 = vadd.f32 %v10682_v29, %v4674_v44  ;;  %v10695_v23 = vld [vmem:[#allocation34_spill] sm:$0xff]  ;;  %v5079_v35 = vadd.f32 %v10700_v62, %v4878_v60  ;;  %v10713_v14 = vld [vmem:[#allocation8_spill] sm:$0xff] }
 0x4d9   : > { %5594 = vst [vmem:[%s10269_s17 + $0x38] sm:$0xff] %v5562_v37  ;;  %v5560_v32 = vmax.f32 %v5528_v24, 0.0  ;;  %v5533_v17 = vadd.f32 %v10245_v33, %v5494_v47  ;;  %v5492_v15 = vadd.f32 %v10191_v26, %v5286_v40  ;;  %v5289_v39 = vadd.f32 %v6663_v42, %v5077_v58  ;;  %v10698_v37 = vld [vmem:[#allocation38_spill] sm:$0xff]  ;;  %v10699_v24 = vld [vmem:[#allocation48_spill] sm:$0xff] }
 0x4da   : > { %v5186_v2 = vpop.f32.mrf.mxu1  ;;  %v5081_v31 = vadd.f32 %v10695_v23, %v4880_v18  ;;  %v4881_v58 = vadd.f32 %v10697_v30, %v4675_v13  ;;  %v4678_v47 = vadd.f32 %v10699_v24, %v10698_v37  ;;  %v10703_v18 = vld [vmem:[#allocation40_spill] sm:$0xff]  ;;  %v10708_v60 = vld [vmem:[#allocation50_spill] sm:$0xff] }
 0x4db   : > { %5592 = vst [vmem:[%s10269_s17 + $0x28] sm:$0xff] %v5560_v32  ;;  %v5565_v51 = vmax.f32 %v5533_v17, 0.0  ;;  %v5531_v36 = vadd.f32 %v10245_v33, %v5492_v15  ;;  %v5495_v46 = vadd.f32 %v10686_v54, %v5289_v39  ;;  %v5287_v26 = vadd.f32 %v5186_v2, %v5075_v8  ;;  %v10701_v8 = vld [vmem:[#allocation23_spill] sm:$0xff]  ;;  %v10354_v15 = vpop.f32.mrf.mxu0  ;;  %v10702_v39 = vld [vmem:[#allocation70_spill] sm:$0xff]  ;;  %v10705_v2 = vld [vmem:[#allocation16_spill] sm:$0xff] }
 0x4dc   : > { %v6666_v4 = vpop.f32.mrf.mxu1  ;;  %v4884_v29 = vadd.f32 %v10702_v39, %v4678_v47  ;;  %v4676_v57 = vadd.f32 %v10704_v52, %v10703_v18  ;;  %v5084_v41 = vadd.f32 %v10705_v2, %v4883_v16  ;;  %v4681_v50 = vadd.f32 %v10708_v60, %v10707_v43  ;;  %v10721_v39 = vld [vmem:[#allocation9_spill] sm:$0xff]  ;;  %v10722_v2 = vld [vmem:[#allocation76_spill] sm:$0xff] }
 0x4dd   : > { %5597 = vst [vmem:[%s10269_s17 + $0x50] sm:$0xff] %v5565_v51  ;;  %v5563_v5 = vmax.f32 %v5531_v36, 0.0  ;;  %v5534_v45 = vadd.f32 %v10245_v33, %v5495_v46  ;;  %v5493_v7 = vadd.f32 %v10691_v12, %v5287_v26  ;;  %v5292_v49 = vadd.f32 %v6666_v4, %v5080_v53  ;;  %v10706_v46 = vld [vmem:[#allocation71_spill] sm:$0xff]  ;;  %v10370_v12 = vpop.f32.mrf.mxu0  ;;  %v10724_v60 = vld [vmem:[#allocation5_spill] sm:$0xff] }
 0x4de   : > { %v5199_v20 = vpop.f32.mrf.mxu1  ;;  %v4882_v26 = vadd.f32 %v10706_v46, %v4676_v57  ;;  %v5082_v4 = vadd.f32 %v10709_v27, %v4881_v58  ;;  %v5085_v13 = vadd.f32 %v10713_v14, %v4884_v29  ;;  %v10717_v58 = vld [vmem:[#allocation19_spill] sm:$0xff] }
 0x4df   : > { %5595 = vst [vmem:[%s10269_s17 + $0x40] sm:$0xff] %v5563_v5  ;;  %v5566_v11 = vmax.f32 %v5534_v45, 0.0  ;;  %v5532_v9 = vadd.f32 %v10245_v33, %v5493_v7  ;;  %v5498_v48 = vadd.f32 %v10696_v22, %v5292_v49  ;;  %v5290_v55 = vadd.f32 %v5199_v20, %v5078_v10  ;;  %v10711_v49 = vld [vmem:[#allocation21_spill] sm:$0xff]  ;;  %v10715_v22 = vld [vmem:[#allocation10_spill] sm:$0xff] }
 0x4e0   : > { %v6667_v40 = vpop.f32.mrf.mxu1  ;;  %v4679_v16 = vadd.f32 %v10712_v28, %v10711_v49  ;;  %v5083_v37 = vadd.f32 %v10717_v58, %v4882_v26  ;;  %v10729_v28 = vld [vmem:[#allocation11_spill] sm:$0xff] }
 0x4e1   : > { %5598 = vst [vmem:[%s10269_s17 + $0x58] sm:$0xff] %v5566_v11  ;;  %v5564_v44 = vmax.f32 %v5532_v9, 0.0  ;;  %v5537_v42 = vadd.f32 %v10245_v33, %v5498_v48  ;;  %v5496_v32 = vadd.f32 %v10701_v8, %v5290_v55  ;;  %v5293_v17 = vadd.f32 %v6667_v40, %v5081_v31  ;;  %v10714_v11 = vld [vmem:[#allocation73_spill] sm:$0xff]  ;;  %v10716_v48 = vld [vmem:[#allocation52_spill] sm:$0xff] }
 0x4e2   : > { %v5202_v3 = vpop.f32.mrf.mxu1  ;;  %v4885_v9 = vadd.f32 %v10714_v11, %v4679_v16  ;;  %v4682_v55 = vadd.f32 %v10716_v48, %v10715_v22  ;;  %v10720_v8 = vld [vmem:[#allocation53_spill] sm:$0xff] }
 0x4e3   : > { %5596 = vst [vmem:[%s10269_s17 + $0x48] sm:$0xff] %v5564_v44  ;;  %v5569_v53 = vmax.f32 %v5537_v42, 0.0  ;;  %v5535_v51 = vadd.f32 %v10245_v33, %v5496_v32  ;;  %v5499_v36 = vadd.f32 %v10227_v0, %v5293_v17  ;;  %v5291_v54 = vadd.f32 %v5202_v3, %v5079_v35  ;;  %v10710_v0 = vld [vmem:[#allocation72_spill] sm:$0xff]  ;;  %v6712_v35 = vpop.f32.mrf.mxu0  ;;  %v10719_v42 = vld [vmem:[#allocation42_spill] sm:$0xff] }
 0x4e4   : > { %v6670_v19 = vpop.f32.mrf.mxu1  ;;  %v4887_v7 = vadd.f32 %v10710_v0, %v4681_v50  ;;  %v4680_v32 = vadd.f32 %v10720_v8, %v10719_v42  ;;  %v10725_v50 = vld [vmem:[#allocation77_spill] sm:$0xff]  ;;  %v10727_v0 = vld [vmem:[#allocation54_spill] sm:$0xff] }
 0x4e5   : > { %5601 = vst [vmem:[%s10269_s17 + $0x70] sm:$0xff] %v5569_v53  ;;  %v5567_v21 = vmax.f32 %v5535_v51, 0.0  ;;  %v5538_v10 = vadd.f32 %v10245_v33, %v5499_v36  ;;  %v5497_v5 = vadd.f32 %v10238_v63, %v5291_v54  ;;  %v5296_v45 = vadd.f32 %v6670_v19, %v5084_v41  ;;  %v10723_v53 = vld [vmem:[#allocation22_spill] sm:$0xff]  ;;  %v5453_v43 = vpop.f32.mrf.mxu0 }
 0x4e6   : > { %v5215_v59 = vpop.f32.mrf.mxu1  ;;  %v5088_v29 = vadd.f32 %v10721_v39, %v4887_v7  ;;  %v5086_v51 = vadd.f32 %v10723_v53, %v4885_v9  ;;  %v4891_v19 = vadd.f32 %v10725_v50, %v10724_v60  ;;  %v10728_v7 = vld [vmem:[#allocation79_spill] sm:$0xff]  ;;  %v10732_v9 = vld [vmem:[#allocation12_spill] sm:$0xff] }
 0x4e7   : > { %5599 = vst [vmem:[%s10269_s17 + $0x60] sm:$0xff] %v5567_v21  ;;  %v5570_v20 = vmax.f32 %v5538_v10, 0.0  ;;  %v5536_v23 = vadd.f32 %v10245_v33, %v5497_v5  ;;  %v5502_v31 = vadd.f32 %v10257_v56, %v5296_v45  ;;  %v5294_v63 = vadd.f32 %v5215_v59, %v5082_v4  ;;  %v10718_v56 = vld [vmem:[#allocation74_spill] sm:$0xff]  ;;  %v10737_v39 = vld [vmem:[#allocation83_spill] sm:$0xff] }
 0x4e8   : > { %v6671_v30 = vpop.f32.mrf.mxu1  ;;  %v4888_v44 = vadd.f32 %v10718_v56, %v4682_v55  ;;  %v4889_v49 = vadd.f32 %v10728_v7, %v10727_v0  ;;  %v5092_v22 = vadd.f32 %v10732_v9, %v4891_v19  ;;  %v10741_v19 = vld [vmem:[#allocation62_spill] sm:$0xff]  ;;  %v10744_v0 = vld [vmem:[#allocation64_spill] sm:$0xff]  ;;  %v10745_v7 = vld [vmem:[#allocation25_spill] sm:$0xff] }
 0x4e9   : > { %5602 = vst [vmem:[%s10269_s17 + $0x78] sm:$0xff] %v5570_v20  ;;  %v5568_v24 = vmax.f32 %v5536_v23, 0.0  ;;  %v5541_v47 = vadd.f32 %v10245_v33, %v5502_v31  ;;  %v5500_v40 = vadd.f32 %v10274_v25, %v5294_v63  ;;  %v5297_v62 = vadd.f32 %v6671_v30, %v5085_v13  ;;  %v6713_v23 = vpop.f32.mrf.mxu0  ;;  %v10730_v31 = vld [vmem:[#allocation56_spill] sm:$0xff] }
 0x4ea   : > { %v5218_v17 = vpop.f32.mrf.mxu1  ;;  %v4886_v25 = vadd.f32 %v10722_v2, %v4680_v32  ;;  %v10731_v63 = vld [vmem:[#allocation80_spill] sm:$0xff] }
 0x4eb   : > { %5600 = vst [vmem:[%s10269_s17 + $0x68] sm:$0xff] %v5568_v24  ;;  %v5573_v18 = vmax.f32 %v5541_v47, 0.0  ;;  %v5539_v52 = vadd.f32 %v10245_v33, %v5500_v40  ;;  %v5503_v57 = vadd.f32 %v10290_v38, %v5297_v62  ;;  %v5295_v3 = vadd.f32 %v5218_v17, %v5083_v37  ;;  %v10726_v38 = vld [vmem:[#allocation44_spill] sm:$0xff]  ;;  %v10733_v37 = vld [vmem:[#allocation58_spill] sm:$0xff]  ;;  %v10735_v40 = vld [vmem:[#allocation13_spill] sm:$0xff]  ;;  %v5456_v32 = vpop.f32.mrf.mxu0 }
 0x4ec   : > { %v6674_v41 = vpop.f32.mrf.mxu1  ;;  %v5089_v4 = vadd.f32 %v10726_v38, %v4888_v44  ;;  %v5087_v16 = vadd.f32 %v10729_v28, %v4886_v25  ;;  %v4892_v11 = vadd.f32 %v10731_v63, %v10730_v31  ;;  %v10734_v24 = vld [vmem:[#allocation82_spill] sm:$0xff]  ;;  %v5090_v62 = vadd.f32 %v10735_v40, %v4889_v49  ;;  %v10736_v17 = vld [vmem:[#allocation59_spill] sm:$0xff] }
 0x4ed   : > { %5605 = vst [vmem:[%s10269_s17 + $0x90] sm:$0xff] %v5573_v18  ;;  %v5571_v36 = vmax.f32 %v5539_v52, 0.0  ;;  %v5542_v54 = vadd.f32 %v10245_v33, %v5503_v57  ;;  %v5501_v46 = vadd.f32 %v10306_v34, %v5295_v3  ;;  %v5300_v26 = vadd.f32 %v6674_v41, %v5088_v29  ;;  %v10738_v18 = vld [vmem:[#allocation26_spill] sm:$0xff]  ;;  %v10739_v41 = vld [vmem:[#allocation61_spill] sm:$0xff]  ;;  %v10747_v63 = vld [vmem:[#allocation63_spill] sm:$0xff] }
 0x4ee   : > { %v5231_v27 = vpop.f32.mrf.mxu1  ;;  %v4890_v47 = vadd.f32 %v10734_v24, %v10733_v37  ;;  %v4895_v29 = vadd.f32 %v10737_v39, %v10736_v17  ;;  %v5093_v52 = vadd.f32 %v10738_v18, %v4892_v11  ;;  %v4893_v53 = vadd.f32 %v10219_v1, %v10739_v41 }
 0x4ef   : > { %5603 = vst [vmem:[%s10269_s17 + $0x80] sm:$0xff] %v5571_v36  ;;  %v5574_v21 = vmax.f32 %v5542_v54, 0.0  ;;  %v5540_v10 = vadd.f32 %v10245_v33, %v5501_v46  ;;  %v5506_v5 = vadd.f32 %v10322_v61, %v5300_v26  ;;  %v5298_v45 = vadd.f32 %v5231_v27, %v5086_v51  ;;  %v10740_v36 = vld [vmem:[#allocation55_spill] sm:$0xff]  ;;  %v10742_v27 = vld [vmem:[#allocation24_spill] sm:$0xff] }
 0x4f0   : > { %v6675_v34 = vpop.f32.mrf.mxu1  ;;  %v5091_v54 = vadd.f32 %v10740_v36, %v4890_v47  ;;  %v4896_v38 = vadd.f32 %v10742_v27, %v10741_v19  ;;  %v4894_v49 = vadd.f32 %v10745_v7, %v10744_v0 }
 0x4f1   : > { %5606 = vst [vmem:[%s10269_s17 + $0x98] sm:$0xff] %v5574_v21  ;;  %v5572_v59 = vmax.f32 %v5540_v10, 0.0  ;;  %v5545_v14 = vadd.f32 %v10245_v33, %v5506_v5  ;;  %v5504_v13 = vadd.f32 %v10338_v6, %v5298_v45  ;;  %v5301_v20 = vadd.f32 %v6675_v34, %v5089_v4 }
 0x4f2   : > { %v5234_v61 = vpop.f32.mrf.mxu1  ;;  %v5097_v11 = vadd.f32 %v10747_v63, %v4896_v38 }
 0x4f3   : > { %5604 = vst [vmem:[%s10269_s17 + $0x88] sm:$0xff] %v5572_v59  ;;  %v5577_v48 = vmax.f32 %v5545_v14, 0.0  ;;  %v5543_v55 = vadd.f32 %v10245_v33, %v5504_v13  ;;  %v5507_v30 = vadd.f32 %v10354_v15, %v5301_v20  ;;  %v5299_v58 = vadd.f32 %v5234_v61, %v5087_v16 }
 0x4f4   : > { %v6678_v6 = vpop.f32.mrf.mxu1 }
 0x4f5   : > { %5609 = vst [vmem:[%s10269_s17 + $0xb0] sm:$0xff] %v5577_v48  ;;  %v5575_v56 = vmax.f32 %v5543_v55, 0.0  ;;  %v5546_v44 = vadd.f32 %v10245_v33, %v5507_v30  ;;  %v5505_v42 = vadd.f32 %v10370_v12, %v5299_v58  ;;  %v5304_v8 = vadd.f32 %v6678_v6, %v5092_v22  ;;  %v6716_v12 = vpop.f32.mrf.mxu0  ;;  %v10748_v30 = vld [vmem:[#allocation65_spill] sm:$0xff] }
 0x4f6   : > { %v5247_v15 = vpop.f32.mrf.mxu1  ;;  %v5095_v58 = vadd.f32 %v10748_v30, %v4894_v49 }
 0x4f7   : > { %5607 = vst [vmem:[%s10269_s17 + $0xa0] sm:$0xff] %v5575_v56  ;;  %v5578_v57 = vmax.f32 %v5546_v44, 0.0  ;;  %v5544_v3 = vadd.f32 %v10245_v33, %v5505_v42  ;;  %v5510_v2 = vadd.f32 %v6712_v35, %v5304_v8  ;;  %v5302_v25 = vadd.f32 %v5247_v15, %v5090_v62  ;;  %v10743_v35 = vld [vmem:[#allocation57_spill] sm:$0xff]  ;;  %v5469_v34 = vpop.f32.mrf.mxu0 }
 0x4f8   : > { %v6679_v51 = vpop.f32.mrf.mxu1  ;;  %v5096_v21 = vadd.f32 %v10743_v35, %v4895_v29 }
 0x4f9   : > { %5610 = vst [vmem:[%s10269_s17 + $0xb8] sm:$0xff] %v5578_v57  ;;  %v5576_v46 = vmax.f32 %v5544_v3, 0.0  ;;  %v5549_v26 = vadd.f32 %v10245_v33, %v5510_v2  ;;  %v5508_v60 = vadd.f32 %v5453_v43, %v5302_v25  ;;  %v5305_v50 = vadd.f32 %v6679_v51, %v5093_v52  ;;  %v10746_v43 = vld [vmem:[#allocation60_spill] sm:$0xff]  ;;  %v6717_v48 = vpop.f32.mrf.mxu0 }
 0x4fa   : > { %v5250_v4 = vpop.f32.mrf.mxu1  ;;  %v5094_v16 = vadd.f32 %v10746_v43, %v4893_v53 }
 0x4fb   : > { %5608 = vst [vmem:[%s10269_s17 + $0xa8] sm:$0xff] %v5576_v46  ;;  %v5581_v1 = vmax.f32 %v5549_v26, 0.0  ;;  %v5547_v10 = vadd.f32 %v10245_v33, %v5508_v60  ;;  %v5511_v5 = vadd.f32 %v6713_v23, %v5305_v50  ;;  %v5303_v45 = vadd.f32 %v5250_v4, %v5091_v54  ;;  %v5472_v8 = vpop.f32.mrf.mxu0 }
 0x4fc   : > { %v6682_v28 = vpop.f32.mrf.mxu1 }
 0x4fd   : > { %5613 = vst [vmem:[%s10269_s17 + $0xd0] sm:$0xff] %v5581_v1  ;;  %v5579_v59 = vmax.f32 %v5547_v10, 0.0  ;;  %v5550_v14 = vadd.f32 %v10245_v33, %v5511_v5  ;;  %v5509_v13 = vadd.f32 %v5456_v32, %v5303_v45  ;;  %v5308_v20 = vadd.f32 %v6682_v28, %v5096_v21 }
 0x4fe   : > { %v5263_v31 = vpop.f32.mrf.mxu1 }
 0x4ff   : > { %5611 = vst [vmem:[%s10269_s17 + $0xc0] sm:$0xff] %v5579_v59  ;;  %v5582_v23 = vmax.f32 %v5550_v14, 0.0  ;;  %v5548_v61 = vadd.f32 %v10245_v33, %v5509_v13  ;;  %v5514_v9 = vadd.f32 %v6716_v12, %v5308_v20  ;;  %v5306_v22 = vadd.f32 %v5263_v31, %v5094_v16 }
 0x500   : > { %v6683_v55 = vpop.f32.mrf.mxu1 }
 0x501   : > { %5614 = vst [vmem:[%s10269_s17 + $0xd8] sm:$0xff] %v5582_v23  ;;  %v5580_v37 = vmax.f32 %v5548_v61, 0.0  ;;  %v5553_v24 = vadd.f32 %v10245_v33, %v5514_v9  ;;  %v5512_v47 = vadd.f32 %v5469_v34, %v5306_v22  ;;  %v5309_v6 = vadd.f32 %v6683_v55, %v5097_v11 }
 0x502   : > { %v5266_v40 = vpop.f32.mrf.mxu1 }
 0x503   : > { %5612 = vst [vmem:[%s10269_s17 + $0xc8] sm:$0xff] %v5580_v37  ;;  %v5585_v62 = vmax.f32 %v5553_v24, 0.0  ;;  %v5551_v56 = vadd.f32 %v10245_v33, %v5512_v47  ;;  %v5515_v44 = vadd.f32 %v6717_v48, %v5309_v6  ;;  %v5307_v42 = vadd.f32 %v5266_v40, %v5095_v58 }
 0x505   : > { %5617 = vst [vmem:[%s10269_s17 + $0xf0] sm:$0xff] %v5585_v62  ;;  %v5583_v32 = vmax.f32 %v5551_v56, 0.0  ;;  %v5554_v17 = vadd.f32 %v10245_v33, %v5515_v44  ;;  %v5513_v39 = vadd.f32 %v5472_v8, %v5307_v42 }
 0x507   : > { %5615 = vst [vmem:[%s10269_s17 + $0xe0] sm:$0xff] %v5583_v32  ;;  %v5586_v29 = vmax.f32 %v5554_v17, 0.0  ;;  %v5552_v15 = vadd.f32 %v10245_v33, %v5513_v39 }
 0x509   : > { %5618 = vst [vmem:[%s10269_s17 + $0xf8] sm:$0xff] %v5586_v29  ;;  %v5584_v18 = vmax.f32 %v5552_v15, 0.0 }
 0x50b   : > { %5616 = vst [vmem:[%s10269_s17 + $0xe8] sm:$0xff] %v5584_v18 }
 0x50c   : > { %6876 = shalt.err (!%p6873_p5)
}
 0x50d   : > { %s6877_s10 = scalar_lea.hbm %s10459_s27, 4096  ;;  %s6881_s15 = scalar_lea.hbm %s10518_s5, 8192 }
 0x50e   : > { %p6878_p6 = scmp.ne.s32.totalorder %s10459_s27, %s6877_s10  ;;  %p6882_p10 = scmp.lt.s32.totalorder %s10459_s27, %s10518_s5 }
 0x50f   : > { %p6883_p11 = scmp.lt.s32.totalorder %s6881_s15, %s6877_s10 }
 0x510   : > { %p6879_p7 = pnand %p6878_p6, %p7025_p4 }
 0x511   : > { %p6884_p12 = por %p6883_p11, %p6882_p10 }
 0x512   : > { %p6880_p9 = pneg %p6879_p7 }
 0x514   : > { %p6885_p13 = pnand %p6884_p12, %p6880_p9 }
 0x516   : > { %6888 = shalt.err (!%p6885_p13)
}
 0x517   : > { %s6954_s8 = smov 128  }
 0x518   : > { %6731 = dma.vmem_to_hbm [thread:$0]  (%p7025_p4), %s10462_s7, 4096, %s10459_s27, %s10467_s21, %s6954_s8, %s6954_s8, %s6947_s12  }
 0x519 PF: > { %p6737_p0 = scmp.ge.s32.totalorder %s6939_s23, 2  ;;  %s5651_s13 = sand.u32 1, %s6919_s18  }
 0x51a   : > { %s5652_s16 = scalar_lea.sflag [#allocation3], %s5651_s13 }
 0x51b   : > { %p6734_p1 = pnand %p6737_p0, %p7032_p8 }
 0x51d   : > { %p6735_p2 = pneg %p6734_p1 }
 0x51f   : > { %6914 = dma.done.wait (%p6735_p2), %s5652_s16, 4096  }
 0x520   : > { %6916 = vsyncadd (%p6735_p2), %s5652_s16, 4294963200  ;;  %s18_s23 = sadd.s32 1, %s6939_s23   ;;  %s10749_s18 = smov %s6923_s19 }
 0x521   : > { %p15_p3 = scmp.ge.s32.totalorder %s18_s23, 4   ;;  %s10750_s19 = smov %s6927_s20 }
 0x522   : > { %s10751_s20 = smov %s7038_s6  ;;  %s10752_s21 = smov %s6935_s22 }
 0x523   : > { %s10753_s22 = smov %s10755_s26  ;;  %17 = sbr.rel (!%p15_p3) target bundleno = 4 (0x4), region = 83 }
 0x528   :  { %5657 = vsyncpa [#allocation3], 1 }
 0x529   :  { %5659 = vsyncpa [#allocation3 + $0x1], 1 }

</bundles_post_ra>
